<compile_context>
chip_gen: v7x
topology: tpu7x:2x2x1
jax: 0.10.0
libtpu: 0.0.40
codegen_flags: <defaults>
</compile_context>

<pallas_src>
import math

import numpy as np

import jax
import jax.numpy as jnp
from jax.experimental import pallas as pl
from jax.experimental.pallas import tpu as pltpu

# ----------------------------------------------------------------------------
# small, deterministic hyper-parameters consistent with EBranchformerEncoder
# ----------------------------------------------------------------------------
HIDDEN = 32           # hidden_size
NUM_LAYERS = 2        # num_layers (kept small for the test)
NUM_HEADS = 4         # num_heads
HEAD_DIM = HIDDEN // NUM_HEADS
LINEAR_UNITS = 64     # PositionwiseFeedForward hidden units
CGMLP_UNITS = 64      # ConvolutionalGatingMLP hidden units (even)
CGMLP_HALF = CGMLP_UNITS // 2
CGMLP_KERNEL = 31     # cgmlp_conv_kernel (module default)
MERGE_KERNEL = 3      # merge_conv_kernel (module default)
VOCAB = 50
LN_EPS = 1e-5
NEG_MIN = float(np.finfo(np.float32).min)
SQRT_D = math.sqrt(HIDDEN)
ATT_SCALE = 1.0 / math.sqrt(HEAD_DIM)

# fused (H, 128) matmul layout: [ q | k | cgMLP x_r | cgMLP x_g ]
FUSED_WIDTH = 2 * HIDDEN + CGMLP_UNITS
assert FUSED_WIDTH == 128, "fused projection assumes 2*H + cgmlp_units == 128"

# Natural per-layer parameter table (matches the PyTorch module): linear weights
# stored transposed as (in, out), depthwise conv weights as (K, C), 1-D as (1, N).
LAYER_PARAM_SPECS = [
    ('nffm_g', (1, HIDDEN)), ('nffm_b', (1, HIDDEN)),                       # norm_ff_macaron
    ('ffm_w1', (HIDDEN, LINEAR_UNITS)), ('ffm_b1', (1, LINEAR_UNITS)),      # feed_forward_macaron
    ('ffm_w2', (LINEAR_UNITS, HIDDEN)), ('ffm_b2', (1, HIDDEN)),
    ('nmha_g', (1, HIDDEN)), ('nmha_b', (1, HIDDEN)),                       # norm_mha
    ('att_wq', (HIDDEN, HIDDEN)), ('att_bq', (1, HIDDEN)),                  # FastSelfAttention
    ('att_wqa', (HIDDEN, NUM_HEADS)), ('att_bqa', (1, NUM_HEADS)),
    ('att_wk', (HIDDEN, HIDDEN)), ('att_bk', (1, HIDDEN)),
    ('att_wka', (HIDDEN, NUM_HEADS)), ('att_bka', (1, NUM_HEADS)),
    ('att_wt', (HIDDEN, HIDDEN)), ('att_bt', (1, HIDDEN)),
    ('nmlp_g', (1, HIDDEN)), ('nmlp_b', (1, HIDDEN)),                       # norm_mlp
    ('cg_w1', (HIDDEN, CGMLP_UNITS)), ('cg_b1', (1, CGMLP_UNITS)),          # cgmlp.channel_proj1
    ('cg_ng', (1, CGMLP_HALF)), ('cg_nb', (1, CGMLP_HALF)),                 # cgmlp.csgu.norm
    ('cg_cw', (CGMLP_KERNEL, CGMLP_HALF)), ('cg_cb', (1, CGMLP_HALF)),      # cgmlp.csgu.conv (depthwise)
    ('cg_w2', (CGMLP_HALF, HIDDEN)), ('cg_b2', (1, HIDDEN)),                # cgmlp.channel_proj2
    ('fus_w', (MERGE_KERNEL, 2 * HIDDEN)), ('fus_b', (1, 2 * HIDDEN)),      # depthwise_conv_fusion
    ('mrg_w', (2 * HIDDEN, HIDDEN)), ('mrg_b', (1, HIDDEN)),                # merge_proj
    ('nff_g', (1, HIDDEN)), ('nff_b', (1, HIDDEN)),                         # norm_ff
    ('ff_w1', (HIDDEN, LINEAR_UNITS)), ('ff_b1', (1, LINEAR_UNITS)),        # feed_forward
    ('ff_w2', (LINEAR_UNITS, HIDDEN)), ('ff_b2', (1, HIDDEN)),
    ('nfin_g', (1, HIDDEN)), ('nfin_b', (1, HIDDEN)),                       # norm_final
]
GAMMA_PARAMS = {'nffm_g', 'nmha_g', 'nmlp_g', 'nff_g', 'nfin_g', 'cg_ng'}

# rows of the dense per-layer (NUM_VEC_ROWS, 128) vector slab
(VI_FUSED_B, VI_FFM_B1, VI_FFM_B2, VI_BQA, VI_BKA, VI_BT,
 VI_CG_NG, VI_CG_NB, VI_CG_CB, VI_CG_B2, VI_FUS_B1, VI_FUS_B2,
 VI_MRG_B, VI_FF_B1, VI_FF_B2, VI_NFIN_G, VI_NFIN_B) = range(17)
NUM_VEC_ROWS = 17


# ----------------------------------------------------------------------------
# fused encoder kernel (one sequence per grid step; closure over static T)
# ----------------------------------------------------------------------------
def _make_encoder_kernel(T):
    CG_SHIFTS = list(range(T))                 # combined cgMLP taps, index == shift
    FUS_SHIFTS = [1, 0, (T - 1) % T]           # merge-conv taps k=0,1,2 <-> d=-1,0,+1

    def normalize(x):                          # LayerNorm without affine
        mu = jnp.mean(x, axis=-1, keepdims=True)
        xc = x - mu
        var = jnp.mean(xc * xc, axis=-1, keepdims=True)
        return xc * jax.lax.rsqrt(var + LN_EPS)

    def swish(x):
        return x * jax.nn.sigmoid(x)

    def bf16(v):
        return v.astype(jnp.bfloat16)

    def time_softmax(scores, pad):
        # scores: (T, A); softmax over time with padded frames masked to -max
        s = jnp.where(pad, NEG_MIN, scores)
        m = jnp.max(s, axis=0, keepdims=True)
        e = jnp.exp(s - m)
        return e / jnp.sum(e, axis=0, keepdims=True)

    def depthwise_conv(x, load_tap, shifts):
        # torch.nn.Conv1d(C, C, K, padding=(K-1)//2, groups=C) over time.
        # Zero padding / boundary masks are pre-folded into the tap weights
        # (load_tap(i) -> (T, C)); the cyclic shift is a static slice of the
        # doubled row buffer; 4 partial accumulators break the add chain.
        xx = jnp.concatenate([x, x], axis=0)                       # (2T, C)
        accs = []
        for i, s in enumerate(shifts):
            xs = x if s == 0 else xx[T - s:2 * T - s, :]
            tap = xs * load_tap(i)
            j = i % 4
            if j < len(accs):
                accs[j] = accs[j] + tap
            else:
                accs.append(tap)
        while len(accs) > 1:
            accs = [accs[i] + accs[i + 1] if i + 1 < len(accs) else accs[i]
                    for i in range(0, len(accs), 2)]
        return accs[0]

    def kernel(x_ref, qkc_ref, msq_ref, mw1_ref, mw2_ref, matt_ref,
               vec_ref, cgc_ref, fusc_ref, after_ref, out_ref):
        x = x_ref[...]                                              # (T, H) embedded tokens
        # nonpadding mask from the embedding, as in the reference (pad row = 0)
        nonpad = jnp.sum(jnp.abs(x), axis=-1, keepdims=True) > 0.0  # (T, 1)
        pad = jnp.logical_not(nonpad)
        x = x * SQRT_D                      # RelPositionalEncoding: x * sqrt(d_model)

        # Fastformer head-expansion indicator E[a, c] = (head(c) == a), built
        # in-kernel from 2-D iota (no captured array constants).
        lane = jax.lax.broadcasted_iota(jnp.int32, (NUM_HEADS, HIDDEN), 1)
        head = jax.lax.broadcasted_iota(jnp.int32, (NUM_HEADS, HIDDEN), 0)
        E = jnp.where((lane >= head * HEAD_DIM) & (lane < (head + 1) * HEAD_DIM),
                      1.0, 0.0)                                     # (A, H) f32

        for l in range(NUM_LAYERS):                                 # static unroll
            V = vec_ref[l]                                          # (NUM_VEC_ROWS, 128) f32

            def vrow(i, w):
                return V[i:i + 1, :w]                               # (1, w)

            # ---- macaron FFN (norm_ff_macaron affine folded into W1/b1), ff_scale=0.5
            z = normalize(x)
            h = swish(jnp.dot(bf16(z), mw1_ref[l, 0],
                              preferred_element_type=jnp.float32) + vrow(VI_FFM_B1, LINEAR_UNITS))
            x = x + 0.5 * (jnp.dot(bf16(h), mw2_ref[l, 0],
                                   preferred_element_type=jnp.float32) + vrow(VI_FFM_B2, HIDDEN))

            # ---- shared normalize + one lane-dense (H, 128) fused matmul:
            #      [q | k | cgMLP x_r | cgMLP x_g]   (norm_mha / norm_mlp affines folded)
            z = normalize(x)
            qkcg = jnp.dot(bf16(z), qkc_ref[l],
                           preferred_element_type=jnp.float32) + vrow(VI_FUSED_B, FUSED_WIDTH)
            q = qkcg[:, 0:HIDDEN]
            k = qkcg[:, HIDDEN:2 * HIDDEN]
            xr = qkcg[:, 2 * HIDDEN:2 * HIDDEN + CGMLP_HALF]
            xg = qkcg[:, 2 * HIDDEN + CGMLP_HALF:FUSED_WIDTH]

            # ---- branch 1: FastSelfAttention (value == query); 1/sqrt(head_dim)
            #      already folded into query_att / key_att weights & biases
            s_q = jnp.dot(bf16(q), matt_ref[l, 0],
                          preferred_element_type=jnp.float32) + vrow(VI_BQA, NUM_HEADS)
            qw = jnp.dot(time_softmax(s_q, pad), E,
                         preferred_element_type=jnp.float32)        # (T, H) head-expanded
            pooled_q = jnp.sum(qw * q, axis=0, keepdims=True)       # (1, H) pooled query
            mixed = k * pooled_q
            s_k = jnp.dot(bf16(mixed), matt_ref[l, 1],
                          preferred_element_type=jnp.float32) + vrow(VI_BKA, NUM_HEADS)
            kw = jnp.dot(time_softmax(s_k, pad), E,
                         preferred_element_type=jnp.float32)
            pooled_k = jnp.sum(kw * mixed, axis=0, keepdims=True)   # (1, H) pooled key
            wv = pooled_k * q
            x1 = (jnp.dot(bf16(wv), msq_ref[l, 0],
                          preferred_element_type=jnp.float32) + vrow(VI_BT, HIDDEN) + q)

            # ---- branch 2: ConvolutionalGatingMLP
            # TODO(synk): torch.nn.GELU is exact (erf); tanh approximation used here (~1e-3).
            xr = jax.nn.gelu(xr, approximate=True)
            xg = jax.nn.gelu(xg, approximate=True)
            xg = normalize(xg) * vrow(VI_CG_NG, CGMLP_HALF) + vrow(VI_CG_NB, CGMLP_HALF)
            xg = depthwise_conv(xg, lambda i: cgc_ref[l, i], CG_SHIFTS) + vrow(VI_CG_CB, CGMLP_HALF)
            xg = swish(xg)                   # gate_activation='Swich' (sic) -> Swish
            x2 = (jnp.dot(bf16(xr * xg), msq_ref[l, 1],
                          preferred_element_type=jnp.float32) + vrow(VI_CG_B2, HIDDEN))

            # ---- concat-free merge: depthwise fusion conv + merge projection,
            #      decomposed exactly into the x1 / x2 halves of the channel concat
            xt1 = depthwise_conv(x1, lambda i: fusc_ref[l, 0, i], FUS_SHIFTS) + vrow(VI_FUS_B1, HIDDEN)
            xt2 = depthwise_conv(x2, lambda i: fusc_ref[l, 1, i], FUS_SHIFTS) + vrow(VI_FUS_B2, HIDDEN)
            x = x + (jnp.dot(bf16(x1 + xt1), msq_ref[l, 2], preferred_element_type=jnp.float32)
                     + jnp.dot(bf16(x2 + xt2), msq_ref[l, 3], preferred_element_type=jnp.float32)
                     + vrow(VI_MRG_B, HIDDEN))

            # ---- feed-forward (norm_ff affine folded into W1/b1), ff_scale = 0.5
            z = normalize(x)
            h = swish(jnp.dot(bf16(z), mw1_ref[l, 1],
                              preferred_element_type=jnp.float32) + vrow(VI_FF_B1, LINEAR_UNITS))
            x = x + 0.5 * (jnp.dot(bf16(h), mw2_ref[l, 1],
                                   preferred_element_type=jnp.float32) + vrow(VI_FF_B2, HIDDEN))

            # ---- per-layer norm_final
            x = normalize(x) * vrow(VI_NFIN_G, HIDDEN) + vrow(VI_NFIN_B, HIDDEN)

        # encoder after_norm, then zero the padded frames
        A = after_ref[...]                                          # (2, 128)
        x = normalize(x) * A[0:1, :HIDDEN] + A[1:2, :HIDDEN]
        out_ref[...] = (x * nonpad.astype(jnp.float32)).astype(out_ref.dtype)

    return kernel


# ----------------------------------------------------------------------------
# pallas_call wrapper
# ----------------------------------------------------------------------------
def ebranchformer_encoder_forward(tokens, packed):
    """tokens: [B, T] int32 -> [B, T, HIDDEN] float32."""
    B, T = tokens.shape
    # token embedding (glue: gather stays in XLA)
    emb = jnp.take(packed['embed'], tokens, axis=0)                 # (B, T, H)
    x2d = emb.reshape(B * T, HIDDEN)                                # free reshape
    weights = packed['weights']

    in_specs = [pl.BlockSpec((T, HIDDEN), lambda b: (b, 0))]        # one sequence per step
    for w in weights:                                               # full-block weights
        in_specs.append(pl.BlockSpec(w.shape, lambda b, nd=w.ndim: (0,) * nd))

    out = pl.pallas_call(
        _make_encoder_kernel(T),
        out_shape=jax.ShapeDtypeStruct((B * T, HIDDEN), jnp.float32),
        grid=(B,),
        in_specs=in_specs,
        out_specs=pl.BlockSpec((T, HIDDEN), lambda b: (b, 0)),
        compiler_params=pltpu.CompilerParams(dimension_semantics=("parallel",)),
    )(x2d, *weights)
    return out.reshape(B, T, HIDDEN)


# ----------------------------------------------------------------------------
# deterministic parameter construction + host-side packing / weight folding
# ----------------------------------------------------------------------------
def init_layer_params(key):
    lp = {}
    for name, shape in LAYER_PARAM_SPECS:
        key, sub = jax.random.split(key)
        if name in GAMMA_PARAMS:
            lp[name] = jnp.ones(shape, jnp.float32)
        elif shape[0] == 1:   # biases / LayerNorm betas
            lp[name] = jax.random.normal(sub, shape, jnp.float32) * 0.02
        else:                 # linear / depthwise-conv weights
            lp[name] = jax.random.normal(sub, shape, jnp.float32) * (1.0 / math.sqrt(shape[0]))
    return lp


def init_params(key):
    keys = jax.random.split(key, NUM_LAYERS + 1)
    embed = jax.random.normal(keys[0], (VOCAB, HIDDEN), jnp.float32) * 0.1
    embed = embed.at[0].set(0.0)          # padding token -> zero row -> mask False
    return {
        'embed': embed,
        'layers': [init_layer_params(k) for k in keys[1:]],
        'after_g': jnp.ones((1, HIDDEN), jnp.float32),
        'after_b': jnp.zeros((1, HIDDEN), jnp.float32),
    }


def _fold_ln(g, b, W, bw):
    # LN(x) = z*g + b followed by (. @ W + bw)  ==>  z @ (g^T * W) + (bw + b @ W)
    return W * g[0][:, None], bw + b @ W


def pack_params(params, T):
    """Pack + fold per-layer params into a few stacked tensors (weights in bf16)."""
    qkc_l, msq_l, mw1_l, mw2_l, matt_l, vec_l, cgc_l, fus_l = [], [], [], [], [], [], [], []
    for lp_j in params['layers']:
        lp = {k: np.asarray(v, np.float32) for k, v in lp_j.items()}

        # LN-affine folds (exact inference-time weight folding)
        ffm_w1, ffm_b1 = _fold_ln(lp['nffm_g'], lp['nffm_b'], lp['ffm_w1'], lp['ffm_b1'])
        ff_w1, ff_b1 = _fold_ln(lp['nff_g'], lp['nff_b'], lp['ff_w1'], lp['ff_b1'])
        wq, bq = _fold_ln(lp['nmha_g'], lp['nmha_b'], lp['att_wq'], lp['att_bq'])
        wk, bk = _fold_ln(lp['nmha_g'], lp['nmha_b'], lp['att_wk'], lp['att_bk'])
        wr, br = _fold_ln(lp['nmlp_g'], lp['nmlp_b'],
                          lp['cg_w1'][:, :CGMLP_HALF], lp['cg_b1'][:, :CGMLP_HALF])
        wg, bg = _fold_ln(lp['nmlp_g'], lp['nmlp_b'],
                          lp['cg_w1'][:, CGMLP_HALF:], lp['cg_b1'][:, CGMLP_HALF:])
        qkc = np.concatenate([wq, wk, wr, wg], axis=1)              # (H, 128)
        fused_b = np.concatenate([bq, bk, br, bg], axis=1)          # (1, 128)

        wqa = lp['att_wqa'] * ATT_SCALE
        bqa = lp['att_bqa'] * ATT_SCALE
        wka = lp['att_wka'] * ATT_SCALE
        bka = lp['att_bka'] * ATT_SCALE
        mrg_wa, mrg_wb = lp['mrg_w'][:HIDDEN], lp['mrg_w'][HIDDEN:]

        # dense per-layer vector slab, every row zero-padded to 128 lanes
        rows = [fused_b[0], ffm_b1[0], lp['ffm_b2'][0], bqa[0], bka[0], lp['att_bt'][0],
                lp['cg_ng'][0], lp['cg_nb'][0], lp['cg_cb'][0], lp['cg_b2'][0],
                lp['fus_b'][0, :HIDDEN], lp['fus_b'][0, HIDDEN:], lp['mrg_b'][0],
                ff_b1[0], lp['ff_b2'][0], lp['nfin_g'][0], lp['nfin_b'][0]]
        vec = np.zeros((NUM_VEC_ROWS, 128), np.float32)
        for i, r in enumerate(rows):
            vec[i, :r.shape[0]] = r

        # cgMLP depthwise conv: fold boundary masks and collapse the K taps onto
        # the T distinct cyclic shifts (at most one tap of a shift is valid per row)
        cgc = np.zeros((T, T, CGMLP_HALF), np.float32)
        P = (CGMLP_KERNEL - 1) // 2
        for k in range(CGMLP_KERNEL):
            d = k - P
            s = (-d) % T
            lo, hi = max(0, -d), min(T, T - d)
            if lo < hi:
                cgc[s, lo:hi, :] += lp['cg_cw'][k]

        # merge fusion conv (K=3), per concat-half, masks folded into taps
        fus = np.zeros((2, MERGE_KERNEL, T, HIDDEN), np.float32)
        Pm = (MERGE_KERNEL - 1) // 2
        for k in range(MERGE_KERNEL):
            d = k - Pm
            lo, hi = max(0, -d), min(T, T - d)
            if lo < hi:
                fus[0, k, lo:hi, :] = lp['fus_w'][k, :HIDDEN]
                fus[1, k, lo:hi, :] = lp['fus_w'][k, HIDDEN:]

        qkc_l.append(qkc)
        msq_l.append(np.stack([lp['att_wt'], lp['cg_w2'], mrg_wa, mrg_wb]))
        mw1_l.append(np.stack([ffm_w1, ff_w1]))
        mw2_l.append(np.stack([lp['ffm_w2'], lp['ff_w2']]))
        matt_l.append(np.stack([wqa, wka]))
        vec_l.append(vec)
        cgc_l.append(cgc)
        fus_l.append(fus)

    after = np.zeros((2, 128), np.float32)
    after[0, :HIDDEN] = np.asarray(params['after_g'])[0]
    after[1, :HIDDEN] = np.asarray(params['after_b'])[0]

    weights = (
        jnp.asarray(np.stack(qkc_l), jnp.bfloat16),     # (L, 32, 128) fused q|k|xr|xg
        jnp.asarray(np.stack(msq_l), jnp.bfloat16),     # (L, 4, 32, 32) wt, cg_w2, mrg_a, mrg_b
        jnp.asarray(np.stack(mw1_l), jnp.bfloat16),     # (L, 2, 32, 64) ffn W1 (macaron, final)
        jnp.asarray(np.stack(mw2_l), jnp.bfloat16),     # (L, 2, 64, 32) ffn W2
        jnp.asarray(np.stack(matt_l), jnp.bfloat16),    # (L, 2, 32, 4)  query_att, key_att
        jnp.asarray(np.stack(vec_l), jnp.float32),      # (L, 17, 128)   biases / LN params
        jnp.asarray(np.stack(cgc_l), jnp.float32),      # (L, T, T, 32)  masked cg conv taps
        jnp.asarray(np.stack(fus_l), jnp.float32),      # (L, 2, 3, T, 32) masked merge conv taps
        jnp.asarray(after, jnp.float32),                # (2, 128)       after_norm
    )
    return {'embed': params['embed'], 'weights': weights}


if __name__ == "__main__":
    root = jax.random.PRNGKey(0)
    k_params, k_tok = jax.random.split(root)
    params = init_params(k_params)

    B, T = 2, 16
    packed = pack_params(params, T)

    tokens = jax.random.randint(k_tok, (B, T), 1, VOCAB, dtype=jnp.int32)
    tokens = tokens.at[1, -4:].set(0)                 # padded tail on the second sequence

    out = jax.jit(ebranchformer_encoder_forward)(tokens, packed)
    out = jax.block_until_ready(out)

    assert out.shape == (B, T, HIDDEN)
    assert bool(jnp.all(jnp.isfinite(out)))
    # padded frames must be zeroed by the final mask multiply
    assert bool(jnp.all(out[1, -4:, :] == 0.0))
    print("KERNEL_OK")
</pallas_src>

<mosaic_0001>
module attributes {stable_mosaic.version = 11 : i64} {
  func.func @kernel(%arg0: i32, %arg1: memref<16x32xf32, #tpu.memory_space<vmem>>, %arg2: memref<2x32x128xbf16, #tpu.memory_space<vmem>>, %arg3: memref<2x4x32x32xbf16, #tpu.memory_space<vmem>>, %arg4: memref<2x2x32x64xbf16, #tpu.memory_space<vmem>>, %arg5: memref<2x2x64x32xbf16, #tpu.memory_space<vmem>>, %arg6: memref<2x2x32x4xbf16, #tpu.memory_space<vmem>>, %arg7: memref<2x17x128xf32, #tpu.memory_space<vmem>>, %arg8: memref<2x16x16x32xf32, #tpu.memory_space<vmem>>, %arg9: memref<2x2x3x16x32xf32, #tpu.memory_space<vmem>>, %arg10: memref<2x128xf32, #tpu.memory_space<vmem>>, %arg11: memref<16x32xf32, #tpu.memory_space<vmem>>) attributes {dimension_semantics = [#tpu.dimension_semantics<parallel>], iteration_bounds = array<i64: 2>, scalar_prefetch = 0 : i64, scratch_operands = 0 : i64, tpu.core_type = #tpu.core_type<tc>, window_params = [{transform_indices = @transform_0, window_bounds = array<i64: 16, 32>}, {pipeline_mode = #tpu.pipeline_mode<synchronous>, transform_indices = @transform_1, window_bounds = array<i64: 2, 32, 128>}, {pipeline_mode = #tpu.pipeline_mode<synchronous>, transform_indices = @transform_2, window_bounds = array<i64: 2, 4, 32, 32>}, {pipeline_mode = #tpu.pipeline_mode<synchronous>, transform_indices = @transform_3, window_bounds = array<i64: 2, 2, 32, 64>}, {pipeline_mode = #tpu.pipeline_mode<synchronous>, transform_indices = @transform_4, window_bounds = array<i64: 2, 2, 64, 32>}, {pipeline_mode = #tpu.pipeline_mode<synchronous>, transform_indices = @transform_5, window_bounds = array<i64: 2, 2, 32, 4>}, {pipeline_mode = #tpu.pipeline_mode<synchronous>, transform_indices = @transform_6, window_bounds = array<i64: 2, 17, 128>}, {pipeline_mode = #tpu.pipeline_mode<synchronous>, transform_indices = @transform_7, window_bounds = array<i64: 2, 16, 16, 32>}, {pipeline_mode = #tpu.pipeline_mode<synchronous>, transform_indices = @transform_8, window_bounds = array<i64: 2, 2, 3, 16, 32>}, {pipeline_mode = #tpu.pipeline_mode<synchronous>, transform_indices = @transform_9, window_bounds = array<i64: 2, 128>}, {transform_indices = @transform_10, window_bounds = array<i64: 16, 32>}]} {
    %c0 = arith.constant 0 : index
    %c0_0 = arith.constant 0 : index
    %0 = vector.load %arg1[%c0, %c0_0] : memref<16x32xf32, #tpu.memory_space<vmem>>, vector<16x32xf32>
    %1 = math.absf %0 : vector<16x32xf32>
    %cst = arith.constant dense<0.000000e+00> : vector<16xf32>
    %2 = vector.multi_reduction <add>, %1, %cst [1] : vector<16x32xf32> to vector<16xf32>
    %3 = vector.shape_cast %2 : vector<16xf32> to vector<16x1xf32>
    %cst_1 = arith.constant 0.000000e+00 : f32
    %4 = vector.broadcast %cst_1 : f32 to vector<16x1xf32>
    %5 = arith.cmpf ogt, %3, %4 : vector<16x1xf32>
    %cst_2 = arith.constant dense<true> : vector<16x1xi1>
    %6 = arith.xori %5, %cst_2 : vector<16x1xi1>
    %cst_3 = arith.constant 5.65685415 : f32
    %7 = vector.broadcast %cst_3 : f32 to vector<16x32xf32>
    %8 = arith.mulf %0, %7 : vector<16x32xf32>
    %9 = tpu.iota {dimensions = array<i32: 1>} : vector<4x32xi32>
    %10 = tpu.iota {dimensions = array<i32: 0>} : vector<4x32xi32>
    %c8_i32 = arith.constant 8 : i32
    %11 = vector.broadcast %c8_i32 : i32 to vector<4x32xi32>
    %12 = arith.muli %10, %11 : vector<4x32xi32>
    %13 = arith.cmpi sge, %9, %12 : vector<4x32xi32>
    %c1_i32 = arith.constant 1 : i32
    %14 = vector.broadcast %c1_i32 : i32 to vector<4x32xi32>
    %15 = arith.addi %10, %14 : vector<4x32xi32>
    %c8_i32_4 = arith.constant 8 : i32
    %16 = vector.broadcast %c8_i32_4 : i32 to vector<4x32xi32>
    %17 = arith.muli %15, %16 : vector<4x32xi32>
    %18 = arith.cmpi slt, %9, %17 : vector<4x32xi32>
    %19 = arith.andi %13, %18 : vector<4x32xi1>
    %cst_5 = arith.constant 1.000000e+00 : f32
    %cst_6 = arith.constant 0.000000e+00 : f32
    %20 = vector.broadcast %cst_5 : f32 to vector<4x32xf32>
    %21 = vector.broadcast %cst_6 : f32 to vector<4x32xf32>
    %22 = arith.select %19, %20, %21 : vector<4x32xi1>, vector<4x32xf32>
    %c0_7 = arith.constant 0 : index
    %c0_8 = arith.constant 0 : index
    %c0_9 = arith.constant 0 : index
    %23 = vector.load %arg7[%c0_7, %c0_8, %c0_9] : memref<2x17x128xf32, #tpu.memory_space<vmem>>, vector<1x17x128xf32>
    %24 = vector.shape_cast %23 : vector<1x17x128xf32> to vector<17x128xf32>
    %cst_10 = arith.constant dense<0.000000e+00> : vector<16xf32>
    %25 = vector.multi_reduction <add>, %8, %cst_10 [1] : vector<16x32xf32> to vector<16xf32>
    %26 = vector.shape_cast %25 : vector<16xf32> to vector<16x1xf32>
    %cst_11 = arith.constant 3.200000e+01 : f32
    %27 = vector.broadcast %cst_11 : f32 to vector<16x1xf32>
    %28 = arith.divf %26, %27 : vector<16x1xf32>
    %29 = vector.broadcast %28 : vector<16x1xf32> to vector<16x32xf32>
    %30 = arith.subf %8, %29 : vector<16x32xf32>
    %31 = arith.mulf %30, %30 : vector<16x32xf32>
    %cst_12 = arith.constant dense<0.000000e+00> : vector<16xf32>
    %32 = vector.multi_reduction <add>, %31, %cst_12 [1] : vector<16x32xf32> to vector<16xf32>
    %33 = vector.shape_cast %32 : vector<16xf32> to vector<16x1xf32>
    %cst_13 = arith.constant 3.200000e+01 : f32
    %34 = vector.broadcast %cst_13 : f32 to vector<16x1xf32>
    %35 = arith.divf %33, %34 : vector<16x1xf32>
    %cst_14 = arith.constant 9.99999974E-6 : f32
    %36 = vector.broadcast %cst_14 : f32 to vector<16x1xf32>
    %37 = arith.addf %35, %36 : vector<16x1xf32>
    %38 = math.rsqrt %37 : vector<16x1xf32>
    %39 = vector.broadcast %38 : vector<16x1xf32> to vector<16x32xf32>
    %40 = arith.mulf %30, %39 : vector<16x32xf32>
    %41 = arith.truncf %40 : vector<16x32xf32> to vector<16x32xbf16>
    %c0_15 = arith.constant 0 : index
    %c0_16 = arith.constant 0 : index
    %c0_17 = arith.constant 0 : index
    %c0_18 = arith.constant 0 : index
    %42 = vector.load %arg4[%c0_15, %c0_16, %c0_17, %c0_18] : memref<2x2x32x64xbf16, #tpu.memory_space<vmem>>, vector<1x1x32x64xbf16>
    %43 = vector.shape_cast %42 : vector<1x1x32x64xbf16> to vector<32x64xbf16>
    %cst_19 = arith.constant dense<0.000000e+00> : vector<16x64xf32>
    %44 = tpu.matmul %41, %43, %cst_19 {dimension_numbers = #tpu.dot_dimension_numbers<[1], [0], [0], [1], [0, 0, 1, 1], [], []>} : vector<16x32xbf16>, vector<32x64xbf16>, vector<16x64xf32> -> vector<16x64xf32>
    %45 = vector.extract_strided_slice %24 {offsets = [1, 0], sizes = [1, 64], strides = [1, 1]} : vector<17x128xf32> to vector<1x64xf32>
    %46 = vector.broadcast %45 : vector<1x64xf32> to vector<16x64xf32>
    %47 = arith.addf %44, %46 : vector<16x64xf32>
    %48 = arith.negf %47 : vector<16x64xf32>
    %49 = math.exp %48 : vector<16x64xf32>
    %cst_20 = arith.constant 1.000000e+00 : f32
    %50 = vector.broadcast %cst_20 : f32 to vector<16x64xf32>
    %51 = arith.addf %50, %49 : vector<16x64xf32>
    %52 = arith.divf %50, %51 : vector<16x64xf32>
    %53 = arith.mulf %47, %52 : vector<16x64xf32>
    %54 = arith.truncf %53 : vector<16x64xf32> to vector<16x64xbf16>
    %c0_21 = arith.constant 0 : index
    %c0_22 = arith.constant 0 : index
    %c0_23 = arith.constant 0 : index
    %c0_24 = arith.constant 0 : index
    %55 = vector.load %arg5[%c0_21, %c0_22, %c0_23, %c0_24] : memref<2x2x64x32xbf16, #tpu.memory_space<vmem>>, vector<1x1x64x32xbf16>
    %56 = vector.shape_cast %55 : vector<1x1x64x32xbf16> to vector<64x32xbf16>
    %cst_25 = arith.constant dense<0.000000e+00> : vector<16x32xf32>
    %57 = tpu.matmul %54, %56, %cst_25 {dimension_numbers = #tpu.dot_dimension_numbers<[1], [0], [0], [1], [0, 0, 1, 1], [], []>} : vector<16x64xbf16>, vector<64x32xbf16>, vector<16x32xf32> -> vector<16x32xf32>
    %58 = vector.extract_strided_slice %24 {offsets = [2, 0], sizes = [1, 32], strides = [1, 1]} : vector<17x128xf32> to vector<1x32xf32>
    %59 = vector.broadcast %58 : vector<1x32xf32> to vector<16x32xf32>
    %60 = arith.addf %57, %59 : vector<16x32xf32>
    %cst_26 = arith.constant 5.000000e-01 : f32
    %61 = vector.broadcast %cst_26 : f32 to vector<16x32xf32>
    %62 = arith.mulf %61, %60 : vector<16x32xf32>
    %63 = arith.addf %8, %62 : vector<16x32xf32>
    %cst_27 = arith.constant dense<0.000000e+00> : vector<16xf32>
    %64 = vector.multi_reduction <add>, %63, %cst_27 [1] : vector<16x32xf32> to vector<16xf32>
    %65 = vector.shape_cast %64 : vector<16xf32> to vector<16x1xf32>
    %cst_28 = arith.constant 3.200000e+01 : f32
    %66 = vector.broadcast %cst_28 : f32 to vector<16x1xf32>
    %67 = arith.divf %65, %66 : vector<16x1xf32>
    %68 = vector.broadcast %67 : vector<16x1xf32> to vector<16x32xf32>
    %69 = arith.subf %63, %68 : vector<16x32xf32>
    %70 = arith.mulf %69, %69 : vector<16x32xf32>
    %cst_29 = arith.constant dense<0.000000e+00> : vector<16xf32>
    %71 = vector.multi_reduction <add>, %70, %cst_29 [1] : vector<16x32xf32> to vector<16xf32>
    %72 = vector.shape_cast %71 : vector<16xf32> to vector<16x1xf32>
    %cst_30 = arith.constant 3.200000e+01 : f32
    %73 = vector.broadcast %cst_30 : f32 to vector<16x1xf32>
    %74 = arith.divf %72, %73 : vector<16x1xf32>
    %cst_31 = arith.constant 9.99999974E-6 : f32
    %75 = vector.broadcast %cst_31 : f32 to vector<16x1xf32>
    %76 = arith.addf %74, %75 : vector<16x1xf32>
    %77 = math.rsqrt %76 : vector<16x1xf32>
    %78 = vector.broadcast %77 : vector<16x1xf32> to vector<16x32xf32>
    %79 = arith.mulf %69, %78 : vector<16x32xf32>
    %80 = arith.truncf %79 : vector<16x32xf32> to vector<16x32xbf16>
    %c0_32 = arith.constant 0 : index
    %c0_33 = arith.constant 0 : index
    %c0_34 = arith.constant 0 : index
    %81 = vector.load %arg2[%c0_32, %c0_33, %c0_34] : memref<2x32x128xbf16, #tpu.memory_space<vmem>>, vector<1x32x128xbf16>
    %82 = vector.shape_cast %81 : vector<1x32x128xbf16> to vector<32x128xbf16>
    %cst_35 = arith.constant dense<0.000000e+00> : vector<16x128xf32>
    %83 = tpu.matmul %80, %82, %cst_35 {dimension_numbers = #tpu.dot_dimension_numbers<[1], [0], [0], [1], [0, 0, 1, 1], [], []>} : vector<16x32xbf16>, vector<32x128xbf16>, vector<16x128xf32> -> vector<16x128xf32>
    %84 = vector.extract_strided_slice %24 {offsets = [0, 0], sizes = [1, 128], strides = [1, 1]} : vector<17x128xf32> to vector<1x128xf32>
    %85 = vector.broadcast %84 : vector<1x128xf32> to vector<16x128xf32>
    %86 = arith.addf %83, %85 : vector<16x128xf32>
    %87 = vector.extract_strided_slice %86 {offsets = [0, 0], sizes = [16, 32], strides = [1, 1]} : vector<16x128xf32> to vector<16x32xf32>
    %88 = vector.extract_strided_slice %86 {offsets = [0, 32], sizes = [16, 32], strides = [1, 1]} : vector<16x128xf32> to vector<16x32xf32>
    %89 = vector.extract_strided_slice %86 {offsets = [0, 64], sizes = [16, 32], strides = [1, 1]} : vector<16x128xf32> to vector<16x32xf32>
    %90 = vector.extract_strided_slice %86 {offsets = [0, 96], sizes = [16, 32], strides = [1, 1]} : vector<16x128xf32> to vector<16x32xf32>
    %91 = arith.truncf %87 : vector<16x32xf32> to vector<16x32xbf16>
    %c0_36 = arith.constant 0 : index
    %c0_37 = arith.constant 0 : index
    %c0_38 = arith.constant 0 : index
    %c0_39 = arith.constant 0 : index
    %92 = vector.load %arg6[%c0_36, %c0_37, %c0_38, %c0_39] : memref<2x2x32x4xbf16, #tpu.memory_space<vmem>>, vector<1x1x32x4xbf16>
    %93 = vector.shape_cast %92 : vector<1x1x32x4xbf16> to vector<32x4xbf16>
    %cst_40 = arith.constant dense<0.000000e+00> : vector<16x4xf32>
    %94 = tpu.matmul %91, %93, %cst_40 {dimension_numbers = #tpu.dot_dimension_numbers<[1], [0], [0], [1], [0, 0, 1, 1], [], []>} : vector<16x32xbf16>, vector<32x4xbf16>, vector<16x4xf32> -> vector<16x4xf32>
    %95 = vector.extract_strided_slice %24 {offsets = [3, 0], sizes = [1, 4], strides = [1, 1]} : vector<17x128xf32> to vector<1x4xf32>
    %96 = vector.broadcast %95 : vector<1x4xf32> to vector<16x4xf32>
    %97 = arith.addf %94, %96 : vector<16x4xf32>
    %cst_41 = arith.constant -3.40282347E+38 : f32
    %98 = vector.shape_cast %6 : vector<16x1xi1> to vector<16x1xi1>
    %99 = vector.broadcast %98 : vector<16x1xi1> to vector<16x4xi1>
    %100 = vector.broadcast %cst_41 : f32 to vector<16x4xf32>
    %101 = arith.select %99, %100, %97 : vector<16x4xi1>, vector<16x4xf32>
    %cst_42 = arith.constant dense<0xFF800000> : vector<4xf32>
    %102 = vector.multi_reduction <maximumf>, %101, %cst_42 [0] : vector<16x4xf32> to vector<4xf32>
    %103 = vector.shape_cast %102 : vector<4xf32> to vector<1x4xf32>
    %104 = vector.broadcast %103 : vector<1x4xf32> to vector<16x4xf32>
    %105 = arith.subf %101, %104 : vector<16x4xf32>
    %106 = math.exp %105 : vector<16x4xf32>
    %cst_43 = arith.constant dense<0.000000e+00> : vector<4xf32>
    %107 = vector.multi_reduction <add>, %106, %cst_43 [0] : vector<16x4xf32> to vector<4xf32>
    %108 = vector.shape_cast %107 : vector<4xf32> to vector<1x4xf32>
    %109 = vector.broadcast %108 : vector<1x4xf32> to vector<16x4xf32>
    %110 = arith.divf %106, %109 : vector<16x4xf32>
    %cst_44 = arith.constant dense<0.000000e+00> : vector<16x32xf32>
    %111 = tpu.matmul %110, %22, %cst_44 {dimension_numbers = #tpu.dot_dimension_numbers<[1], [0], [0], [1], [0, 0, 1, 1], [], []>} : vector<16x4xf32>, vector<4x32xf32>, vector<16x32xf32> -> vector<16x32xf32>
    %112 = arith.mulf %111, %87 : vector<16x32xf32>
    %cst_45 = arith.constant dense<0.000000e+00> : vector<32xf32>
    %113 = vector.multi_reduction <add>, %112, %cst_45 [0] : vector<16x32xf32> to vector<32xf32>
    %114 = vector.shape_cast %113 : vector<32xf32> to vector<1x32xf32>
    %115 = vector.broadcast %114 : vector<1x32xf32> to vector<16x32xf32>
    %116 = arith.mulf %88, %115 : vector<16x32xf32>
    %117 = arith.truncf %116 : vector<16x32xf32> to vector<16x32xbf16>
    %c0_46 = arith.constant 0 : index
    %c1 = arith.constant 1 : index
    %c0_47 = arith.constant 0 : index
    %c0_48 = arith.constant 0 : index
    %118 = vector.load %arg6[%c0_46, %c1, %c0_47, %c0_48] : memref<2x2x32x4xbf16, #tpu.memory_space<vmem>>, vector<1x1x32x4xbf16>
    %119 = vector.shape_cast %118 : vector<1x1x32x4xbf16> to vector<32x4xbf16>
    %cst_49 = arith.constant dense<0.000000e+00> : vector<16x4xf32>
    %120 = tpu.matmul %117, %119, %cst_49 {dimension_numbers = #tpu.dot_dimension_numbers<[1], [0], [0], [1], [0, 0, 1, 1], [], []>} : vector<16x32xbf16>, vector<32x4xbf16>, vector<16x4xf32> -> vector<16x4xf32>
    %121 = vector.extract_strided_slice %24 {offsets = [4, 0], sizes = [1, 4], strides = [1, 1]} : vector<17x128xf32> to vector<1x4xf32>
    %122 = vector.broadcast %121 : vector<1x4xf32> to vector<16x4xf32>
    %123 = arith.addf %120, %122 : vector<16x4xf32>
    %cst_50 = arith.constant -3.40282347E+38 : f32
    %124 = vector.shape_cast %6 : vector<16x1xi1> to vector<16x1xi1>
    %125 = vector.broadcast %124 : vector<16x1xi1> to vector<16x4xi1>
    %126 = vector.broadcast %cst_50 : f32 to vector<16x4xf32>
    %127 = arith.select %125, %126, %123 : vector<16x4xi1>, vector<16x4xf32>
    %cst_51 = arith.constant dense<0xFF800000> : vector<4xf32>
    %128 = vector.multi_reduction <maximumf>, %127, %cst_51 [0] : vector<16x4xf32> to vector<4xf32>
    %129 = vector.shape_cast %128 : vector<4xf32> to vector<1x4xf32>
    %130 = vector.broadcast %129 : vector<1x4xf32> to vector<16x4xf32>
    %131 = arith.subf %127, %130 : vector<16x4xf32>
    %132 = math.exp %131 : vector<16x4xf32>
    %cst_52 = arith.constant dense<0.000000e+00> : vector<4xf32>
    %133 = vector.multi_reduction <add>, %132, %cst_52 [0] : vector<16x4xf32> to vector<4xf32>
    %134 = vector.shape_cast %133 : vector<4xf32> to vector<1x4xf32>
    %135 = vector.broadcast %134 : vector<1x4xf32> to vector<16x4xf32>
    %136 = arith.divf %132, %135 : vector<16x4xf32>
    %cst_53 = arith.constant dense<0.000000e+00> : vector<16x32xf32>
    %137 = tpu.matmul %136, %22, %cst_53 {dimension_numbers = #tpu.dot_dimension_numbers<[1], [0], [0], [1], [0, 0, 1, 1], [], []>} : vector<16x4xf32>, vector<4x32xf32>, vector<16x32xf32> -> vector<16x32xf32>
    %138 = arith.mulf %137, %116 : vector<16x32xf32>
    %cst_54 = arith.constant dense<0.000000e+00> : vector<32xf32>
    %139 = vector.multi_reduction <add>, %138, %cst_54 [0] : vector<16x32xf32> to vector<32xf32>
    %140 = vector.shape_cast %139 : vector<32xf32> to vector<1x32xf32>
    %141 = vector.broadcast %140 : vector<1x32xf32> to vector<16x32xf32>
    %142 = arith.mulf %141, %87 : vector<16x32xf32>
    %143 = arith.truncf %142 : vector<16x32xf32> to vector<16x32xbf16>
    %c0_55 = arith.constant 0 : index
    %c0_56 = arith.constant 0 : index
    %c0_57 = arith.constant 0 : index
    %c0_58 = arith.constant 0 : index
    %144 = vector.load %arg3[%c0_55, %c0_56, %c0_57, %c0_58] : memref<2x4x32x32xbf16, #tpu.memory_space<vmem>>, vector<1x1x32x32xbf16>
    %145 = vector.shape_cast %144 : vector<1x1x32x32xbf16> to vector<32x32xbf16>
    %cst_59 = arith.constant dense<0.000000e+00> : vector<16x32xf32>
    %146 = tpu.matmul %143, %145, %cst_59 {dimension_numbers = #tpu.dot_dimension_numbers<[1], [0], [0], [1], [0, 0, 1, 1], [], []>} : vector<16x32xbf16>, vector<32x32xbf16>, vector<16x32xf32> -> vector<16x32xf32>
    %147 = vector.extract_strided_slice %24 {offsets = [5, 0], sizes = [1, 32], strides = [1, 1]} : vector<17x128xf32> to vector<1x32xf32>
    %148 = vector.broadcast %147 : vector<1x32xf32> to vector<16x32xf32>
    %149 = arith.addf %146, %148 : vector<16x32xf32>
    %150 = arith.addf %149, %87 : vector<16x32xf32>
    %151 = arith.mulf %89, %89 : vector<16x32xf32>
    %152 = arith.mulf %89, %151 : vector<16x32xf32>
    %cst_60 = arith.constant 4.471500e-02 : f32
    %153 = vector.broadcast %cst_60 : f32 to vector<16x32xf32>
    %154 = arith.mulf %153, %152 : vector<16x32xf32>
    %155 = arith.addf %89, %154 : vector<16x32xf32>
    %cst_61 = arith.constant 0.797884583 : f32
    %156 = vector.broadcast %cst_61 : f32 to vector<16x32xf32>
    %157 = arith.mulf %156, %155 : vector<16x32xf32>
    %158 = math.tanh %157 : vector<16x32xf32>
    %cst_62 = arith.constant 1.000000e+00 : f32
    %159 = vector.broadcast %cst_62 : f32 to vector<16x32xf32>
    %160 = arith.addf %159, %158 : vector<16x32xf32>
    %cst_63 = arith.constant 5.000000e-01 : f32
    %161 = vector.broadcast %cst_63 : f32 to vector<16x32xf32>
    %162 = arith.mulf %161, %160 : vector<16x32xf32>
    %163 = arith.mulf %89, %162 : vector<16x32xf32>
    %164 = arith.mulf %90, %90 : vector<16x32xf32>
    %165 = arith.mulf %90, %164 : vector<16x32xf32>
    %cst_64 = arith.constant 4.471500e-02 : f32
    %166 = vector.broadcast %cst_64 : f32 to vector<16x32xf32>
    %167 = arith.mulf %166, %165 : vector<16x32xf32>
    %168 = arith.addf %90, %167 : vector<16x32xf32>
    %cst_65 = arith.constant 0.797884583 : f32
    %169 = vector.broadcast %cst_65 : f32 to vector<16x32xf32>
    %170 = arith.mulf %169, %168 : vector<16x32xf32>
    %171 = math.tanh %170 : vector<16x32xf32>
    %cst_66 = arith.constant 1.000000e+00 : f32
    %172 = vector.broadcast %cst_66 : f32 to vector<16x32xf32>
    %173 = arith.addf %172, %171 : vector<16x32xf32>
    %cst_67 = arith.constant 5.000000e-01 : f32
    %174 = vector.broadcast %cst_67 : f32 to vector<16x32xf32>
    %175 = arith.mulf %174, %173 : vector<16x32xf32>
    %176 = arith.mulf %90, %175 : vector<16x32xf32>
    %cst_68 = arith.constant dense<0.000000e+00> : vector<16xf32>
    %177 = vector.multi_reduction <add>, %176, %cst_68 [1] : vector<16x32xf32> to vector<16xf32>
    %178 = vector.shape_cast %177 : vector<16xf32> to vector<16x1xf32>
    %cst_69 = arith.constant 3.200000e+01 : f32
    %179 = vector.broadcast %cst_69 : f32 to vector<16x1xf32>
    %180 = arith.divf %178, %179 : vector<16x1xf32>
    %181 = vector.broadcast %180 : vector<16x1xf32> to vector<16x32xf32>
    %182 = arith.subf %176, %181 : vector<16x32xf32>
    %183 = arith.mulf %182, %182 : vector<16x32xf32>
    %cst_70 = arith.constant dense<0.000000e+00> : vector<16xf32>
    %184 = vector.multi_reduction <add>, %183, %cst_70 [1] : vector<16x32xf32> to vector<16xf32>
    %185 = vector.shape_cast %184 : vector<16xf32> to vector<16x1xf32>
    %cst_71 = arith.constant 3.200000e+01 : f32
    %186 = vector.broadcast %cst_71 : f32 to vector<16x1xf32>
    %187 = arith.divf %185, %186 : vector<16x1xf32>
    %cst_72 = arith.constant 9.99999974E-6 : f32
    %188 = vector.broadcast %cst_72 : f32 to vector<16x1xf32>
    %189 = arith.addf %187, %188 : vector<16x1xf32>
    %190 = math.rsqrt %189 : vector<16x1xf32>
    %191 = vector.broadcast %190 : vector<16x1xf32> to vector<16x32xf32>
    %192 = arith.mulf %182, %191 : vector<16x32xf32>
    %193 = vector.extract_strided_slice %24 {offsets = [6, 0], sizes = [1, 32], strides = [1, 1]} : vector<17x128xf32> to vector<1x32xf32>
    %194 = vector.broadcast %193 : vector<1x32xf32> to vector<16x32xf32>
    %195 = arith.mulf %192, %194 : vector<16x32xf32>
    %196 = vector.extract_strided_slice %24 {offsets = [7, 0], sizes = [1, 32], strides = [1, 1]} : vector<17x128xf32> to vector<1x32xf32>
    %197 = vector.broadcast %196 : vector<1x32xf32> to vector<16x32xf32>
    %198 = arith.addf %195, %197 : vector<16x32xf32>
    %199 = tpu.concatenate %198, %198 in 0 : vector<16x32xf32>, vector<16x32xf32> -> vector<32x32xf32>
    %c0_73 = arith.constant 0 : index
    %c0_74 = arith.constant 0 : index
    %c0_75 = arith.constant 0 : index
    %c0_76 = arith.constant 0 : index
    %200 = vector.load %arg8[%c0_73, %c0_74, %c0_75, %c0_76] : memref<2x16x16x32xf32, #tpu.memory_space<vmem>>, vector<1x1x16x32xf32>
    %201 = vector.shape_cast %200 : vector<1x1x16x32xf32> to vector<16x32xf32>
    %202 = arith.mulf %198, %201 : vector<16x32xf32>
    %203 = vector.extract_strided_slice %199 {offsets = [15, 0], sizes = [16, 32], strides = [1, 1]} : vector<32x32xf32> to vector<16x32xf32>
    %c0_77 = arith.constant 0 : index
    %c1_78 = arith.constant 1 : index
    %c0_79 = arith.constant 0 : index
    %c0_80 = arith.constant 0 : index
    %204 = vector.load %arg8[%c0_77, %c1_78, %c0_79, %c0_80] : memref<2x16x16x32xf32, #tpu.memory_space<vmem>>, vector<1x1x16x32xf32>
    %205 = vector.shape_cast %204 : vector<1x1x16x32xf32> to vector<16x32xf32>
    %206 = arith.mulf %203, %205 : vector<16x32xf32>
    %207 = vector.extract_strided_slice %199 {offsets = [14, 0], sizes = [16, 32], strides = [1, 1]} : vector<32x32xf32> to vector<16x32xf32>
    %c0_81 = arith.constant 0 : index
    %c2 = arith.constant 2 : index
    %c0_82 = arith.constant 0 : index
    %c0_83 = arith.constant 0 : index
    %208 = vector.load %arg8[%c0_81, %c2, %c0_82, %c0_83] : memref<2x16x16x32xf32, #tpu.memory_space<vmem>>, vector<1x1x16x32xf32>
    %209 = vector.shape_cast %208 : vector<1x1x16x32xf32> to vector<16x32xf32>
    %210 = arith.mulf %207, %209 : vector<16x32xf32>
    %211 = vector.extract_strided_slice %199 {offsets = [13, 0], sizes = [16, 32], strides = [1, 1]} : vector<32x32xf32> to vector<16x32xf32>
    %c0_84 = arith.constant 0 : index
    %c3 = arith.constant 3 : index
    %c0_85 = arith.constant 0 : index
    %c0_86 = arith.constant 0 : index
    %212 = vector.load %arg8[%c0_84, %c3, %c0_85, %c0_86] : memref<2x16x16x32xf32, #tpu.memory_space<vmem>>, vector<1x1x16x32xf32>
    %213 = vector.shape_cast %212 : vector<1x1x16x32xf32> to vector<16x32xf32>
    %214 = arith.mulf %211, %213 : vector<16x32xf32>
    %215 = vector.extract_strided_slice %199 {offsets = [12, 0], sizes = [16, 32], strides = [1, 1]} : vector<32x32xf32> to vector<16x32xf32>
    %c0_87 = arith.constant 0 : index
    %c4 = arith.constant 4 : index
    %c0_88 = arith.constant 0 : index
    %c0_89 = arith.constant 0 : index
    %216 = vector.load %arg8[%c0_87, %c4, %c0_88, %c0_89] : memref<2x16x16x32xf32, #tpu.memory_space<vmem>>, vector<1x1x16x32xf32>
    %217 = vector.shape_cast %216 : vector<1x1x16x32xf32> to vector<16x32xf32>
    %218 = arith.mulf %215, %217 : vector<16x32xf32>
    %219 = arith.addf %202, %218 : vector<16x32xf32>
    %220 = vector.extract_strided_slice %199 {offsets = [11, 0], sizes = [16, 32], strides = [1, 1]} : vector<32x32xf32> to vector<16x32xf32>
    %c0_90 = arith.constant 0 : index
    %c5 = arith.constant 5 : index
    %c0_91 = arith.constant 0 : index
    %c0_92 = arith.constant 0 : index
    %221 = vector.load %arg8[%c0_90, %c5, %c0_91, %c0_92] : memref<2x16x16x32xf32, #tpu.memory_space<vmem>>, vector<1x1x16x32xf32>
    %222 = vector.shape_cast %221 : vector<1x1x16x32xf32> to vector<16x32xf32>
    %223 = arith.mulf %220, %222 : vector<16x32xf32>
    %224 = arith.addf %206, %223 : vector<16x32xf32>
    %225 = vector.extract_strided_slice %199 {offsets = [10, 0], sizes = [16, 32], strides = [1, 1]} : vector<32x32xf32> to vector<16x32xf32>
    %c0_93 = arith.constant 0 : index
    %c6 = arith.constant 6 : index
    %c0_94 = arith.constant 0 : index
    %c0_95 = arith.constant 0 : index
    %226 = vector.load %arg8[%c0_93, %c6, %c0_94, %c0_95] : memref<2x16x16x32xf32, #tpu.memory_space<vmem>>, vector<1x1x16x32xf32>
    %227 = vector.shape_cast %226 : vector<1x1x16x32xf32> to vector<16x32xf32>
    %228 = arith.mulf %225, %227 : vector<16x32xf32>
    %229 = arith.addf %210, %228 : vector<16x32xf32>
    %230 = vector.extract_strided_slice %199 {offsets = [9, 0], sizes = [16, 32], strides = [1, 1]} : vector<32x32xf32> to vector<16x32xf32>
    %c0_96 = arith.constant 0 : index
    %c7 = arith.constant 7 : index
    %c0_97 = arith.constant 0 : index
    %c0_98 = arith.constant 0 : index
    %231 = vector.load %arg8[%c0_96, %c7, %c0_97, %c0_98] : memref<2x16x16x32xf32, #tpu.memory_space<vmem>>, vector<1x1x16x32xf32>
    %232 = vector.shape_cast %231 : vector<1x1x16x32xf32> to vector<16x32xf32>
    %233 = arith.mulf %230, %232 : vector<16x32xf32>
    %234 = arith.addf %214, %233 : vector<16x32xf32>
    %235 = vector.extract_strided_slice %199 {offsets = [8, 0], sizes = [16, 32], strides = [1, 1]} : vector<32x32xf32> to vector<16x32xf32>
    %c0_99 = arith.constant 0 : index
    %c8 = arith.constant 8 : index
    %c0_100 = arith.constant 0 : index
    %c0_101 = arith.constant 0 : index
    %236 = vector.load %arg8[%c0_99, %c8, %c0_100, %c0_101] : memref<2x16x16x32xf32, #tpu.memory_space<vmem>>, vector<1x1x16x32xf32>
    %237 = vector.shape_cast %236 : vector<1x1x16x32xf32> to vector<16x32xf32>
    %238 = arith.mulf %235, %237 : vector<16x32xf32>
    %239 = arith.addf %219, %238 : vector<16x32xf32>
    %240 = vector.extract_strided_slice %199 {offsets = [7, 0], sizes = [16, 32], strides = [1, 1]} : vector<32x32xf32> to vector<16x32xf32>
    %c0_102 = arith.constant 0 : index
    %c9 = arith.constant 9 : index
    %c0_103 = arith.constant 0 : index
    %c0_104 = arith.constant 0 : index
    %241 = vector.load %arg8[%c0_102, %c9, %c0_103, %c0_104] : memref<2x16x16x32xf32, #tpu.memory_space<vmem>>, vector<1x1x16x32xf32>
    %242 = vector.shape_cast %241 : vector<1x1x16x32xf32> to vector<16x32xf32>
    %243 = arith.mulf %240, %242 : vector<16x32xf32>
    %244 = arith.addf %224, %243 : vector<16x32xf32>
    %245 = vector.extract_strided_slice %199 {offsets = [6, 0], sizes = [16, 32], strides = [1, 1]} : vector<32x32xf32> to vector<16x32xf32>
    %c0_105 = arith.constant 0 : index
    %c10 = arith.constant 10 : index
    %c0_106 = arith.constant 0 : index
    %c0_107 = arith.constant 0 : index
    %246 = vector.load %arg8[%c0_105, %c10, %c0_106, %c0_107] : memref<2x16x16x32xf32, #tpu.memory_space<vmem>>, vector<1x1x16x32xf32>
    %247 = vector.shape_cast %246 : vector<1x1x16x32xf32> to vector<16x32xf32>
    %248 = arith.mulf %245, %247 : vector<16x32xf32>
    %249 = arith.addf %229, %248 : vector<16x32xf32>
    %250 = vector.extract_strided_slice %199 {offsets = [5, 0], sizes = [16, 32], strides = [1, 1]} : vector<32x32xf32> to vector<16x32xf32>
    %c0_108 = arith.constant 0 : index
    %c11 = arith.constant 11 : index
    %c0_109 = arith.constant 0 : index
    %c0_110 = arith.constant 0 : index
    %251 = vector.load %arg8[%c0_108, %c11, %c0_109, %c0_110] : memref<2x16x16x32xf32, #tpu.memory_space<vmem>>, vector<1x1x16x32xf32>
    %252 = vector.shape_cast %251 : vector<1x1x16x32xf32> to vector<16x32xf32>
    %253 = arith.mulf %250, %252 : vector<16x32xf32>
    %254 = arith.addf %234, %253 : vector<16x32xf32>
    %255 = vector.extract_strided_slice %199 {offsets = [4, 0], sizes = [16, 32], strides = [1, 1]} : vector<32x32xf32> to vector<16x32xf32>
    %c0_111 = arith.constant 0 : index
    %c12 = arith.constant 12 : index
    %c0_112 = arith.constant 0 : index
    %c0_113 = arith.constant 0 : index
    %256 = vector.load %arg8[%c0_111, %c12, %c0_112, %c0_113] : memref<2x16x16x32xf32, #tpu.memory_space<vmem>>, vector<1x1x16x32xf32>
    %257 = vector.shape_cast %256 : vector<1x1x16x32xf32> to vector<16x32xf32>
    %258 = arith.mulf %255, %257 : vector<16x32xf32>
    %259 = arith.addf %239, %258 : vector<16x32xf32>
    %260 = vector.extract_strided_slice %199 {offsets = [3, 0], sizes = [16, 32], strides = [1, 1]} : vector<32x32xf32> to vector<16x32xf32>
    %c0_114 = arith.constant 0 : index
    %c13 = arith.constant 13 : index
    %c0_115 = arith.constant 0 : index
    %c0_116 = arith.constant 0 : index
    %261 = vector.load %arg8[%c0_114, %c13, %c0_115, %c0_116] : memref<2x16x16x32xf32, #tpu.memory_space<vmem>>, vector<1x1x16x32xf32>
    %262 = vector.shape_cast %261 : vector<1x1x16x32xf32> to vector<16x32xf32>
    %263 = arith.mulf %260, %262 : vector<16x32xf32>
    %264 = arith.addf %244, %263 : vector<16x32xf32>
    %265 = vector.extract_strided_slice %199 {offsets = [2, 0], sizes = [16, 32], strides = [1, 1]} : vector<32x32xf32> to vector<16x32xf32>
    %c0_117 = arith.constant 0 : index
    %c14 = arith.constant 14 : index
    %c0_118 = arith.constant 0 : index
    %c0_119 = arith.constant 0 : index
    %266 = vector.load %arg8[%c0_117, %c14, %c0_118, %c0_119] : memref<2x16x16x32xf32, #tpu.memory_space<vmem>>, vector<1x1x16x32xf32>
    %267 = vector.shape_cast %266 : vector<1x1x16x32xf32> to vector<16x32xf32>
    %268 = arith.mulf %265, %267 : vector<16x32xf32>
    %269 = arith.addf %249, %268 : vector<16x32xf32>
    %270 = vector.extract_strided_slice %199 {offsets = [1, 0], sizes = [16, 32], strides = [1, 1]} : vector<32x32xf32> to vector<16x32xf32>
    %c0_120 = arith.constant 0 : index
    %c15 = arith.constant 15 : index
    %c0_121 = arith.constant 0 : index
    %c0_122 = arith.constant 0 : index
    %271 = vector.load %arg8[%c0_120, %c15, %c0_121, %c0_122] : memref<2x16x16x32xf32, #tpu.memory_space<vmem>>, vector<1x1x16x32xf32>
    %272 = vector.shape_cast %271 : vector<1x1x16x32xf32> to vector<16x32xf32>
    %273 = arith.mulf %270, %272 : vector<16x32xf32>
    %274 = arith.addf %254, %273 : vector<16x32xf32>
    %275 = arith.addf %259, %264 : vector<16x32xf32>
    %276 = arith.addf %269, %274 : vector<16x32xf32>
    %277 = arith.addf %275, %276 : vector<16x32xf32>
    %278 = vector.extract_strided_slice %24 {offsets = [8, 0], sizes = [1, 32], strides = [1, 1]} : vector<17x128xf32> to vector<1x32xf32>
    %279 = vector.broadcast %278 : vector<1x32xf32> to vector<16x32xf32>
    %280 = arith.addf %277, %279 : vector<16x32xf32>
    %281 = arith.negf %280 : vector<16x32xf32>
    %282 = math.exp %281 : vector<16x32xf32>
    %cst_123 = arith.constant 1.000000e+00 : f32
    %283 = vector.broadcast %cst_123 : f32 to vector<16x32xf32>
    %284 = arith.addf %283, %282 : vector<16x32xf32>
    %285 = arith.divf %283, %284 : vector<16x32xf32>
    %286 = arith.mulf %280, %285 : vector<16x32xf32>
    %287 = arith.mulf %163, %286 : vector<16x32xf32>
    %288 = arith.truncf %287 : vector<16x32xf32> to vector<16x32xbf16>
    %c0_124 = arith.constant 0 : index
    %c1_125 = arith.constant 1 : index
    %c0_126 = arith.constant 0 : index
    %c0_127 = arith.constant 0 : index
    %289 = vector.load %arg3[%c0_124, %c1_125, %c0_126, %c0_127] : memref<2x4x32x32xbf16, #tpu.memory_space<vmem>>, vector<1x1x32x32xbf16>
    %290 = vector.shape_cast %289 : vector<1x1x32x32xbf16> to vector<32x32xbf16>
    %cst_128 = arith.constant dense<0.000000e+00> : vector<16x32xf32>
    %291 = tpu.matmul %288, %290, %cst_128 {dimension_numbers = #tpu.dot_dimension_numbers<[1], [0], [0], [1], [0, 0, 1, 1], [], []>} : vector<16x32xbf16>, vector<32x32xbf16>, vector<16x32xf32> -> vector<16x32xf32>
    %292 = vector.extract_strided_slice %24 {offsets = [9, 0], sizes = [1, 32], strides = [1, 1]} : vector<17x128xf32> to vector<1x32xf32>
    %293 = vector.broadcast %292 : vector<1x32xf32> to vector<16x32xf32>
    %294 = arith.addf %291, %293 : vector<16x32xf32>
    %295 = tpu.concatenate %150, %150 in 0 : vector<16x32xf32>, vector<16x32xf32> -> vector<32x32xf32>
    %296 = vector.extract_strided_slice %295 {offsets = [15, 0], sizes = [16, 32], strides = [1, 1]} : vector<32x32xf32> to vector<16x32xf32>
    %c0_129 = arith.constant 0 : index
    %c0_130 = arith.constant 0 : index
    %c0_131 = arith.constant 0 : index
    %c0_132 = arith.constant 0 : index
    %c0_133 = arith.constant 0 : index
    %297 = vector.load %arg9[%c0_129, %c0_130, %c0_131, %c0_132, %c0_133] : memref<2x2x3x16x32xf32, #tpu.memory_space<vmem>>, vector<1x1x1x16x32xf32>
    %298 = vector.shape_cast %297 : vector<1x1x1x16x32xf32> to vector<16x32xf32>
    %299 = arith.mulf %296, %298 : vector<16x32xf32>
    %c0_134 = arith.constant 0 : index
    %c0_135 = arith.constant 0 : index
    %c1_136 = arith.constant 1 : index
    %c0_137 = arith.constant 0 : index
    %c0_138 = arith.constant 0 : index
    %300 = vector.load %arg9[%c0_134, %c0_135, %c1_136, %c0_137, %c0_138] : memref<2x2x3x16x32xf32, #tpu.memory_space<vmem>>, vector<1x1x1x16x32xf32>
    %301 = vector.shape_cast %300 : vector<1x1x1x16x32xf32> to vector<16x32xf32>
    %302 = arith.mulf %150, %301 : vector<16x32xf32>
    %303 = vector.extract_strided_slice %295 {offsets = [1, 0], sizes = [16, 32], strides = [1, 1]} : vector<32x32xf32> to vector<16x32xf32>
    %c0_139 = arith.constant 0 : index
    %c0_140 = arith.constant 0 : index
    %c2_141 = arith.constant 2 : index
    %c0_142 = arith.constant 0 : index
    %c0_143 = arith.constant 0 : index
    %304 = vector.load %arg9[%c0_139, %c0_140, %c2_141, %c0_142, %c0_143] : memref<2x2x3x16x32xf32, #tpu.memory_space<vmem>>, vector<1x1x1x16x32xf32>
    %305 = vector.shape_cast %304 : vector<1x1x1x16x32xf32> to vector<16x32xf32>
    %306 = arith.mulf %303, %305 : vector<16x32xf32>
    %307 = arith.addf %299, %302 : vector<16x32xf32>
    %308 = arith.addf %307, %306 : vector<16x32xf32>
    %309 = vector.extract_strided_slice %24 {offsets = [10, 0], sizes = [1, 32], strides = [1, 1]} : vector<17x128xf32> to vector<1x32xf32>
    %310 = vector.broadcast %309 : vector<1x32xf32> to vector<16x32xf32>
    %311 = arith.addf %308, %310 : vector<16x32xf32>
    %312 = tpu.concatenate %294, %294 in 0 : vector<16x32xf32>, vector<16x32xf32> -> vector<32x32xf32>
    %313 = vector.extract_strided_slice %312 {offsets = [15, 0], sizes = [16, 32], strides = [1, 1]} : vector<32x32xf32> to vector<16x32xf32>
    %c0_144 = arith.constant 0 : index
    %c1_145 = arith.constant 1 : index
    %c0_146 = arith.constant 0 : index
    %c0_147 = arith.constant 0 : index
    %c0_148 = arith.constant 0 : index
    %314 = vector.load %arg9[%c0_144, %c1_145, %c0_146, %c0_147, %c0_148] : memref<2x2x3x16x32xf32, #tpu.memory_space<vmem>>, vector<1x1x1x16x32xf32>
    %315 = vector.shape_cast %314 : vector<1x1x1x16x32xf32> to vector<16x32xf32>
    %316 = arith.mulf %313, %315 : vector<16x32xf32>
    %c0_149 = arith.constant 0 : index
    %c1_150 = arith.constant 1 : index
    %c1_151 = arith.constant 1 : index
    %c0_152 = arith.constant 0 : index
    %c0_153 = arith.constant 0 : index
    %317 = vector.load %arg9[%c0_149, %c1_150, %c1_151, %c0_152, %c0_153] : memref<2x2x3x16x32xf32, #tpu.memory_space<vmem>>, vector<1x1x1x16x32xf32>
    %318 = vector.shape_cast %317 : vector<1x1x1x16x32xf32> to vector<16x32xf32>
    %319 = arith.mulf %294, %318 : vector<16x32xf32>
    %320 = vector.extract_strided_slice %312 {offsets = [1, 0], sizes = [16, 32], strides = [1, 1]} : vector<32x32xf32> to vector<16x32xf32>
    %c0_154 = arith.constant 0 : index
    %c1_155 = arith.constant 1 : index
    %c2_156 = arith.constant 2 : index
    %c0_157 = arith.constant 0 : index
    %c0_158 = arith.constant 0 : index
    %321 = vector.load %arg9[%c0_154, %c1_155, %c2_156, %c0_157, %c0_158] : memref<2x2x3x16x32xf32, #tpu.memory_space<vmem>>, vector<1x1x1x16x32xf32>
    %322 = vector.shape_cast %321 : vector<1x1x1x16x32xf32> to vector<16x32xf32>
    %323 = arith.mulf %320, %322 : vector<16x32xf32>
    %324 = arith.addf %316, %319 : vector<16x32xf32>
    %325 = arith.addf %324, %323 : vector<16x32xf32>
    %326 = vector.extract_strided_slice %24 {offsets = [11, 0], sizes = [1, 32], strides = [1, 1]} : vector<17x128xf32> to vector<1x32xf32>
    %327 = vector.broadcast %326 : vector<1x32xf32> to vector<16x32xf32>
    %328 = arith.addf %325, %327 : vector<16x32xf32>
    %329 = arith.addf %150, %311 : vector<16x32xf32>
    %330 = arith.truncf %329 : vector<16x32xf32> to vector<16x32xbf16>
    %c0_159 = arith.constant 0 : index
    %c2_160 = arith.constant 2 : index
    %c0_161 = arith.constant 0 : index
    %c0_162 = arith.constant 0 : index
    %331 = vector.load %arg3[%c0_159, %c2_160, %c0_161, %c0_162] : memref<2x4x32x32xbf16, #tpu.memory_space<vmem>>, vector<1x1x32x32xbf16>
    %332 = vector.shape_cast %331 : vector<1x1x32x32xbf16> to vector<32x32xbf16>
    %cst_163 = arith.constant dense<0.000000e+00> : vector<16x32xf32>
    %333 = tpu.matmul %330, %332, %cst_163 {dimension_numbers = #tpu.dot_dimension_numbers<[1], [0], [0], [1], [0, 0, 1, 1], [], []>} : vector<16x32xbf16>, vector<32x32xbf16>, vector<16x32xf32> -> vector<16x32xf32>
    %334 = arith.addf %294, %328 : vector<16x32xf32>
    %335 = arith.truncf %334 : vector<16x32xf32> to vector<16x32xbf16>
    %c0_164 = arith.constant 0 : index
    %c3_165 = arith.constant 3 : index
    %c0_166 = arith.constant 0 : index
    %c0_167 = arith.constant 0 : index
    %336 = vector.load %arg3[%c0_164, %c3_165, %c0_166, %c0_167] : memref<2x4x32x32xbf16, #tpu.memory_space<vmem>>, vector<1x1x32x32xbf16>
    %337 = vector.shape_cast %336 : vector<1x1x32x32xbf16> to vector<32x32xbf16>
    %cst_168 = arith.constant dense<0.000000e+00> : vector<16x32xf32>
    %338 = tpu.matmul %335, %337, %cst_168 {dimension_numbers = #tpu.dot_dimension_numbers<[1], [0], [0], [1], [0, 0, 1, 1], [], []>} : vector<16x32xbf16>, vector<32x32xbf16>, vector<16x32xf32> -> vector<16x32xf32>
    %339 = arith.addf %333, %338 : vector<16x32xf32>
    %340 = vector.extract_strided_slice %24 {offsets = [12, 0], sizes = [1, 32], strides = [1, 1]} : vector<17x128xf32> to vector<1x32xf32>
    %341 = vector.broadcast %340 : vector<1x32xf32> to vector<16x32xf32>
    %342 = arith.addf %339, %341 : vector<16x32xf32>
    %343 = arith.addf %63, %342 : vector<16x32xf32>
    %cst_169 = arith.constant dense<0.000000e+00> : vector<16xf32>
    %344 = vector.multi_reduction <add>, %343, %cst_169 [1] : vector<16x32xf32> to vector<16xf32>
    %345 = vector.shape_cast %344 : vector<16xf32> to vector<16x1xf32>
    %cst_170 = arith.constant 3.200000e+01 : f32
    %346 = vector.broadcast %cst_170 : f32 to vector<16x1xf32>
    %347 = arith.divf %345, %346 : vector<16x1xf32>
    %348 = vector.broadcast %347 : vector<16x1xf32> to vector<16x32xf32>
    %349 = arith.subf %343, %348 : vector<16x32xf32>
    %350 = arith.mulf %349, %349 : vector<16x32xf32>
    %cst_171 = arith.constant dense<0.000000e+00> : vector<16xf32>
    %351 = vector.multi_reduction <add>, %350, %cst_171 [1] : vector<16x32xf32> to vector<16xf32>
    %352 = vector.shape_cast %351 : vector<16xf32> to vector<16x1xf32>
    %cst_172 = arith.constant 3.200000e+01 : f32
    %353 = vector.broadcast %cst_172 : f32 to vector<16x1xf32>
    %354 = arith.divf %352, %353 : vector<16x1xf32>
    %cst_173 = arith.constant 9.99999974E-6 : f32
    %355 = vector.broadcast %cst_173 : f32 to vector<16x1xf32>
    %356 = arith.addf %354, %355 : vector<16x1xf32>
    %357 = math.rsqrt %356 : vector<16x1xf32>
    %358 = vector.broadcast %357 : vector<16x1xf32> to vector<16x32xf32>
    %359 = arith.mulf %349, %358 : vector<16x32xf32>
    %360 = arith.truncf %359 : vector<16x32xf32> to vector<16x32xbf16>
    %c0_174 = arith.constant 0 : index
    %c1_175 = arith.constant 1 : index
    %c0_176 = arith.constant 0 : index
    %c0_177 = arith.constant 0 : index
    %361 = vector.load %arg4[%c0_174, %c1_175, %c0_176, %c0_177] : memref<2x2x32x64xbf16, #tpu.memory_space<vmem>>, vector<1x1x32x64xbf16>
    %362 = vector.shape_cast %361 : vector<1x1x32x64xbf16> to vector<32x64xbf16>
    %cst_178 = arith.constant dense<0.000000e+00> : vector<16x64xf32>
    %363 = tpu.matmul %360, %362, %cst_178 {dimension_numbers = #tpu.dot_dimension_numbers<[1], [0], [0], [1], [0, 0, 1, 1], [], []>} : vector<16x32xbf16>, vector<32x64xbf16>, vector<16x64xf32> -> vector<16x64xf32>
    %364 = vector.extract_strided_slice %24 {offsets = [13, 0], sizes = [1, 64], strides = [1, 1]} : vector<17x128xf32> to vector<1x64xf32>
    %365 = vector.broadcast %364 : vector<1x64xf32> to vector<16x64xf32>
    %366 = arith.addf %363, %365 : vector<16x64xf32>
    %367 = arith.negf %366 : vector<16x64xf32>
    %368 = math.exp %367 : vector<16x64xf32>
    %cst_179 = arith.constant 1.000000e+00 : f32
    %369 = vector.broadcast %cst_179 : f32 to vector<16x64xf32>
    %370 = arith.addf %369, %368 : vector<16x64xf32>
    %371 = arith.divf %369, %370 : vector<16x64xf32>
    %372 = arith.mulf %366, %371 : vector<16x64xf32>
    %373 = arith.truncf %372 : vector<16x64xf32> to vector<16x64xbf16>
    %c0_180 = arith.constant 0 : index
    %c1_181 = arith.constant 1 : index
    %c0_182 = arith.constant 0 : index
    %c0_183 = arith.constant 0 : index
    %374 = vector.load %arg5[%c0_180, %c1_181, %c0_182, %c0_183] : memref<2x2x64x32xbf16, #tpu.memory_space<vmem>>, vector<1x1x64x32xbf16>
    %375 = vector.shape_cast %374 : vector<1x1x64x32xbf16> to vector<64x32xbf16>
    %cst_184 = arith.constant dense<0.000000e+00> : vector<16x32xf32>
    %376 = tpu.matmul %373, %375, %cst_184 {dimension_numbers = #tpu.dot_dimension_numbers<[1], [0], [0], [1], [0, 0, 1, 1], [], []>} : vector<16x64xbf16>, vector<64x32xbf16>, vector<16x32xf32> -> vector<16x32xf32>
    %377 = vector.extract_strided_slice %24 {offsets = [14, 0], sizes = [1, 32], strides = [1, 1]} : vector<17x128xf32> to vector<1x32xf32>
    %378 = vector.broadcast %377 : vector<1x32xf32> to vector<16x32xf32>
    %379 = arith.addf %376, %378 : vector<16x32xf32>
    %cst_185 = arith.constant 5.000000e-01 : f32
    %380 = vector.broadcast %cst_185 : f32 to vector<16x32xf32>
    %381 = arith.mulf %380, %379 : vector<16x32xf32>
    %382 = arith.addf %343, %381 : vector<16x32xf32>
    %cst_186 = arith.constant dense<0.000000e+00> : vector<16xf32>
    %383 = vector.multi_reduction <add>, %382, %cst_186 [1] : vector<16x32xf32> to vector<16xf32>
    %384 = vector.shape_cast %383 : vector<16xf32> to vector<16x1xf32>
    %cst_187 = arith.constant 3.200000e+01 : f32
    %385 = vector.broadcast %cst_187 : f32 to vector<16x1xf32>
    %386 = arith.divf %384, %385 : vector<16x1xf32>
    %387 = vector.broadcast %386 : vector<16x1xf32> to vector<16x32xf32>
    %388 = arith.subf %382, %387 : vector<16x32xf32>
    %389 = arith.mulf %388, %388 : vector<16x32xf32>
    %cst_188 = arith.constant dense<0.000000e+00> : vector<16xf32>
    %390 = vector.multi_reduction <add>, %389, %cst_188 [1] : vector<16x32xf32> to vector<16xf32>
    %391 = vector.shape_cast %390 : vector<16xf32> to vector<16x1xf32>
    %cst_189 = arith.constant 3.200000e+01 : f32
    %392 = vector.broadcast %cst_189 : f32 to vector<16x1xf32>
    %393 = arith.divf %391, %392 : vector<16x1xf32>
    %cst_190 = arith.constant 9.99999974E-6 : f32
    %394 = vector.broadcast %cst_190 : f32 to vector<16x1xf32>
    %395 = arith.addf %393, %394 : vector<16x1xf32>
    %396 = math.rsqrt %395 : vector<16x1xf32>
    %397 = vector.broadcast %396 : vector<16x1xf32> to vector<16x32xf32>
    %398 = arith.mulf %388, %397 : vector<16x32xf32>
    %399 = vector.extract_strided_slice %24 {offsets = [15, 0], sizes = [1, 32], strides = [1, 1]} : vector<17x128xf32> to vector<1x32xf32>
    %400 = vector.broadcast %399 : vector<1x32xf32> to vector<16x32xf32>
    %401 = arith.mulf %398, %400 : vector<16x32xf32>
    %402 = vector.extract_strided_slice %24 {offsets = [16, 0], sizes = [1, 32], strides = [1, 1]} : vector<17x128xf32> to vector<1x32xf32>
    %403 = vector.broadcast %402 : vector<1x32xf32> to vector<16x32xf32>
    %404 = arith.addf %401, %403 : vector<16x32xf32>
    %c1_191 = arith.constant 1 : index
    %c0_192 = arith.constant 0 : index
    %c0_193 = arith.constant 0 : index
    %405 = vector.load %arg7[%c1_191, %c0_192, %c0_193] : memref<2x17x128xf32, #tpu.memory_space<vmem>>, vector<1x17x128xf32>
    %406 = vector.shape_cast %405 : vector<1x17x128xf32> to vector<17x128xf32>
    %cst_194 = arith.constant dense<0.000000e+00> : vector<16xf32>
    %407 = vector.multi_reduction <add>, %404, %cst_194 [1] : vector<16x32xf32> to vector<16xf32>
    %408 = vector.shape_cast %407 : vector<16xf32> to vector<16x1xf32>
    %cst_195 = arith.constant 3.200000e+01 : f32
    %409 = vector.broadcast %cst_195 : f32 to vector<16x1xf32>
    %410 = arith.divf %408, %409 : vector<16x1xf32>
    %411 = vector.broadcast %410 : vector<16x1xf32> to vector<16x32xf32>
    %412 = arith.subf %404, %411 : vector<16x32xf32>
    %413 = arith.mulf %412, %412 : vector<16x32xf32>
    %cst_196 = arith.constant dense<0.000000e+00> : vector<16xf32>
    %414 = vector.multi_reduction <add>, %413, %cst_196 [1] : vector<16x32xf32> to vector<16xf32>
    %415 = vector.shape_cast %414 : vector<16xf32> to vector<16x1xf32>
    %cst_197 = arith.constant 3.200000e+01 : f32
    %416 = vector.broadcast %cst_197 : f32 to vector<16x1xf32>
    %417 = arith.divf %415, %416 : vector<16x1xf32>
    %cst_198 = arith.constant 9.99999974E-6 : f32
    %418 = vector.broadcast %cst_198 : f32 to vector<16x1xf32>
    %419 = arith.addf %417, %418 : vector<16x1xf32>
    %420 = math.rsqrt %419 : vector<16x1xf32>
    %421 = vector.broadcast %420 : vector<16x1xf32> to vector<16x32xf32>
    %422 = arith.mulf %412, %421 : vector<16x32xf32>
    %423 = arith.truncf %422 : vector<16x32xf32> to vector<16x32xbf16>
    %c1_199 = arith.constant 1 : index
    %c0_200 = arith.constant 0 : index
    %c0_201 = arith.constant 0 : index
    %c0_202 = arith.constant 0 : index
    %424 = vector.load %arg4[%c1_199, %c0_200, %c0_201, %c0_202] : memref<2x2x32x64xbf16, #tpu.memory_space<vmem>>, vector<1x1x32x64xbf16>
    %425 = vector.shape_cast %424 : vector<1x1x32x64xbf16> to vector<32x64xbf16>
    %cst_203 = arith.constant dense<0.000000e+00> : vector<16x64xf32>
    %426 = tpu.matmul %423, %425, %cst_203 {dimension_numbers = #tpu.dot_dimension_numbers<[1], [0], [0], [1], [0, 0, 1, 1], [], []>} : vector<16x32xbf16>, vector<32x64xbf16>, vector<16x64xf32> -> vector<16x64xf32>
    %427 = vector.extract_strided_slice %406 {offsets = [1, 0], sizes = [1, 64], strides = [1, 1]} : vector<17x128xf32> to vector<1x64xf32>
    %428 = vector.broadcast %427 : vector<1x64xf32> to vector<16x64xf32>
    %429 = arith.addf %426, %428 : vector<16x64xf32>
    %430 = arith.negf %429 : vector<16x64xf32>
    %431 = math.exp %430 : vector<16x64xf32>
    %cst_204 = arith.constant 1.000000e+00 : f32
    %432 = vector.broadcast %cst_204 : f32 to vector<16x64xf32>
    %433 = arith.addf %432, %431 : vector<16x64xf32>
    %434 = arith.divf %432, %433 : vector<16x64xf32>
    %435 = arith.mulf %429, %434 : vector<16x64xf32>
    %436 = arith.truncf %435 : vector<16x64xf32> to vector<16x64xbf16>
    %c1_205 = arith.constant 1 : index
    %c0_206 = arith.constant 0 : index
    %c0_207 = arith.constant 0 : index
    %c0_208 = arith.constant 0 : index
    %437 = vector.load %arg5[%c1_205, %c0_206, %c0_207, %c0_208] : memref<2x2x64x32xbf16, #tpu.memory_space<vmem>>, vector<1x1x64x32xbf16>
    %438 = vector.shape_cast %437 : vector<1x1x64x32xbf16> to vector<64x32xbf16>
    %cst_209 = arith.constant dense<0.000000e+00> : vector<16x32xf32>
    %439 = tpu.matmul %436, %438, %cst_209 {dimension_numbers = #tpu.dot_dimension_numbers<[1], [0], [0], [1], [0, 0, 1, 1], [], []>} : vector<16x64xbf16>, vector<64x32xbf16>, vector<16x32xf32> -> vector<16x32xf32>
    %440 = vector.extract_strided_slice %406 {offsets = [2, 0], sizes = [1, 32], strides = [1, 1]} : vector<17x128xf32> to vector<1x32xf32>
    %441 = vector.broadcast %440 : vector<1x32xf32> to vector<16x32xf32>
    %442 = arith.addf %439, %441 : vector<16x32xf32>
    %cst_210 = arith.constant 5.000000e-01 : f32
    %443 = vector.broadcast %cst_210 : f32 to vector<16x32xf32>
    %444 = arith.mulf %443, %442 : vector<16x32xf32>
    %445 = arith.addf %404, %444 : vector<16x32xf32>
    %cst_211 = arith.constant dense<0.000000e+00> : vector<16xf32>
    %446 = vector.multi_reduction <add>, %445, %cst_211 [1] : vector<16x32xf32> to vector<16xf32>
    %447 = vector.shape_cast %446 : vector<16xf32> to vector<16x1xf32>
    %cst_212 = arith.constant 3.200000e+01 : f32
    %448 = vector.broadcast %cst_212 : f32 to vector<16x1xf32>
    %449 = arith.divf %447, %448 : vector<16x1xf32>
    %450 = vector.broadcast %449 : vector<16x1xf32> to vector<16x32xf32>
    %451 = arith.subf %445, %450 : vector<16x32xf32>
    %452 = arith.mulf %451, %451 : vector<16x32xf32>
    %cst_213 = arith.constant dense<0.000000e+00> : vector<16xf32>
    %453 = vector.multi_reduction <add>, %452, %cst_213 [1] : vector<16x32xf32> to vector<16xf32>
    %454 = vector.shape_cast %453 : vector<16xf32> to vector<16x1xf32>
    %cst_214 = arith.constant 3.200000e+01 : f32
    %455 = vector.broadcast %cst_214 : f32 to vector<16x1xf32>
    %456 = arith.divf %454, %455 : vector<16x1xf32>
    %cst_215 = arith.constant 9.99999974E-6 : f32
    %457 = vector.broadcast %cst_215 : f32 to vector<16x1xf32>
    %458 = arith.addf %456, %457 : vector<16x1xf32>
    %459 = math.rsqrt %458 : vector<16x1xf32>
    %460 = vector.broadcast %459 : vector<16x1xf32> to vector<16x32xf32>
    %461 = arith.mulf %451, %460 : vector<16x32xf32>
    %462 = arith.truncf %461 : vector<16x32xf32> to vector<16x32xbf16>
    %c1_216 = arith.constant 1 : index
    %c0_217 = arith.constant 0 : index
    %c0_218 = arith.constant 0 : index
    %463 = vector.load %arg2[%c1_216, %c0_217, %c0_218] : memref<2x32x128xbf16, #tpu.memory_space<vmem>>, vector<1x32x128xbf16>
    %464 = vector.shape_cast %463 : vector<1x32x128xbf16> to vector<32x128xbf16>
    %cst_219 = arith.constant dense<0.000000e+00> : vector<16x128xf32>
    %465 = tpu.matmul %462, %464, %cst_219 {dimension_numbers = #tpu.dot_dimension_numbers<[1], [0], [0], [1], [0, 0, 1, 1], [], []>} : vector<16x32xbf16>, vector<32x128xbf16>, vector<16x128xf32> -> vector<16x128xf32>
    %466 = vector.extract_strided_slice %406 {offsets = [0, 0], sizes = [1, 128], strides = [1, 1]} : vector<17x128xf32> to vector<1x128xf32>
    %467 = vector.broadcast %466 : vector<1x128xf32> to vector<16x128xf32>
    %468 = arith.addf %465, %467 : vector<16x128xf32>
    %469 = vector.extract_strided_slice %468 {offsets = [0, 0], sizes = [16, 32], strides = [1, 1]} : vector<16x128xf32> to vector<16x32xf32>
    %470 = vector.extract_strided_slice %468 {offsets = [0, 32], sizes = [16, 32], strides = [1, 1]} : vector<16x128xf32> to vector<16x32xf32>
    %471 = vector.extract_strided_slice %468 {offsets = [0, 64], sizes = [16, 32], strides = [1, 1]} : vector<16x128xf32> to vector<16x32xf32>
    %472 = vector.extract_strided_slice %468 {offsets = [0, 96], sizes = [16, 32], strides = [1, 1]} : vector<16x128xf32> to vector<16x32xf32>
    %473 = arith.truncf %469 : vector<16x32xf32> to vector<16x32xbf16>
    %c1_220 = arith.constant 1 : index
    %c0_221 = arith.constant 0 : index
    %c0_222 = arith.constant 0 : index
    %c0_223 = arith.constant 0 : index
    %474 = vector.load %arg6[%c1_220, %c0_221, %c0_222, %c0_223] : memref<2x2x32x4xbf16, #tpu.memory_space<vmem>>, vector<1x1x32x4xbf16>
    %475 = vector.shape_cast %474 : vector<1x1x32x4xbf16> to vector<32x4xbf16>
    %cst_224 = arith.constant dense<0.000000e+00> : vector<16x4xf32>
    %476 = tpu.matmul %473, %475, %cst_224 {dimension_numbers = #tpu.dot_dimension_numbers<[1], [0], [0], [1], [0, 0, 1, 1], [], []>} : vector<16x32xbf16>, vector<32x4xbf16>, vector<16x4xf32> -> vector<16x4xf32>
    %477 = vector.extract_strided_slice %406 {offsets = [3, 0], sizes = [1, 4], strides = [1, 1]} : vector<17x128xf32> to vector<1x4xf32>
    %478 = vector.broadcast %477 : vector<1x4xf32> to vector<16x4xf32>
    %479 = arith.addf %476, %478 : vector<16x4xf32>
    %cst_225 = arith.constant -3.40282347E+38 : f32
    %480 = vector.shape_cast %6 : vector<16x1xi1> to vector<16x1xi1>
    %481 = vector.broadcast %480 : vector<16x1xi1> to vector<16x4xi1>
    %482 = vector.broadcast %cst_225 : f32 to vector<16x4xf32>
    %483 = arith.select %481, %482, %479 : vector<16x4xi1>, vector<16x4xf32>
    %cst_226 = arith.constant dense<0xFF800000> : vector<4xf32>
    %484 = vector.multi_reduction <maximumf>, %483, %cst_226 [0] : vector<16x4xf32> to vector<4xf32>
    %485 = vector.shape_cast %484 : vector<4xf32> to vector<1x4xf32>
    %486 = vector.broadcast %485 : vector<1x4xf32> to vector<16x4xf32>
    %487 = arith.subf %483, %486 : vector<16x4xf32>
    %488 = math.exp %487 : vector<16x4xf32>
    %cst_227 = arith.constant dense<0.000000e+00> : vector<4xf32>
    %489 = vector.multi_reduction <add>, %488, %cst_227 [0] : vector<16x4xf32> to vector<4xf32>
    %490 = vector.shape_cast %489 : vector<4xf32> to vector<1x4xf32>
    %491 = vector.broadcast %490 : vector<1x4xf32> to vector<16x4xf32>
    %492 = arith.divf %488, %491 : vector<16x4xf32>
    %cst_228 = arith.constant dense<0.000000e+00> : vector<16x32xf32>
    %493 = tpu.matmul %492, %22, %cst_228 {dimension_numbers = #tpu.dot_dimension_numbers<[1], [0], [0], [1], [0, 0, 1, 1], [], []>} : vector<16x4xf32>, vector<4x32xf32>, vector<16x32xf32> -> vector<16x32xf32>
    %494 = arith.mulf %493, %469 : vector<16x32xf32>
    %cst_229 = arith.constant dense<0.000000e+00> : vector<32xf32>
    %495 = vector.multi_reduction <add>, %494, %cst_229 [0] : vector<16x32xf32> to vector<32xf32>
    %496 = vector.shape_cast %495 : vector<32xf32> to vector<1x32xf32>
    %497 = vector.broadcast %496 : vector<1x32xf32> to vector<16x32xf32>
    %498 = arith.mulf %470, %497 : vector<16x32xf32>
    %499 = arith.truncf %498 : vector<16x32xf32> to vector<16x32xbf16>
    %c1_230 = arith.constant 1 : index
    %c1_231 = arith.constant 1 : index
    %c0_232 = arith.constant 0 : index
    %c0_233 = arith.constant 0 : index
    %500 = vector.load %arg6[%c1_230, %c1_231, %c0_232, %c0_233] : memref<2x2x32x4xbf16, #tpu.memory_space<vmem>>, vector<1x1x32x4xbf16>
    %501 = vector.shape_cast %500 : vector<1x1x32x4xbf16> to vector<32x4xbf16>
    %cst_234 = arith.constant dense<0.000000e+00> : vector<16x4xf32>
    %502 = tpu.matmul %499, %501, %cst_234 {dimension_numbers = #tpu.dot_dimension_numbers<[1], [0], [0], [1], [0, 0, 1, 1], [], []>} : vector<16x32xbf16>, vector<32x4xbf16>, vector<16x4xf32> -> vector<16x4xf32>
    %503 = vector.extract_strided_slice %406 {offsets = [4, 0], sizes = [1, 4], strides = [1, 1]} : vector<17x128xf32> to vector<1x4xf32>
    %504 = vector.broadcast %503 : vector<1x4xf32> to vector<16x4xf32>
    %505 = arith.addf %502, %504 : vector<16x4xf32>
    %cst_235 = arith.constant -3.40282347E+38 : f32
    %506 = vector.shape_cast %6 : vector<16x1xi1> to vector<16x1xi1>
    %507 = vector.broadcast %506 : vector<16x1xi1> to vector<16x4xi1>
    %508 = vector.broadcast %cst_235 : f32 to vector<16x4xf32>
    %509 = arith.select %507, %508, %505 : vector<16x4xi1>, vector<16x4xf32>
    %cst_236 = arith.constant dense<0xFF800000> : vector<4xf32>
    %510 = vector.multi_reduction <maximumf>, %509, %cst_236 [0] : vector<16x4xf32> to vector<4xf32>
    %511 = vector.shape_cast %510 : vector<4xf32> to vector<1x4xf32>
    %512 = vector.broadcast %511 : vector<1x4xf32> to vector<16x4xf32>
    %513 = arith.subf %509, %512 : vector<16x4xf32>
    %514 = math.exp %513 : vector<16x4xf32>
    %cst_237 = arith.constant dense<0.000000e+00> : vector<4xf32>
    %515 = vector.multi_reduction <add>, %514, %cst_237 [0] : vector<16x4xf32> to vector<4xf32>
    %516 = vector.shape_cast %515 : vector<4xf32> to vector<1x4xf32>
    %517 = vector.broadcast %516 : vector<1x4xf32> to vector<16x4xf32>
    %518 = arith.divf %514, %517 : vector<16x4xf32>
    %cst_238 = arith.constant dense<0.000000e+00> : vector<16x32xf32>
    %519 = tpu.matmul %518, %22, %cst_238 {dimension_numbers = #tpu.dot_dimension_numbers<[1], [0], [0], [1], [0, 0, 1, 1], [], []>} : vector<16x4xf32>, vector<4x32xf32>, vector<16x32xf32> -> vector<16x32xf32>
    %520 = arith.mulf %519, %498 : vector<16x32xf32>
    %cst_239 = arith.constant dense<0.000000e+00> : vector<32xf32>
    %521 = vector.multi_reduction <add>, %520, %cst_239 [0] : vector<16x32xf32> to vector<32xf32>
    %522 = vector.shape_cast %521 : vector<32xf32> to vector<1x32xf32>
    %523 = vector.broadcast %522 : vector<1x32xf32> to vector<16x32xf32>
    %524 = arith.mulf %523, %469 : vector<16x32xf32>
    %525 = arith.truncf %524 : vector<16x32xf32> to vector<16x32xbf16>
    %c1_240 = arith.constant 1 : index
    %c0_241 = arith.constant 0 : index
    %c0_242 = arith.constant 0 : index
    %c0_243 = arith.constant 0 : index
    %526 = vector.load %arg3[%c1_240, %c0_241, %c0_242, %c0_243] : memref<2x4x32x32xbf16, #tpu.memory_space<vmem>>, vector<1x1x32x32xbf16>
    %527 = vector.shape_cast %526 : vector<1x1x32x32xbf16> to vector<32x32xbf16>
    %cst_244 = arith.constant dense<0.000000e+00> : vector<16x32xf32>
    %528 = tpu.matmul %525, %527, %cst_244 {dimension_numbers = #tpu.dot_dimension_numbers<[1], [0], [0], [1], [0, 0, 1, 1], [], []>} : vector<16x32xbf16>, vector<32x32xbf16>, vector<16x32xf32> -> vector<16x32xf32>
    %529 = vector.extract_strided_slice %406 {offsets = [5, 0], sizes = [1, 32], strides = [1, 1]} : vector<17x128xf32> to vector<1x32xf32>
    %530 = vector.broadcast %529 : vector<1x32xf32> to vector<16x32xf32>
    %531 = arith.addf %528, %530 : vector<16x32xf32>
    %532 = arith.addf %531, %469 : vector<16x32xf32>
    %533 = arith.mulf %471, %471 : vector<16x32xf32>
    %534 = arith.mulf %471, %533 : vector<16x32xf32>
    %cst_245 = arith.constant 4.471500e-02 : f32
    %535 = vector.broadcast %cst_245 : f32 to vector<16x32xf32>
    %536 = arith.mulf %535, %534 : vector<16x32xf32>
    %537 = arith.addf %471, %536 : vector<16x32xf32>
    %cst_246 = arith.constant 0.797884583 : f32
    %538 = vector.broadcast %cst_246 : f32 to vector<16x32xf32>
    %539 = arith.mulf %538, %537 : vector<16x32xf32>
    %540 = math.tanh %539 : vector<16x32xf32>
    %cst_247 = arith.constant 1.000000e+00 : f32
    %541 = vector.broadcast %cst_247 : f32 to vector<16x32xf32>
    %542 = arith.addf %541, %540 : vector<16x32xf32>
    %cst_248 = arith.constant 5.000000e-01 : f32
    %543 = vector.broadcast %cst_248 : f32 to vector<16x32xf32>
    %544 = arith.mulf %543, %542 : vector<16x32xf32>
    %545 = arith.mulf %471, %544 : vector<16x32xf32>
    %546 = arith.mulf %472, %472 : vector<16x32xf32>
    %547 = arith.mulf %472, %546 : vector<16x32xf32>
    %cst_249 = arith.constant 4.471500e-02 : f32
    %548 = vector.broadcast %cst_249 : f32 to vector<16x32xf32>
    %549 = arith.mulf %548, %547 : vector<16x32xf32>
    %550 = arith.addf %472, %549 : vector<16x32xf32>
    %cst_250 = arith.constant 0.797884583 : f32
    %551 = vector.broadcast %cst_250 : f32 to vector<16x32xf32>
    %552 = arith.mulf %551, %550 : vector<16x32xf32>
    %553 = math.tanh %552 : vector<16x32xf32>
    %cst_251 = arith.constant 1.000000e+00 : f32
    %554 = vector.broadcast %cst_251 : f32 to vector<16x32xf32>
    %555 = arith.addf %554, %553 : vector<16x32xf32>
    %cst_252 = arith.constant 5.000000e-01 : f32
    %556 = vector.broadcast %cst_252 : f32 to vector<16x32xf32>
    %557 = arith.mulf %556, %555 : vector<16x32xf32>
    %558 = arith.mulf %472, %557 : vector<16x32xf32>
    %cst_253 = arith.constant dense<0.000000e+00> : vector<16xf32>
    %559 = vector.multi_reduction <add>, %558, %cst_253 [1] : vector<16x32xf32> to vector<16xf32>
    %560 = vector.shape_cast %559 : vector<16xf32> to vector<16x1xf32>
    %cst_254 = arith.constant 3.200000e+01 : f32
    %561 = vector.broadcast %cst_254 : f32 to vector<16x1xf32>
    %562 = arith.divf %560, %561 : vector<16x1xf32>
    %563 = vector.broadcast %562 : vector<16x1xf32> to vector<16x32xf32>
    %564 = arith.subf %558, %563 : vector<16x32xf32>
    %565 = arith.mulf %564, %564 : vector<16x32xf32>
    %cst_255 = arith.constant dense<0.000000e+00> : vector<16xf32>
    %566 = vector.multi_reduction <add>, %565, %cst_255 [1] : vector<16x32xf32> to vector<16xf32>
    %567 = vector.shape_cast %566 : vector<16xf32> to vector<16x1xf32>
    %cst_256 = arith.constant 3.200000e+01 : f32
    %568 = vector.broadcast %cst_256 : f32 to vector<16x1xf32>
    %569 = arith.divf %567, %568 : vector<16x1xf32>
    %cst_257 = arith.constant 9.99999974E-6 : f32
    %570 = vector.broadcast %cst_257 : f32 to vector<16x1xf32>
    %571 = arith.addf %569, %570 : vector<16x1xf32>
    %572 = math.rsqrt %571 : vector<16x1xf32>
    %573 = vector.broadcast %572 : vector<16x1xf32> to vector<16x32xf32>
    %574 = arith.mulf %564, %573 : vector<16x32xf32>
    %575 = vector.extract_strided_slice %406 {offsets = [6, 0], sizes = [1, 32], strides = [1, 1]} : vector<17x128xf32> to vector<1x32xf32>
    %576 = vector.broadcast %575 : vector<1x32xf32> to vector<16x32xf32>
    %577 = arith.mulf %574, %576 : vector<16x32xf32>
    %578 = vector.extract_strided_slice %406 {offsets = [7, 0], sizes = [1, 32], strides = [1, 1]} : vector<17x128xf32> to vector<1x32xf32>
    %579 = vector.broadcast %578 : vector<1x32xf32> to vector<16x32xf32>
    %580 = arith.addf %577, %579 : vector<16x32xf32>
    %581 = tpu.concatenate %580, %580 in 0 : vector<16x32xf32>, vector<16x32xf32> -> vector<32x32xf32>
    %c1_258 = arith.constant 1 : index
    %c0_259 = arith.constant 0 : index
    %c0_260 = arith.constant 0 : index
    %c0_261 = arith.constant 0 : index
    %582 = vector.load %arg8[%c1_258, %c0_259, %c0_260, %c0_261] : memref<2x16x16x32xf32, #tpu.memory_space<vmem>>, vector<1x1x16x32xf32>
    %583 = vector.shape_cast %582 : vector<1x1x16x32xf32> to vector<16x32xf32>
    %584 = arith.mulf %580, %583 : vector<16x32xf32>
    %585 = vector.extract_strided_slice %581 {offsets = [15, 0], sizes = [16, 32], strides = [1, 1]} : vector<32x32xf32> to vector<16x32xf32>
    %c1_262 = arith.constant 1 : index
    %c1_263 = arith.constant 1 : index
    %c0_264 = arith.constant 0 : index
    %c0_265 = arith.constant 0 : index
    %586 = vector.load %arg8[%c1_262, %c1_263, %c0_264, %c0_265] : memref<2x16x16x32xf32, #tpu.memory_space<vmem>>, vector<1x1x16x32xf32>
    %587 = vector.shape_cast %586 : vector<1x1x16x32xf32> to vector<16x32xf32>
    %588 = arith.mulf %585, %587 : vector<16x32xf32>
    %589 = vector.extract_strided_slice %581 {offsets = [14, 0], sizes = [16, 32], strides = [1, 1]} : vector<32x32xf32> to vector<16x32xf32>
    %c1_266 = arith.constant 1 : index
    %c2_267 = arith.constant 2 : index
    %c0_268 = arith.constant 0 : index
    %c0_269 = arith.constant 0 : index
    %590 = vector.load %arg8[%c1_266, %c2_267, %c0_268, %c0_269] : memref<2x16x16x32xf32, #tpu.memory_space<vmem>>, vector<1x1x16x32xf32>
    %591 = vector.shape_cast %590 : vector<1x1x16x32xf32> to vector<16x32xf32>
    %592 = arith.mulf %589, %591 : vector<16x32xf32>
    %593 = vector.extract_strided_slice %581 {offsets = [13, 0], sizes = [16, 32], strides = [1, 1]} : vector<32x32xf32> to vector<16x32xf32>
    %c1_270 = arith.constant 1 : index
    %c3_271 = arith.constant 3 : index
    %c0_272 = arith.constant 0 : index
    %c0_273 = arith.constant 0 : index
    %594 = vector.load %arg8[%c1_270, %c3_271, %c0_272, %c0_273] : memref<2x16x16x32xf32, #tpu.memory_space<vmem>>, vector<1x1x16x32xf32>
    %595 = vector.shape_cast %594 : vector<1x1x16x32xf32> to vector<16x32xf32>
    %596 = arith.mulf %593, %595 : vector<16x32xf32>
    %597 = vector.extract_strided_slice %581 {offsets = [12, 0], sizes = [16, 32], strides = [1, 1]} : vector<32x32xf32> to vector<16x32xf32>
    %c1_274 = arith.constant 1 : index
    %c4_275 = arith.constant 4 : index
    %c0_276 = arith.constant 0 : index
    %c0_277 = arith.constant 0 : index
    %598 = vector.load %arg8[%c1_274, %c4_275, %c0_276, %c0_277] : memref<2x16x16x32xf32, #tpu.memory_space<vmem>>, vector<1x1x16x32xf32>
    %599 = vector.shape_cast %598 : vector<1x1x16x32xf32> to vector<16x32xf32>
    %600 = arith.mulf %597, %599 : vector<16x32xf32>
    %601 = arith.addf %584, %600 : vector<16x32xf32>
    %602 = vector.extract_strided_slice %581 {offsets = [11, 0], sizes = [16, 32], strides = [1, 1]} : vector<32x32xf32> to vector<16x32xf32>
    %c1_278 = arith.constant 1 : index
    %c5_279 = arith.constant 5 : index
    %c0_280 = arith.constant 0 : index
    %c0_281 = arith.constant 0 : index
    %603 = vector.load %arg8[%c1_278, %c5_279, %c0_280, %c0_281] : memref<2x16x16x32xf32, #tpu.memory_space<vmem>>, vector<1x1x16x32xf32>
    %604 = vector.shape_cast %603 : vector<1x1x16x32xf32> to vector<16x32xf32>
    %605 = arith.mulf %602, %604 : vector<16x32xf32>
    %606 = arith.addf %588, %605 : vector<16x32xf32>
    %607 = vector.extract_strided_slice %581 {offsets = [10, 0], sizes = [16, 32], strides = [1, 1]} : vector<32x32xf32> to vector<16x32xf32>
    %c1_282 = arith.constant 1 : index
    %c6_283 = arith.constant 6 : index
    %c0_284 = arith.constant 0 : index
    %c0_285 = arith.constant 0 : index
    %608 = vector.load %arg8[%c1_282, %c6_283, %c0_284, %c0_285] : memref<2x16x16x32xf32, #tpu.memory_space<vmem>>, vector<1x1x16x32xf32>
    %609 = vector.shape_cast %608 : vector<1x1x16x32xf32> to vector<16x32xf32>
    %610 = arith.mulf %607, %609 : vector<16x32xf32>
    %611 = arith.addf %592, %610 : vector<16x32xf32>
    %612 = vector.extract_strided_slice %581 {offsets = [9, 0], sizes = [16, 32], strides = [1, 1]} : vector<32x32xf32> to vector<16x32xf32>
    %c1_286 = arith.constant 1 : index
    %c7_287 = arith.constant 7 : index
    %c0_288 = arith.constant 0 : index
    %c0_289 = arith.constant 0 : index
    %613 = vector.load %arg8[%c1_286, %c7_287, %c0_288, %c0_289] : memref<2x16x16x32xf32, #tpu.memory_space<vmem>>, vector<1x1x16x32xf32>
    %614 = vector.shape_cast %613 : vector<1x1x16x32xf32> to vector<16x32xf32>
    %615 = arith.mulf %612, %614 : vector<16x32xf32>
    %616 = arith.addf %596, %615 : vector<16x32xf32>
    %617 = vector.extract_strided_slice %581 {offsets = [8, 0], sizes = [16, 32], strides = [1, 1]} : vector<32x32xf32> to vector<16x32xf32>
    %c1_290 = arith.constant 1 : index
    %c8_291 = arith.constant 8 : index
    %c0_292 = arith.constant 0 : index
    %c0_293 = arith.constant 0 : index
    %618 = vector.load %arg8[%c1_290, %c8_291, %c0_292, %c0_293] : memref<2x16x16x32xf32, #tpu.memory_space<vmem>>, vector<1x1x16x32xf32>
    %619 = vector.shape_cast %618 : vector<1x1x16x32xf32> to vector<16x32xf32>
    %620 = arith.mulf %617, %619 : vector<16x32xf32>
    %621 = arith.addf %601, %620 : vector<16x32xf32>
    %622 = vector.extract_strided_slice %581 {offsets = [7, 0], sizes = [16, 32], strides = [1, 1]} : vector<32x32xf32> to vector<16x32xf32>
    %c1_294 = arith.constant 1 : index
    %c9_295 = arith.constant 9 : index
    %c0_296 = arith.constant 0 : index
    %c0_297 = arith.constant 0 : index
    %623 = vector.load %arg8[%c1_294, %c9_295, %c0_296, %c0_297] : memref<2x16x16x32xf32, #tpu.memory_space<vmem>>, vector<1x1x16x32xf32>
    %624 = vector.shape_cast %623 : vector<1x1x16x32xf32> to vector<16x32xf32>
    %625 = arith.mulf %622, %624 : vector<16x32xf32>
    %626 = arith.addf %606, %625 : vector<16x32xf32>
    %627 = vector.extract_strided_slice %581 {offsets = [6, 0], sizes = [16, 32], strides = [1, 1]} : vector<32x32xf32> to vector<16x32xf32>
    %c1_298 = arith.constant 1 : index
    %c10_299 = arith.constant 10 : index
    %c0_300 = arith.constant 0 : index
    %c0_301 = arith.constant 0 : index
    %628 = vector.load %arg8[%c1_298, %c10_299, %c0_300, %c0_301] : memref<2x16x16x32xf32, #tpu.memory_space<vmem>>, vector<1x1x16x32xf32>
    %629 = vector.shape_cast %628 : vector<1x1x16x32xf32> to vector<16x32xf32>
    %630 = arith.mulf %627, %629 : vector<16x32xf32>
    %631 = arith.addf %611, %630 : vector<16x32xf32>
    %632 = vector.extract_strided_slice %581 {offsets = [5, 0], sizes = [16, 32], strides = [1, 1]} : vector<32x32xf32> to vector<16x32xf32>
    %c1_302 = arith.constant 1 : index
    %c11_303 = arith.constant 11 : index
    %c0_304 = arith.constant 0 : index
    %c0_305 = arith.constant 0 : index
    %633 = vector.load %arg8[%c1_302, %c11_303, %c0_304, %c0_305] : memref<2x16x16x32xf32, #tpu.memory_space<vmem>>, vector<1x1x16x32xf32>
    %634 = vector.shape_cast %633 : vector<1x1x16x32xf32> to vector<16x32xf32>
    %635 = arith.mulf %632, %634 : vector<16x32xf32>
    %636 = arith.addf %616, %635 : vector<16x32xf32>
    %637 = vector.extract_strided_slice %581 {offsets = [4, 0], sizes = [16, 32], strides = [1, 1]} : vector<32x32xf32> to vector<16x32xf32>
    %c1_306 = arith.constant 1 : index
    %c12_307 = arith.constant 12 : index
    %c0_308 = arith.constant 0 : index
    %c0_309 = arith.constant 0 : index
    %638 = vector.load %arg8[%c1_306, %c12_307, %c0_308, %c0_309] : memref<2x16x16x32xf32, #tpu.memory_space<vmem>>, vector<1x1x16x32xf32>
    %639 = vector.shape_cast %638 : vector<1x1x16x32xf32> to vector<16x32xf32>
    %640 = arith.mulf %637, %639 : vector<16x32xf32>
    %641 = arith.addf %621, %640 : vector<16x32xf32>
    %642 = vector.extract_strided_slice %581 {offsets = [3, 0], sizes = [16, 32], strides = [1, 1]} : vector<32x32xf32> to vector<16x32xf32>
    %c1_310 = arith.constant 1 : index
    %c13_311 = arith.constant 13 : index
    %c0_312 = arith.constant 0 : index
    %c0_313 = arith.constant 0 : index
    %643 = vector.load %arg8[%c1_310, %c13_311, %c0_312, %c0_313] : memref<2x16x16x32xf32, #tpu.memory_space<vmem>>, vector<1x1x16x32xf32>
    %644 = vector.shape_cast %643 : vector<1x1x16x32xf32> to vector<16x32xf32>
    %645 = arith.mulf %642, %644 : vector<16x32xf32>
    %646 = arith.addf %626, %645 : vector<16x32xf32>
    %647 = vector.extract_strided_slice %581 {offsets = [2, 0], sizes = [16, 32], strides = [1, 1]} : vector<32x32xf32> to vector<16x32xf32>
    %c1_314 = arith.constant 1 : index
    %c14_315 = arith.constant 14 : index
    %c0_316 = arith.constant 0 : index
    %c0_317 = arith.constant 0 : index
    %648 = vector.load %arg8[%c1_314, %c14_315, %c0_316, %c0_317] : memref<2x16x16x32xf32, #tpu.memory_space<vmem>>, vector<1x1x16x32xf32>
    %649 = vector.shape_cast %648 : vector<1x1x16x32xf32> to vector<16x32xf32>
    %650 = arith.mulf %647, %649 : vector<16x32xf32>
    %651 = arith.addf %631, %650 : vector<16x32xf32>
    %652 = vector.extract_strided_slice %581 {offsets = [1, 0], sizes = [16, 32], strides = [1, 1]} : vector<32x32xf32> to vector<16x32xf32>
    %c1_318 = arith.constant 1 : index
    %c15_319 = arith.constant 15 : index
    %c0_320 = arith.constant 0 : index
    %c0_321 = arith.constant 0 : index
    %653 = vector.load %arg8[%c1_318, %c15_319, %c0_320, %c0_321] : memref<2x16x16x32xf32, #tpu.memory_space<vmem>>, vector<1x1x16x32xf32>
    %654 = vector.shape_cast %653 : vector<1x1x16x32xf32> to vector<16x32xf32>
    %655 = arith.mulf %652, %654 : vector<16x32xf32>
    %656 = arith.addf %636, %655 : vector<16x32xf32>
    %657 = arith.addf %641, %646 : vector<16x32xf32>
    %658 = arith.addf %651, %656 : vector<16x32xf32>
    %659 = arith.addf %657, %658 : vector<16x32xf32>
    %660 = vector.extract_strided_slice %406 {offsets = [8, 0], sizes = [1, 32], strides = [1, 1]} : vector<17x128xf32> to vector<1x32xf32>
    %661 = vector.broadcast %660 : vector<1x32xf32> to vector<16x32xf32>
    %662 = arith.addf %659, %661 : vector<16x32xf32>
    %663 = arith.negf %662 : vector<16x32xf32>
    %664 = math.exp %663 : vector<16x32xf32>
    %cst_322 = arith.constant 1.000000e+00 : f32
    %665 = vector.broadcast %cst_322 : f32 to vector<16x32xf32>
    %666 = arith.addf %665, %664 : vector<16x32xf32>
    %667 = arith.divf %665, %666 : vector<16x32xf32>
    %668 = arith.mulf %662, %667 : vector<16x32xf32>
    %669 = arith.mulf %545, %668 : vector<16x32xf32>
    %670 = arith.truncf %669 : vector<16x32xf32> to vector<16x32xbf16>
    %c1_323 = arith.constant 1 : index
    %c1_324 = arith.constant 1 : index
    %c0_325 = arith.constant 0 : index
    %c0_326 = arith.constant 0 : index
    %671 = vector.load %arg3[%c1_323, %c1_324, %c0_325, %c0_326] : memref<2x4x32x32xbf16, #tpu.memory_space<vmem>>, vector<1x1x32x32xbf16>
    %672 = vector.shape_cast %671 : vector<1x1x32x32xbf16> to vector<32x32xbf16>
    %cst_327 = arith.constant dense<0.000000e+00> : vector<16x32xf32>
    %673 = tpu.matmul %670, %672, %cst_327 {dimension_numbers = #tpu.dot_dimension_numbers<[1], [0], [0], [1], [0, 0, 1, 1], [], []>} : vector<16x32xbf16>, vector<32x32xbf16>, vector<16x32xf32> -> vector<16x32xf32>
    %674 = vector.extract_strided_slice %406 {offsets = [9, 0], sizes = [1, 32], strides = [1, 1]} : vector<17x128xf32> to vector<1x32xf32>
    %675 = vector.broadcast %674 : vector<1x32xf32> to vector<16x32xf32>
    %676 = arith.addf %673, %675 : vector<16x32xf32>
    %677 = tpu.concatenate %532, %532 in 0 : vector<16x32xf32>, vector<16x32xf32> -> vector<32x32xf32>
    %678 = vector.extract_strided_slice %677 {offsets = [15, 0], sizes = [16, 32], strides = [1, 1]} : vector<32x32xf32> to vector<16x32xf32>
    %c1_328 = arith.constant 1 : index
    %c0_329 = arith.constant 0 : index
    %c0_330 = arith.constant 0 : index
    %c0_331 = arith.constant 0 : index
    %c0_332 = arith.constant 0 : index
    %679 = vector.load %arg9[%c1_328, %c0_329, %c0_330, %c0_331, %c0_332] : memref<2x2x3x16x32xf32, #tpu.memory_space<vmem>>, vector<1x1x1x16x32xf32>
    %680 = vector.shape_cast %679 : vector<1x1x1x16x32xf32> to vector<16x32xf32>
    %681 = arith.mulf %678, %680 : vector<16x32xf32>
    %c1_333 = arith.constant 1 : index
    %c0_334 = arith.constant 0 : index
    %c1_335 = arith.constant 1 : index
    %c0_336 = arith.constant 0 : index
    %c0_337 = arith.constant 0 : index
    %682 = vector.load %arg9[%c1_333, %c0_334, %c1_335, %c0_336, %c0_337] : memref<2x2x3x16x32xf32, #tpu.memory_space<vmem>>, vector<1x1x1x16x32xf32>
    %683 = vector.shape_cast %682 : vector<1x1x1x16x32xf32> to vector<16x32xf32>
    %684 = arith.mulf %532, %683 : vector<16x32xf32>
    %685 = vector.extract_strided_slice %677 {offsets = [1, 0], sizes = [16, 32], strides = [1, 1]} : vector<32x32xf32> to vector<16x32xf32>
    %c1_338 = arith.constant 1 : index
    %c0_339 = arith.constant 0 : index
    %c2_340 = arith.constant 2 : index
    %c0_341 = arith.constant 0 : index
    %c0_342 = arith.constant 0 : index
    %686 = vector.load %arg9[%c1_338, %c0_339, %c2_340, %c0_341, %c0_342] : memref<2x2x3x16x32xf32, #tpu.memory_space<vmem>>, vector<1x1x1x16x32xf32>
    %687 = vector.shape_cast %686 : vector<1x1x1x16x32xf32> to vector<16x32xf32>
    %688 = arith.mulf %685, %687 : vector<16x32xf32>
    %689 = arith.addf %681, %684 : vector<16x32xf32>
    %690 = arith.addf %689, %688 : vector<16x32xf32>
    %691 = vector.extract_strided_slice %406 {offsets = [10, 0], sizes = [1, 32], strides = [1, 1]} : vector<17x128xf32> to vector<1x32xf32>
    %692 = vector.broadcast %691 : vector<1x32xf32> to vector<16x32xf32>
    %693 = arith.addf %690, %692 : vector<16x32xf32>
    %694 = tpu.concatenate %676, %676 in 0 : vector<16x32xf32>, vector<16x32xf32> -> vector<32x32xf32>
    %695 = vector.extract_strided_slice %694 {offsets = [15, 0], sizes = [16, 32], strides = [1, 1]} : vector<32x32xf32> to vector<16x32xf32>
    %c1_343 = arith.constant 1 : index
    %c1_344 = arith.constant 1 : index
    %c0_345 = arith.constant 0 : index
    %c0_346 = arith.constant 0 : index
    %c0_347 = arith.constant 0 : index
    %696 = vector.load %arg9[%c1_343, %c1_344, %c0_345, %c0_346, %c0_347] : memref<2x2x3x16x32xf32, #tpu.memory_space<vmem>>, vector<1x1x1x16x32xf32>
    %697 = vector.shape_cast %696 : vector<1x1x1x16x32xf32> to vector<16x32xf32>
    %698 = arith.mulf %695, %697 : vector<16x32xf32>
    %c1_348 = arith.constant 1 : index
    %c1_349 = arith.constant 1 : index
    %c1_350 = arith.constant 1 : index
    %c0_351 = arith.constant 0 : index
    %c0_352 = arith.constant 0 : index
    %699 = vector.load %arg9[%c1_348, %c1_349, %c1_350, %c0_351, %c0_352] : memref<2x2x3x16x32xf32, #tpu.memory_space<vmem>>, vector<1x1x1x16x32xf32>
    %700 = vector.shape_cast %699 : vector<1x1x1x16x32xf32> to vector<16x32xf32>
    %701 = arith.mulf %676, %700 : vector<16x32xf32>
    %702 = vector.extract_strided_slice %694 {offsets = [1, 0], sizes = [16, 32], strides = [1, 1]} : vector<32x32xf32> to vector<16x32xf32>
    %c1_353 = arith.constant 1 : index
    %c1_354 = arith.constant 1 : index
    %c2_355 = arith.constant 2 : index
    %c0_356 = arith.constant 0 : index
    %c0_357 = arith.constant 0 : index
    %703 = vector.load %arg9[%c1_353, %c1_354, %c2_355, %c0_356, %c0_357] : memref<2x2x3x16x32xf32, #tpu.memory_space<vmem>>, vector<1x1x1x16x32xf32>
    %704 = vector.shape_cast %703 : vector<1x1x1x16x32xf32> to vector<16x32xf32>
    %705 = arith.mulf %702, %704 : vector<16x32xf32>
    %706 = arith.addf %698, %701 : vector<16x32xf32>
    %707 = arith.addf %706, %705 : vector<16x32xf32>
    %708 = vector.extract_strided_slice %406 {offsets = [11, 0], sizes = [1, 32], strides = [1, 1]} : vector<17x128xf32> to vector<1x32xf32>
    %709 = vector.broadcast %708 : vector<1x32xf32> to vector<16x32xf32>
    %710 = arith.addf %707, %709 : vector<16x32xf32>
    %711 = arith.addf %532, %693 : vector<16x32xf32>
    %712 = arith.truncf %711 : vector<16x32xf32> to vector<16x32xbf16>
    %c1_358 = arith.constant 1 : index
    %c2_359 = arith.constant 2 : index
    %c0_360 = arith.constant 0 : index
    %c0_361 = arith.constant 0 : index
    %713 = vector.load %arg3[%c1_358, %c2_359, %c0_360, %c0_361] : memref<2x4x32x32xbf16, #tpu.memory_space<vmem>>, vector<1x1x32x32xbf16>
    %714 = vector.shape_cast %713 : vector<1x1x32x32xbf16> to vector<32x32xbf16>
    %cst_362 = arith.constant dense<0.000000e+00> : vector<16x32xf32>
    %715 = tpu.matmul %712, %714, %cst_362 {dimension_numbers = #tpu.dot_dimension_numbers<[1], [0], [0], [1], [0, 0, 1, 1], [], []>} : vector<16x32xbf16>, vector<32x32xbf16>, vector<16x32xf32> -> vector<16x32xf32>
    %716 = arith.addf %676, %710 : vector<16x32xf32>
    %717 = arith.truncf %716 : vector<16x32xf32> to vector<16x32xbf16>
    %c1_363 = arith.constant 1 : index
    %c3_364 = arith.constant 3 : index
    %c0_365 = arith.constant 0 : index
    %c0_366 = arith.constant 0 : index
    %718 = vector.load %arg3[%c1_363, %c3_364, %c0_365, %c0_366] : memref<2x4x32x32xbf16, #tpu.memory_space<vmem>>, vector<1x1x32x32xbf16>
    %719 = vector.shape_cast %718 : vector<1x1x32x32xbf16> to vector<32x32xbf16>
    %cst_367 = arith.constant dense<0.000000e+00> : vector<16x32xf32>
    %720 = tpu.matmul %717, %719, %cst_367 {dimension_numbers = #tpu.dot_dimension_numbers<[1], [0], [0], [1], [0, 0, 1, 1], [], []>} : vector<16x32xbf16>, vector<32x32xbf16>, vector<16x32xf32> -> vector<16x32xf32>
    %721 = arith.addf %715, %720 : vector<16x32xf32>
    %722 = vector.extract_strided_slice %406 {offsets = [12, 0], sizes = [1, 32], strides = [1, 1]} : vector<17x128xf32> to vector<1x32xf32>
    %723 = vector.broadcast %722 : vector<1x32xf32> to vector<16x32xf32>
    %724 = arith.addf %721, %723 : vector<16x32xf32>
    %725 = arith.addf %445, %724 : vector<16x32xf32>
    %cst_368 = arith.constant dense<0.000000e+00> : vector<16xf32>
    %726 = vector.multi_reduction <add>, %725, %cst_368 [1] : vector<16x32xf32> to vector<16xf32>
    %727 = vector.shape_cast %726 : vector<16xf32> to vector<16x1xf32>
    %cst_369 = arith.constant 3.200000e+01 : f32
    %728 = vector.broadcast %cst_369 : f32 to vector<16x1xf32>
    %729 = arith.divf %727, %728 : vector<16x1xf32>
    %730 = vector.broadcast %729 : vector<16x1xf32> to vector<16x32xf32>
    %731 = arith.subf %725, %730 : vector<16x32xf32>
    %732 = arith.mulf %731, %731 : vector<16x32xf32>
    %cst_370 = arith.constant dense<0.000000e+00> : vector<16xf32>
    %733 = vector.multi_reduction <add>, %732, %cst_370 [1] : vector<16x32xf32> to vector<16xf32>
    %734 = vector.shape_cast %733 : vector<16xf32> to vector<16x1xf32>
    %cst_371 = arith.constant 3.200000e+01 : f32
    %735 = vector.broadcast %cst_371 : f32 to vector<16x1xf32>
    %736 = arith.divf %734, %735 : vector<16x1xf32>
    %cst_372 = arith.constant 9.99999974E-6 : f32
    %737 = vector.broadcast %cst_372 : f32 to vector<16x1xf32>
    %738 = arith.addf %736, %737 : vector<16x1xf32>
    %739 = math.rsqrt %738 : vector<16x1xf32>
    %740 = vector.broadcast %739 : vector<16x1xf32> to vector<16x32xf32>
    %741 = arith.mulf %731, %740 : vector<16x32xf32>
    %742 = arith.truncf %741 : vector<16x32xf32> to vector<16x32xbf16>
    %c1_373 = arith.constant 1 : index
    %c1_374 = arith.constant 1 : index
    %c0_375 = arith.constant 0 : index
    %c0_376 = arith.constant 0 : index
    %743 = vector.load %arg4[%c1_373, %c1_374, %c0_375, %c0_376] : memref<2x2x32x64xbf16, #tpu.memory_space<vmem>>, vector<1x1x32x64xbf16>
    %744 = vector.shape_cast %743 : vector<1x1x32x64xbf16> to vector<32x64xbf16>
    %cst_377 = arith.constant dense<0.000000e+00> : vector<16x64xf32>
    %745 = tpu.matmul %742, %744, %cst_377 {dimension_numbers = #tpu.dot_dimension_numbers<[1], [0], [0], [1], [0, 0, 1, 1], [], []>} : vector<16x32xbf16>, vector<32x64xbf16>, vector<16x64xf32> -> vector<16x64xf32>
    %746 = vector.extract_strided_slice %406 {offsets = [13, 0], sizes = [1, 64], strides = [1, 1]} : vector<17x128xf32> to vector<1x64xf32>
    %747 = vector.broadcast %746 : vector<1x64xf32> to vector<16x64xf32>
    %748 = arith.addf %745, %747 : vector<16x64xf32>
    %749 = arith.negf %748 : vector<16x64xf32>
    %750 = math.exp %749 : vector<16x64xf32>
    %cst_378 = arith.constant 1.000000e+00 : f32
    %751 = vector.broadcast %cst_378 : f32 to vector<16x64xf32>
    %752 = arith.addf %751, %750 : vector<16x64xf32>
    %753 = arith.divf %751, %752 : vector<16x64xf32>
    %754 = arith.mulf %748, %753 : vector<16x64xf32>
    %755 = arith.truncf %754 : vector<16x64xf32> to vector<16x64xbf16>
    %c1_379 = arith.constant 1 : index
    %c1_380 = arith.constant 1 : index
    %c0_381 = arith.constant 0 : index
    %c0_382 = arith.constant 0 : index
    %756 = vector.load %arg5[%c1_379, %c1_380, %c0_381, %c0_382] : memref<2x2x64x32xbf16, #tpu.memory_space<vmem>>, vector<1x1x64x32xbf16>
    %757 = vector.shape_cast %756 : vector<1x1x64x32xbf16> to vector<64x32xbf16>
    %cst_383 = arith.constant dense<0.000000e+00> : vector<16x32xf32>
    %758 = tpu.matmul %755, %757, %cst_383 {dimension_numbers = #tpu.dot_dimension_numbers<[1], [0], [0], [1], [0, 0, 1, 1], [], []>} : vector<16x64xbf16>, vector<64x32xbf16>, vector<16x32xf32> -> vector<16x32xf32>
    %759 = vector.extract_strided_slice %406 {offsets = [14, 0], sizes = [1, 32], strides = [1, 1]} : vector<17x128xf32> to vector<1x32xf32>
    %760 = vector.broadcast %759 : vector<1x32xf32> to vector<16x32xf32>
    %761 = arith.addf %758, %760 : vector<16x32xf32>
    %cst_384 = arith.constant 5.000000e-01 : f32
    %762 = vector.broadcast %cst_384 : f32 to vector<16x32xf32>
    %763 = arith.mulf %762, %761 : vector<16x32xf32>
    %764 = arith.addf %725, %763 : vector<16x32xf32>
    %cst_385 = arith.constant dense<0.000000e+00> : vector<16xf32>
    %765 = vector.multi_reduction <add>, %764, %cst_385 [1] : vector<16x32xf32> to vector<16xf32>
    %766 = vector.shape_cast %765 : vector<16xf32> to vector<16x1xf32>
    %cst_386 = arith.constant 3.200000e+01 : f32
    %767 = vector.broadcast %cst_386 : f32 to vector<16x1xf32>
    %768 = arith.divf %766, %767 : vector<16x1xf32>
    %769 = vector.broadcast %768 : vector<16x1xf32> to vector<16x32xf32>
    %770 = arith.subf %764, %769 : vector<16x32xf32>
    %771 = arith.mulf %770, %770 : vector<16x32xf32>
    %cst_387 = arith.constant dense<0.000000e+00> : vector<16xf32>
    %772 = vector.multi_reduction <add>, %771, %cst_387 [1] : vector<16x32xf32> to vector<16xf32>
    %773 = vector.shape_cast %772 : vector<16xf32> to vector<16x1xf32>
    %cst_388 = arith.constant 3.200000e+01 : f32
    %774 = vector.broadcast %cst_388 : f32 to vector<16x1xf32>
    %775 = arith.divf %773, %774 : vector<16x1xf32>
    %cst_389 = arith.constant 9.99999974E-6 : f32
    %776 = vector.broadcast %cst_389 : f32 to vector<16x1xf32>
    %777 = arith.addf %775, %776 : vector<16x1xf32>
    %778 = math.rsqrt %777 : vector<16x1xf32>
    %779 = vector.broadcast %778 : vector<16x1xf32> to vector<16x32xf32>
    %780 = arith.mulf %770, %779 : vector<16x32xf32>
    %781 = vector.extract_strided_slice %406 {offsets = [15, 0], sizes = [1, 32], strides = [1, 1]} : vector<17x128xf32> to vector<1x32xf32>
    %782 = vector.broadcast %781 : vector<1x32xf32> to vector<16x32xf32>
    %783 = arith.mulf %780, %782 : vector<16x32xf32>
    %784 = vector.extract_strided_slice %406 {offsets = [16, 0], sizes = [1, 32], strides = [1, 1]} : vector<17x128xf32> to vector<1x32xf32>
    %785 = vector.broadcast %784 : vector<1x32xf32> to vector<16x32xf32>
    %786 = arith.addf %783, %785 : vector<16x32xf32>
    %c0_390 = arith.constant 0 : index
    %c0_391 = arith.constant 0 : index
    %787 = vector.load %arg10[%c0_390, %c0_391] : memref<2x128xf32, #tpu.memory_space<vmem>>, vector<2x128xf32>
    %cst_392 = arith.constant dense<0.000000e+00> : vector<16xf32>
    %788 = vector.multi_reduction <add>, %786, %cst_392 [1] : vector<16x32xf32> to vector<16xf32>
    %789 = vector.shape_cast %788 : vector<16xf32> to vector<16x1xf32>
    %cst_393 = arith.constant 3.200000e+01 : f32
    %790 = vector.broadcast %cst_393 : f32 to vector<16x1xf32>
    %791 = arith.divf %789, %790 : vector<16x1xf32>
    %792 = vector.broadcast %791 : vector<16x1xf32> to vector<16x32xf32>
    %793 = arith.subf %786, %792 : vector<16x32xf32>
    %794 = arith.mulf %793, %793 : vector<16x32xf32>
    %cst_394 = arith.constant dense<0.000000e+00> : vector<16xf32>
    %795 = vector.multi_reduction <add>, %794, %cst_394 [1] : vector<16x32xf32> to vector<16xf32>
    %796 = vector.shape_cast %795 : vector<16xf32> to vector<16x1xf32>
    %cst_395 = arith.constant 3.200000e+01 : f32
    %797 = vector.broadcast %cst_395 : f32 to vector<16x1xf32>
    %798 = arith.divf %796, %797 : vector<16x1xf32>
    %cst_396 = arith.constant 9.99999974E-6 : f32
    %799 = vector.broadcast %cst_396 : f32 to vector<16x1xf32>
    %800 = arith.addf %798, %799 : vector<16x1xf32>
    %801 = math.rsqrt %800 : vector<16x1xf32>
    %802 = vector.broadcast %801 : vector<16x1xf32> to vector<16x32xf32>
    %803 = arith.mulf %793, %802 : vector<16x32xf32>
    %804 = vector.extract_strided_slice %787 {offsets = [0, 0], sizes = [1, 32], strides = [1, 1]} : vector<2x128xf32> to vector<1x32xf32>
    %805 = vector.broadcast %804 : vector<1x32xf32> to vector<16x32xf32>
    %806 = arith.mulf %803, %805 : vector<16x32xf32>
    %807 = vector.extract_strided_slice %787 {offsets = [1, 0], sizes = [1, 32], strides = [1, 1]} : vector<2x128xf32> to vector<1x32xf32>
    %808 = vector.broadcast %807 : vector<1x32xf32> to vector<16x32xf32>
    %809 = arith.addf %806, %808 : vector<16x32xf32>
    %810 = arith.extui %5 : vector<16x1xi1> to vector<16x1xi32>
    %811 = arith.sitofp %810 : vector<16x1xi32> to vector<16x1xf32>
    %812 = vector.broadcast %811 : vector<16x1xf32> to vector<16x32xf32>
    %813 = arith.mulf %809, %812 : vector<16x32xf32>
    %c0_397 = arith.constant 0 : index
    %c0_398 = arith.constant 0 : index
    %814 = vector.load %arg11[%c0_397, %c0_398] : memref<16x32xf32, #tpu.memory_space<vmem>>, vector<16x32xf32>
    tpu.vector_store %arg11[%c0_397, %c0_398], %813 {strides = array<i32>} : memref<16x32xf32, #tpu.memory_space<vmem>>, vector<16x32xf32>,
    return
  }
  func.func @transform_0(%arg0: i32) -> (i32, i32) {
    %c0_i32 = arith.constant 0 : i32
    %c0_i32_0 = arith.constant 0 : i32
    return %arg0, %c0_i32 : i32, i32
  }
  func.func @transform_1(%arg0: i32) -> (i32, i32, i32) {
    %c0_i32 = arith.constant 0 : i32
    %c0_i32_0 = arith.constant 0 : i32
    %c0_i32_1 = arith.constant 0 : i32
    %c0_i32_2 = arith.constant 0 : i32
    return %c0_i32, %c0_i32_0, %c0_i32_1 : i32, i32, i32
  }
  func.func @transform_2(%arg0: i32) -> (i32, i32, i32, i32) {
    %c0_i32 = arith.constant 0 : i32
    %c0_i32_0 = arith.constant 0 : i32
    %c0_i32_1 = arith.constant 0 : i32
    %c0_i32_2 = arith.constant 0 : i32
    %c0_i32_3 = arith.constant 0 : i32
    return %c0_i32, %c0_i32_0, %c0_i32_1, %c0_i32_2 : i32, i32, i32, i32
  }
  func.func @transform_3(%arg0: i32) -> (i32, i32, i32, i32) {
    %c0_i32 = arith.constant 0 : i32
    %c0_i32_0 = arith.constant 0 : i32
    %c0_i32_1 = arith.constant 0 : i32
    %c0_i32_2 = arith.constant 0 : i32
    %c0_i32_3 = arith.constant 0 : i32
    return %c0_i32, %c0_i32_0, %c0_i32_1, %c0_i32_2 : i32, i32, i32, i32
  }
  func.func @transform_4(%arg0: i32) -> (i32, i32, i32, i32) {
    %c0_i32 = arith.constant 0 : i32
    %c0_i32_0 = arith.constant 0 : i32
    %c0_i32_1 = arith.constant 0 : i32
    %c0_i32_2 = arith.constant 0 : i32
    %c0_i32_3 = arith.constant 0 : i32
    return %c0_i32, %c0_i32_0, %c0_i32_1, %c0_i32_2 : i32, i32, i32, i32
  }
  func.func @transform_5(%arg0: i32) -> (i32, i32, i32, i32) {
    %c0_i32 = arith.constant 0 : i32
    %c0_i32_0 = arith.constant 0 : i32
    %c0_i32_1 = arith.constant 0 : i32
    %c0_i32_2 = arith.constant 0 : i32
    %c0_i32_3 = arith.constant 0 : i32
    return %c0_i32, %c0_i32_0, %c0_i32_1, %c0_i32_2 : i32, i32, i32, i32
  }
  func.func @transform_6(%arg0: i32) -> (i32, i32, i32) {
    %c0_i32 = arith.constant 0 : i32
    %c0_i32_0 = arith.constant 0 : i32
    %c0_i32_1 = arith.constant 0 : i32
    %c0_i32_2 = arith.constant 0 : i32
    return %c0_i32, %c0_i32_0, %c0_i32_1 : i32, i32, i32
  }
  func.func @transform_7(%arg0: i32) -> (i32, i32, i32, i32) {
    %c0_i32 = arith.constant 0 : i32
    %c0_i32_0 = arith.constant 0 : i32
    %c0_i32_1 = arith.constant 0 : i32
    %c0_i32_2 = arith.constant 0 : i32
    %c0_i32_3 = arith.constant 0 : i32
    return %c0_i32, %c0_i32_0, %c0_i32_1, %c0_i32_2 : i32, i32, i32, i32
  }
  func.func @transform_8(%arg0: i32) -> (i32, i32, i32, i32, i32) {
    %c0_i32 = arith.constant 0 : i32
    %c0_i32_0 = arith.constant 0 : i32
    %c0_i32_1 = arith.constant 0 : i32
    %c0_i32_2 = arith.constant 0 : i32
    %c0_i32_3 = arith.constant 0 : i32
    %c0_i32_4 = arith.constant 0 : i32
    return %c0_i32, %c0_i32_0, %c0_i32_1, %c0_i32_2, %c0_i32_3 : i32, i32, i32, i32, i32
  }
  func.func @transform_9(%arg0: i32) -> (i32, i32) {
    %c0_i32 = arith.constant 0 : i32
    %c0_i32_0 = arith.constant 0 : i32
    %c0_i32_1 = arith.constant 0 : i32
    return %c0_i32, %c0_i32_0 : i32, i32
  }
  func.func @transform_10(%arg0: i32) -> (i32, i32) {
    %c0_i32 = arith.constant 0 : i32
    %c0_i32_0 = arith.constant 0 : i32
    return %arg0, %c0_i32 : i32, i32
  }
}

</mosaic_0001>

<bundles_post_ra>
// kernel: ebranchformer_encoder_forward.1
= control target key start
LH: loop header
LB: loop body
LE: loop exit
PB: predicated region body
PF: predicated region fallthrough
CT: control target
= control target key end

     0   :  { %15 = vsyncpa [#allocation3], 0  ;;  %s6952_s0 = inlined_call_operand.vmem [shape: f32[32,32], index: 0, kind: input, shape index: {}]   ;;  %s6953_s1 = inlined_call_operand.hbm [shape: bf16[2,32,128], index: 1, kind: input, shape index: {}]   ;;  %s6954_s2 = inlined_call_operand.vmem [shape: bf16[2,4,32,32], index: 2, kind: input, shape index: {}]   ;;  %s6955_s3 = inlined_call_operand.hbm [shape: bf16[2,2,32,64], index: 3, kind: input, shape index: {}]   ;;  %s6956_s4 = inlined_call_operand.vmem [shape: bf16[2,2,64,32], index: 4, kind: input, shape index: {}]   ;;  %s6957_s5 = inlined_call_operand.vmem [shape: bf16[2,2,32,4], index: 5, kind: input, shape index: {}]   ;;  %s6958_s6 = inlined_call_operand.vmem [shape: f32[2,17,128], index: 6, kind: input, shape index: {}]   ;;  %s6959_s7 = inlined_call_operand.vmem [shape: f32[2,16,16,32], index: 7, kind: input, shape index: {}]   ;;  %s6960_s8 = inlined_call_operand.vmem [shape: f32[2,2,3,16,32], index: 8, kind: input, shape index: {}]   ;;  %s6961_s9 = inlined_call_operand.vmem [shape: f32[2,128], index: 9, kind: input, shape index: {}]   ;;  %s6962_s10 = inlined_call_operand.hbm [shape: f32[32,32], index: 10, kind: output, shape index: {}]  }
   0x1   :  { %16 = vsyncpa [#allocation6], 0 }
   0x2   :  { %17 = vsyncpa [#allocation4], 0 }
   0x3   :  { %19 = vsyncpa [#allocation4 + $0x1], 0  ;;  %s5410_s13 = smov 0   ;;  %s5412_s14 = smov 0  }
   0x4   :  { %s5414_s15 = smov 0   ;;  %s5416_s16 = smov 0  }
   0x5 LB: > { %6986 = sst [smem:[#allocation11_spill]] %s5336_s15  ;;  %s5431_s17 = sadd.s32 4294967295, %s5340_s16   ;;  %s5340_s16 = sphi %s5416_s16, %s7024_s16   ;;  %s5336_s15 = sphi %s5414_s15, %s7026_s15   ;;  %s5332_s14 = sphi %s5412_s14, %s7028_s14   ;;  %s5328_s13 = sphi %s5410_s13, %s7027_s13  }
   0x6   : > { %s4396_s18 = sadd.s32 4294967294, %s5340_s16   ;;  %s5435_s19 = sadd.s32 1, %s5340_s16  }
   0x7   : > { %6987 = sst [smem:[#allocation12_spill]] %s5435_s19  ;;  %s247_s20 = sadd.s32 1, %s5336_s15 }
   0x8   : > { %s244_s21 = ssub.s32 %s5340_s16, %s5435_s19  ;;  %p257_p0 = scmp.ne.s32.totalorder %s5336_s15, %s5332_s14 }
   0x9   : > { %p245_p1 = scmp.eq.s32.totalorder %s244_s21, 0  ;;  %p258_p2 = scmp.eq.s32.totalorder %s5431_s17, 1 }
   0xa   : > { %p263_p3 = scmp.ne.s32.totalorder %s5332_s14, %s5328_s13  ;;  %p264_p4 = scmp.eq.s32.totalorder %s4396_s18, 1 }
   0xb   : > { %s5446_s22 = scalar_select %p245_p1, %s5336_s15, %s247_s20  }
   0xc   : > { %p5448_p5 = por %p258_p2, %p257_p0  ;;  %p5452_p6 = por %p264_p4, %p263_p3 }
   0xd   : > { %6988 = sst [smem:[#allocation13_spill]] %s5446_s22  ;;  %p4397_p7 = scmp.ge.s32.totalorder %s5340_s16, 1 }
   0xe   : > { %s6989_s23 = scalar_select %p5448_p5, 1, 0 }
   0xf   : > { %s6990_s24 = scalar_select %p5452_p6, 1, 0 }
  0x10   : > { %p271_p8 = scmp.lt.s32.totalorder %s5340_s16, 3  ;;  %p6963_p9 = scmp.eq.s32.totalorder %s5431_s17, 0 }
  0x11   : > { %6991 = sst [smem:[#allocation14_spill]] %s6990_s24  ;;  %s5342_s26 = smov [#allocation2]  }
  0x12   : > { %p5459_p10 = pnand %p4397_p7, %p271_p8  ;;  %s283_s27 = sshll.u32 %s5342_s26, 4  ;;  %s284_s27 = int_to_ptr.vmem [resolvable:$true] %s283_s27 }
  0x13   : > { %s5343_s29 = smov [#allocation5]   ;;  %s5214_s18 = scalar_lea.hbm %s6953_s1, 512 }
  0x14   : > { %s6992_s25 = scalar_select %p5459_p10, 1, 0 }
  0x15   : > { %p4974_p11 = pneg %p5459_p10  ;;  %s299_s30 = sshll.u32 %s5343_s29, 4  ;;  %s5471_s30 = int_to_ptr.vmem [resolvable:$true] %s299_s30 }
  0x16   : > { %p5215_p13 = scmp.ne.s32.totalorder %s6953_s1, %s5214_s18  ;;  %p5221_p3 = scmp.lt.u32.totalorder %s5214_s18, %s6953_s1 }
  0x17   : > { %p5467_p12 = pnand %p6963_p9, %p4974_p11 }
  0x19   : > { %p5216_p0 = pneg %p5467_p12 }
  0x1b   : > { %p5217_p1 = pnand %p5216_p0, %p5215_p13 }
  0x1d   : > { %p5218_p2 = pneg %p5217_p1 }
  0x1f   : > { %p5223_p4 = pnand %p5221_p3, %p5218_p2 }
  0x21   : > { %5226 = shalt.err (!%p5223_p4)
}
  0x22   : > { %s5227_s29 = scalar_lea.vmem %s284_s27, 512  ;;  %p5235_p9 = scmp.lt.s32.totalorder %s284_s27, %s284_s27 }
  0x23   : > { %p5228_p7 = scmp.ne.s32.totalorder %s284_s27, %s5227_s29  ;;  %p5236_p6 = scmp.lt.s32.totalorder %s5227_s29, %s5227_s29 }
  0x25   : > { %p5230_p8 = pnand %p5228_p7, %p5216_p0  ;;  %p5237_p5 = por %p5236_p6, %p5235_p9 }
  0x27   : > { %p5231_p11 = pneg %p5230_p8 }
  0x29   : > { %p5238_p10 = pnand %p5237_p5, %p5231_p11 }
  0x2b   : > { %5241 = shalt.err (!%p5238_p10)
}
  0x2c   : > { %s5344_s11 = smov 64   ;;  %s5345_s12 = smov 4  }
  0x2d   : > { %4977 = dma.hbm_to_vmem [thread:$0]  (!%p5467_p12), %s6953_s1, 512, %s284_s27, [#allocation3], %s5344_s11, %s5344_s11, %s5345_s12  }
  0x2e   : > { %s5242_s26 = scalar_lea.hbm %s6955_s3, 1024 }
  0x2f   : > { %p5243_p13 = scmp.ne.s32.totalorder %s6955_s3, %s5242_s26  ;;  %p5249_p9 = scmp.lt.u32.totalorder %s5242_s26, %s6955_s3 }
  0x31   : > { %p5245_p5 = pnand %p5243_p13, %p5216_p0 }
  0x33   : > { %p5246_p6 = pneg %p5245_p5 }
  0x35   : > { %p5251_p10 = pnand %p5249_p9, %p5246_p6 }
  0x37   : > { %5254 = shalt.err (!%p5251_p10)
}
  0x38   : > { %s5255_s27 = scalar_lea.vmem %s5471_s30, 1024  ;;  %p5263_p4 = scmp.lt.s32.totalorder %s5471_s30, %s5471_s30 }
  0x39   : > { %p5256_p1 = scmp.ne.s32.totalorder %s5471_s30, %s5255_s27  ;;  %p5264_p7 = scmp.lt.s32.totalorder %s5255_s27, %s5255_s27 }
  0x3b   : > { %p5258_p2 = pnand %p5256_p1, %p5216_p0  ;;  %p5265_p8 = por %p5264_p7, %p5263_p4 }
  0x3d   : > { %p5259_p3 = pneg %p5258_p2 }
  0x3f   : > { %p5266_p11 = pnand %p5265_p8, %p5259_p3 }
  0x41   : > { %5269 = shalt.err (!%p5266_p11)
}
  0x42   : > { %4980 = dma.hbm_to_vmem [thread:$0]  (!%p5467_p12), %s6955_s3, 1024, %s5471_s30, [#allocation6], %s5344_s11, %s5344_s11, %s5345_s12  }
  0x43   : > { %p6994_p13 = scmp.ne.s32.totalorder %s6992_s25, 0 }
  0x45   : > { %342 = sbr.rel (%p6994_p13) target bundleno = 9182 (0x23de), region = 60 }
  0x4c   : > { %p6995_p5 = scmp.eq.s32.totalorder %s5431_s17, 0 }
  0x4e   : > { %5315 = dma.done.wait (%p6995_p5), [#allocation3], 512   ;;  %p6996_p0 = pmov %p6995_p5 }
  0x50   : > { %5317 = vsyncadd (%p6996_p0), [#allocation3], 4294966784  ;;  %p6997_p6 = pmov %p6996_p0 }
  0x51   : > { %p6998_p9 = pmov %p6996_p0 }
  0x52   : > { %5319 = dma.done.wait (%p6997_p6), [#allocation6], 1024  }
  0x53   : > { %5321 = vsyncadd (%p6998_p9), [#allocation6], 4294966272  ;;  %s4405_s24 = sshll.u32 %s5431_s17, 1  ;;  %vm396_vm0 = vcmask 261120   ;;  %v5034_v16 = vld [vmem:[#allocation5] sm:$0xff]   ;;  %v6970_v17 = vmov 0.0   ;;  %v409_v34 = vlaneseq }
  0x54   : > { %p385_p10 = scmp.lt.s32.totalorder %s4405_s24, 3  ;;  %4752 = vmatprep.subr.bf16.mxu0 %v6970_v17  ;;  %vm5347_vm1 = vmmov 0   ;;  %v5035_v18 = vld [vmem:[#allocation5 + $0x8] sm:$0xff]   ;;  %4760 = vmatprep.subr.bf16.mxu1 %v6970_v17  ;;  %v5036_v30 = vld [vmem:[%s6956_s4] sm:$0xff]   ;;  %v5038_v32 = vld [vmem:[%s6956_s4 + $0x10] sm:$0xff]   ;;  %vm566_vm2 = vcmask 523264  }
  0x55   : > { %4756 = vmatprep.mubr.msk.bf16.mxu0 %vm5347_vm1, %v6970_v17  ;;  %4753 = vmatpush3.bf16.msra.mxu0 %v5034_v16  ;;  %v5037_v31 = vld [vmem:[%s6956_s4 + $0x8] sm:$0xff]   ;;  %v5039_v33 = vld [vmem:[%s6956_s4 + $0x18] sm:$0xff]   ;;  %v5579_v35 = vshrl.u32 %v409_v34, 7  ;;  %v5587_v37 = vld [vmem:[%s6958_s6] sm:$0xff]  ;;  %vm811_vm5 = vcmask 1043456   ;;  %vm5348_vm9 = vmmov 1  }
  0x56   : > { %s7030_s24 = smov (!%p385_p10, %s4405_s24), 3  ;;  %4754 = vmatprep.subr.bf16.mxu0 %v6970_v17  ;;  %4768 = vmatprep.mubr.msk.bf16.mxu1 %vm5347_vm1, %v6970_v17  ;;  %vm777_vm12 = vcmask 31744   ;;  %s5349_s22 = smov 32   ;;  %vm1436_vm13 = vcmask 1040384   ;;  %vm1313_vm14 = vcmask 1044480   ;;  %vm1366_vm15 = vcmask 1042432  }
  0x57   : > { %s4406_s28 = sshll.u32 %s7030_s24, 3  ;;  %4761 = vmatpush3.bf16.msra.mxu1 %v5036_v30  ;;  %v5582_v36 = vsub.s32 1, %v5579_v35  ;;  %v5593_v56 = vsub.s32 2, %v5579_v35  ;;  %s5350_s21 = smov 96  }
  0x58   : > { %s388_s11 = scalar_lea.vmem %s6952_s0, %s4406_s28  ;;  %4762 = vmatprep.subr.bf16.mxu1 %v6970_v17  ;;  %s381_s18 = sand.u32 1, %s5332_s14  }
  0x59   : > { %v5534_v0 = vld [vmem:[%s388_s11] sm:$0xff]  ;;  %v5536_v1 = vld [vmem:[%s388_s11 + $0x8] sm:$0xff]  ;;  %4755 = vmatpush3.bf16.msra.mxu0 %v5035_v18  ;;  %v458_v38 = vrot.slane %v5587_v37, %v5582_v36  ;;  %v541_v57 = vrot.slane %v5587_v37, %v5593_v56  ;;  %s5351_s11 = smov 64   ;;  %s4404_s20 = sshll.u32 %s381_s18, 4 }
  0x5a   : > { %v5539_v2 = vmul.f32 5.656854, %v5534_v0  ;;  %v5542_v3 = vmul.f32 5.656854, %v5536_v1  ;;  %4772 = vmatprep.subr.bf16.mxu0 %v6970_v17  ;;  %s4665_s26 = sshll.u32 %s5431_s17, 8  ;;  %s6911_s17 = scalar_lea.sflag [#allocation4], %s381_s18 }
  0x5b   : > { %4763 = vmatpush3.bf16.msra.mxu1 %v5037_v31  ;;  %v5042_v31 = vld [vmem:[%s6957_s5] sm:$0xff]   ;;  %s6905_s19 = scalar_lea.hbm %s6962_s10, %s4665_s26  ;;  %p7021_p1 = scmp.ne.s32.totalorder %s6989_s23, 0 }
  0x5c   : > { %v423_v4 = vsel %vm396_vm0, %v5539_v2, 0.0  ;;  %v426_v5 = vsel %vm396_vm0, %v5542_v3, 0.0  ;;  %4764 = vmatprep.subr.bf16.mxu1 %v6970_v17  ;;  %s5352_s28 = smov [#allocation7]  }
  0x5d   : > { %424 = vadd.xlane.f32.xlu0 %v423_v4 }
  0x5f   : > { %4765 = vmatpush3.bf16.msra.mxu1 %v5038_v32 }
  0x60   : > { %4766 = vmatprep.subr.bf16.mxu1 %v6970_v17 }
  0x61   : > { %427 = vadd.xlane.f32.xlu0 %v426_v5 }
  0x63   : > { %4767 = vmatpush3.bf16.msra.mxu1 %v5039_v33  ;;  %v5043_v33 = vld [vmem:[%s6957_s5 + $0x8] sm:$0xff]  }
  0xea   : > { %v425_v6 = vpop.xlane.xlu0 %424 }
  0xeb   : > { %v430_v7 = vmul.f32 0.03125, %v425_v6 }
  0xed   : > { %v432_v8 = vsub.f32 %v5539_v2, %v430_v7 }
  0xee   : > { %v428_v9 = vpop.xlane.xlu0 %427 }
  0xef   : > { %v431_v10 = vmul.f32 0.03125, %v428_v9  ;;  %v434_v11 = vmul.f32 %v432_v8, %v432_v8 }
  0xf1   : > { %v433_v12 = vsub.f32 %v5542_v3, %v431_v10  ;;  %v436_v13 = vsel %vm396_vm0, %v434_v11, 0.0 }
  0xf2   : > { %437 = vadd.xlane.f32.xlu1 %v436_v13 }
  0xf3   : > { %v435_v14 = vmul.f32 %v433_v12, %v433_v12 }
  0xf5   : > { %v439_v15 = vsel %vm396_vm0, %v435_v14, 0.0 }
  0xf6   : > { %440 = vadd.xlane.f32.xlu1 %v439_v15 }
 0x17f   : > { %v438_v19 = vpop.xlane.xlu1 %437 }
 0x180   : > { %v442_v20 = vmul.f32 0.03125, %v438_v19  ;;  %v5040_v19 = vld [vmem:[#allocation2] sm:$0xff]  }
 0x182   : > { %v444_v21 = vadd.f32 1e-05, %v442_v20  ;;  %v5041_v20 = vld [vmem:[#allocation2 + $0x8] sm:$0xff]  }
 0x183   : > { %v441_v22 = vpop.xlane.xlu1 %440 }
 0x184   : > { %v443_v23 = vmul.f32 0.03125, %v441_v22  ;;  %5086 = vrsqrt.f32 %v444_v21 }
 0x186   : > { %v445_v24 = vadd.f32 1e-05, %v443_v23 }
 0x188   : > { %5088 = vrsqrt.f32 %v445_v24 }
 0x18e   : > { %v5087_v25 = vpop.eup %5086 }
 0x18f   : > { %v448_v27 = vmul.f32 %v5087_v25, %v432_v8 }
 0x192   : > { %v5089_v26 = vpop.eup %5088 }
 0x193   : > { %v449_v28 = vmul.f32 %v5089_v26, %v433_v12 }
 0x195   : > { %v450_v29 = vpack.c.bf16 %v449_v28, %v448_v27 }
 0x197   : > { %4757 = vmatmul.mubr.msk.bf16.vlgmr.msra.gmra.mrb[0].mxu0 %vm396_vm0, %v450_v29 }
 0x198   : > { %4776 = vmatprep.mubr.msk.bf16.mxu0 %vm5347_vm1, %v6970_v17  ;;  %4773 = vmatpush3.bf16.msra.mxu0 %v5040_v19 }
 0x199   : > { %4774 = vmatprep.subr.bf16.mxu0 %v6970_v17 }
 0x19c   : > { %4775 = vmatpush3.bf16.msra.mxu0 %v5041_v20 }
 0x19d   : > { %4780 = vmatprep.subr.bf16.mxu0 %v6970_v17 }
 0x26a   : > { %v508_v39 = vpop.f32.mrb[0].mxu0 }
 0x26b   : > { %v509_v40 = vadd.f32 %v508_v39, %v458_v38  ;;  %v4758_v41 = vpop.f32.mrb[1].mxu0  ;;  %v395_v39 = vand.u32 2147483647, %v5536_v1 }
 0x26c   : > { %v511_v42 = vpop.f32.mrb[2].mxu0 }
 0x26d   : > { %v4410_v43 = vmul.f32 -1.442695, %v509_v40  ;;  %v512_v44 = vadd.f32 %v511_v42, %v458_v38  ;;  %v4759_v45 = vpop.f32.mrb[3].mxu0  ;;  %v394_v38 = vand.u32 2147483647, %v5534_v0  ;;  %v400_v41 = vsel %vm396_vm0, %v395_v39, 0.0 }
 0x26e   : > { %v5629_v42 = vsub.s32 0, %v5579_v35 }
 0x26f   : > { %5090 = vpow2.f32 %v4410_v43  ;;  %v4411_v46 = vmul.f32 -1.442695, %v512_v44 }
 0x270   : > { %6999 = vst [vmem:[#allocation15_spill] sm:$0xff] %v5629_v42  ;;  %v649_v43 = vrot.slane %v5587_v37, %v5629_v42 }
 0x271   : > { %5092 = vpow2.f32 %v4411_v46 }
 0x279   : > { %v5091_v47 = vpop.eup %5090 }
 0x27a   : > { %v521_v48 = vadd.f32 1.0, %v5091_v47 }
 0x27b   : > { %v5093_v49 = vpop.eup %5092 }
 0x27c   : > { %5094 = vrcp.f32 %v521_v48  ;;  %v522_v50 = vadd.f32 1.0, %v5093_v49  ;;  %v410_v49 = vand.u32 127, %v409_v34  ;;  %v5655_v34 = vsub.s32 3, %v5579_v35 }
 0x27e   : > { %5096 = vrcp.f32 %v522_v50  ;;  %v413_v50 = vmul.u32 8, %v5579_v35 }
 0x280   : > { %vm414_vm3 = vcmp.ge.s32.totalorder %v410_v49, %v413_v50 }
 0x286   : > { %v5095_v51 = vpop.eup %5094 }
 0x287   : > { %v527_v53 = vmul.f32 %v5095_v51, %v509_v40  ;;  %v397_v40 = vsel %vm396_vm0, %v394_v38, 0.0  ;;  %v415_v51 = vadd.s32 1, %v5579_v35 }
 0x288   : > { %v5097_v52 = vpop.eup %5096 }
 0x289   : > { %v528_v54 = vmul.f32 %v5097_v52, %v512_v44  ;;  %v416_v52 = vmul.u32 8, %v415_v51 }
 0x28b   : > { %v529_v55 = vpack.c.bf16 %v528_v54, %v527_v53  ;;  %vm417_vm4 = vcmp.lt.s32.totalorder %v410_v49, %v416_v52 }
 0x28c   : > { %vm418_vm6 = vmand %vm414_vm3, %vm417_vm4  ;;  %vm1401_vm3 = vcmask 1041408   ;;  %vm1271_vm4 = vcmask 1046528  }
 0x28d   : > { %4769 = vmatmul.mubr.msk.bf16.vlgmr.msra.gmra.mrb[0].mxu1 %vm566_vm2, %v529_v55  ;;  %v5646_v53 = vsel %vm418_vm6, 1.0, %v6970_v17  ;;  %vm1292_vm6 = vcmask 1045504  }
 0x28e   : > { %7000 = vst [vmem:[#allocation16_spill] sm:$0xff] %v5646_v53  ;;  %4788 = vmatprep.subr.msk.mxu1 %vm811_vm5, %v5646_v53 }
 0x28f   : > { %4789 = vmatpush3.msk.msra.mxu1 %vm811_vm5, %v5646_v53 }
 0x290   : > { %4801 = vmatprep.subr.msk.mxu1 %vm811_vm5, %v5646_v53 }
 0x360   : > { %v604_v58 = vpop.f32.mrb[0].mxu1 }
 0x361   : > { %v605_v59 = vadd.f32 %v604_v58, %v541_v57  ;;  %v4770_v60 = vpop.f32.mrb[1].mxu1 }
 0x362   : > { %v607_v61 = vpop.f32.mrb[2].mxu1 }
 0x363   : > { %v611_v62 = vmul.f32 0.5, %v605_v59  ;;  %v608_v63 = vadd.f32 %v607_v61, %v541_v57  ;;  %v4771_v4 = vpop.f32.mrb[3].mxu1  ;;  %v714_v57 = vrot.slane %v5587_v37, %v5655_v34  ;;  %v7003_v59 = vmov 0 }
 0x365   : > { %v5598_v5 = vadd.f32 %v611_v62, %v5539_v2  ;;  %v612_v6 = vmul.f32 0.5, %v608_v63  ;;  %v7006_v62 = vmov 0 }
 0x367   : > { %v5601_v7 = vadd.f32 %v612_v6, %v5542_v3  ;;  %v615_v8 = vsel %vm396_vm0, %v5598_v5, 0.0 }
 0x368   : > { %616 = vadd.xlane.f32.xlu0 %v615_v8 }
 0x369   : > { %v618_v9 = vsel %vm396_vm0, %v5601_v7, 0.0 }
 0x36a   : > { %619 = vadd.xlane.f32.xlu1 %v618_v9 }
 0x3f5   : > { %v617_v10 = vpop.xlane.xlu0 %616 }
 0x3f6   : > { %v621_v11 = vmul.f32 0.03125, %v617_v10 }
 0x3f7   : > { %v620_v12 = vpop.xlane.xlu1 %619 }
 0x3f8   : > { %v623_v13 = vsub.f32 %v5598_v5, %v621_v11  ;;  %v622_v14 = vmul.f32 0.03125, %v620_v12 }
 0x3fa   : > { %v624_v2 = vsub.f32 %v5601_v7, %v622_v14  ;;  %v625_v15 = vmul.f32 %v623_v13, %v623_v13 }
 0x3fc   : > { %v627_v3 = vsel %vm396_vm0, %v625_v15, 0.0  ;;  %v626_v16 = vmul.f32 %v624_v2, %v624_v2 }
 0x3fd   : > { %628 = vadd.xlane.f32.xlu0 %v627_v3 }
 0x3fe   : > { %v630_v18 = vsel %vm396_vm0, %v626_v16, 0.0 }
 0x3ff   : > { %631 = vadd.xlane.f32.xlu1 %v630_v18 }
 0x401   : > { %398 = vadd.xlane.f32.xlu0 %v397_v40 }
 0x403   : > { %401 = vadd.xlane.f32.xlu1 %v400_v41 }
 0x48a   : > { %v629_v21 = vpop.xlane.xlu0 %628 }
 0x48b   : > { %v633_v22 = vmul.f32 0.03125, %v629_v21 }
 0x48c   : > { %v632_v23 = vpop.xlane.xlu1 %631 }
 0x48d   : > { %v635_v24 = vadd.f32 1e-05, %v633_v22  ;;  %v634_v25 = vmul.f32 0.03125, %v632_v23 }
 0x48e   : > { %v5657_v54 = vpop.xlane.xlu0 %398 }
 0x48f   : > { %5098 = vrsqrt.f32 %v635_v24  ;;  %v636_v26 = vadd.f32 1e-05, %v634_v25  ;;  %7001 = vst [vmem:[#allocation17_spill] sm:$0xff] %v5657_v54  ;;  %vm403_vm7 = vcmp.gt.f32.partialorder %v5657_v54, 0.0 }
 0x490   : > { %v5659_v55 = vpop.xlane.xlu1 %401  ;;  %vm5667_vm10 = vmxor %vm403_vm7, %vm5348_vm9 }
 0x491   : > { %5100 = vrsqrt.f32 %v636_v26  ;;  %7002 = vst [vmem:[#allocation18_spill] sm:$0xff] %v5659_v55  ;;  %vm404_vm8 = vcmp.gt.f32.partialorder %v5659_v55, 0.0  ;;  %v7004_v59 = vsel %vm5667_vm10, 4294967295, %v7003_v59 }
 0x492   : > { %7005 = vst [vmem:[#allocation19_spill] sm:$0xff] %v7004_v59  ;;  %vm5673_vm11 = vmxor %vm404_vm8, %vm5348_vm9 }
 0x493   : > { %v7007_v62 = vsel %vm5673_vm11, 4294967295, %v7006_v62 }
 0x494   : > { %7008 = vst [vmem:[#allocation20_spill] sm:$0xff] %v7007_v62 }
 0x499   : > { %v5099_v27 = vpop.eup %5098 }
 0x49a   : > { %v639_v29 = vmul.f32 %v5099_v27, %v623_v13 }
 0x49b   : > { %v5101_v28 = vpop.eup %5100 }
 0x49c   : > { %v640_v30 = vmul.f32 %v5101_v28, %v624_v2 }
 0x49e   : > { %v641_v32 = vpack.c.bf16 %v640_v30, %v639_v29 }
 0x4a0   : > { %4777 = vmatmul.mubr.msk.bf16.vlgmr.msra.gmra.mrb[4].mxu0 %vm396_vm0, %v641_v32 }
 0x4a1   : > { %4781 = vmatpush3.bf16.msra.mxu0 %v5042_v31  ;;  %4784 = vmatprep.mubr.msk.bf16.mxu0 %vm5347_vm1, %v6970_v17 }
 0x4a2   : > { %4782 = vmatprep.subr.bf16.mxu0 %v6970_v17 }
 0x4a5   : > { %4783 = vmatpush3.bf16.msra.mxu0 %v5043_v33 }
 0x4a6   : > { %4793 = vmatprep.subr.bf16.mxu0 %v6970_v17 }
 0x573   : > { %v699_v44 = vpop.f32.mrb[4].mxu0 }
 0x574   : > { %v4778_v45 = vpop.f32.mrb[5].mxu0  ;;  %v5633_v47 = vadd.f32 %v699_v44, %v649_v43 }
 0x575   : > { %v702_v46 = vpop.f32.mrb[6].mxu0 }
 0x576   : > { %v5635_v0 = vadd.f32 %v702_v46, %v649_v43  ;;  %v4779_v1 = vpop.f32.mrb[7].mxu0 }
 0x578   : > { %v706_v48 = vpack.c.bf16 %v5635_v0, %v5633_v47 }
 0x57a   : > { %4785 = vmatmul.mubr.msk.bf16.vlgmr.msra.gmra.mrb[8].mxu0 %vm396_vm0, %v706_v48 }
 0x57b   : > { %4797 = vmatprep.mubr.msk.bf16.mxu0 %vm5347_vm1, %v6970_v17 }
 0x64d   : > { %v764_v58 = vpop.f32.mrb[8].mxu0 }
 0x64e   : > { %v765_v60 = vadd.f32 %v764_v58, %v714_v57  ;;  %v4786_v61 = vpop.f32.mrb[9].mxu0  ;;  %v5044_v58 = vld [vmem:[%s6957_s5 + $0x10] sm:$0xff]  }
 0x64f   : > { %v767_v63 = vpop.f32.mrb[10].mxu0  ;;  %4794 = vmatpush3.bf16.msra.mxu0 %v5044_v58  ;;  %v1174_v61 = vmul.f32 %v5633_v47, %v5633_v47 }
 0x650   : > { %v768_v4 = vadd.f32 %v767_v63, %v714_v57  ;;  %v775_v6 = vsel %vm5667_vm10, -3.4028235e+38, %v765_v60  ;;  %v4787_v8 = vpop.f32.mrb[11].mxu0  ;;  %v5045_v60 = vld [vmem:[%s6957_s5 + $0x18] sm:$0xff]   ;;  %4795 = vmatprep.subr.bf16.mxu0 %v6970_v17 }
 0x651   : > { %v778_v10 = vsel %vm777_vm12, %v775_v6, -inf  ;;  %v1176_v63 = vmul.f32 %v1174_v61, %v5633_v47 }
 0x652   : > { %v776_v9 = vsel %vm5673_vm11, -3.4028235e+38, %v768_v4  ;;  %v1175_v4 = vmul.f32 %v5635_v0, %v5635_v0 }
 0x653   : > { %v779_v11 = vsel %vm777_vm12, %v776_v9, -inf  ;;  %4796 = vmatpush3.bf16.msra.mxu0 %v5045_v60 }
 0x654   : > { %v780_v12 = vmax.f32 %v778_v10, %v779_v11  ;;  %4814 = vmatprep.subr.bf16.mxu0 %v6970_v17  ;;  %v1177_v8 = vmul.f32 %v1175_v4, %v5635_v0 }
 0x656   : > { %v781_v13 = vrot.slane %v780_v12, 4  ;;  %v1179_v10 = vmul.f32 0.044715, %v1177_v8 }
 0x658   : > { %v782_v14 = vmax.f32 %v780_v12, %v781_v13  ;;  %v1181_v12 = vadd.f32 %v1179_v10, %v5635_v0 }
 0x65a   : > { %v783_v2 = vrot.slane %v782_v14, 2  ;;  %v1183_v13 = vmul.f32 0.7978846, %v1181_v12 }
 0x65c   : > { %v784_v15 = vmax.f32 %v782_v14, %v783_v2 }
 0x65e   : > { %v785_v3 = vrot.slane %v784_v15, 1 }
 0x660   : > { %v786_v16 = vmax.f32 %v784_v15, %v785_v3 }
 0x662   : > { %v787_v18 = vsub.f32 %v775_v6, %v786_v16  ;;  %v788_v19 = vsub.f32 %v776_v9, %v786_v16  ;;  %v1178_v6 = vmul.f32 0.044715, %v1176_v63 }
 0x664   : > { %v789_v20 = vmul.f32 1.442695, %v787_v18  ;;  %v791_v21 = vmul.f32 1.442695, %v788_v19  ;;  %v1180_v9 = vadd.f32 %v1178_v6, %v5633_v47 }
 0x666   : > { %5102 = vpow2.f32 %v789_v20  ;;  %v1182_v11 = vmul.f32 0.7978846, %v1180_v9 }
 0x667   : > { %5104 = vpow2.f32 %v791_v21 }
 0x670   : > { %v5103_v22 = vpop.eup %5102 }
 0x671   : > { %v5105_v23 = vpop.eup %5104  ;;  %v793_v24 = vsel %vm777_vm12, %v5103_v22, 0.0 }
 0x672   : > { %v794_v25 = vsel %vm777_vm12, %v5105_v23, 0.0 }
 0x673   : > { %v795_v26 = vadd.f32 %v794_v25, %v793_v24 }
 0x675   : > { %v796_v27 = vrot.slane %v795_v26, 4 }
 0x677   : > { %v797_v28 = vadd.f32 %v796_v27, %v795_v26 }
 0x679   : > { %v798_v29 = vrot.slane %v797_v28, 2 }
 0x67b   : > { %v799_v30 = vadd.f32 %v798_v29, %v797_v28 }
 0x67d   : > { %v800_v31 = vrot.slane %v799_v30, 1 }
 0x67f   : > { %v801_v32 = vadd.f32 %v800_v31, %v799_v30 }
 0x681   : > { %5106 = vrcp.f32 %v801_v32 }
 0x682   : > { %5108 = vtanh.f32 %v1182_v11 }
 0x683   : > { %5110 = vtanh.f32 %v1183_v13 }
 0x68b   : > { %v5107_v33 = vpop.eup %5106 }
 0x68c   : > { %v803_v38 = vmul.f32 %v5107_v33, %v5103_v22  ;;  %v804_v39 = vmul.f32 %v5107_v33, %v5105_v23  ;;  %v5109_v14 = vpop.eup %5108 }
 0x68d   : > { %v1186_v2 = vadd.f32 1.0, %v5109_v14  ;;  %v5111_v15 = vpop.eup %5110 }
 0x68e   : > { %4790 = vmatprep.mubr.msk.f32.mxu1 %vm777_vm12, %v803_v38  ;;  %v1187_v21 = vadd.f32 1.0, %v5111_v15 }
 0x68f   : > { %4791 = vmatmul.mubr.msk.f32.vlgmr.msra.gmra.mrb[4].mxu1 %vm777_vm12, %v804_v39  ;;  %v1188_v20 = vmul.f32 0.5, %v1186_v2 }
 0x690   : > { %4802 = vmatpush3.msk.msra.mxu1 %vm811_vm5, %v5646_v53  ;;  %v1189_v23 = vmul.f32 0.5, %v1187_v21 }
 0x691   : > { %4806 = vmatprep.subr.bf16.mxu1 %v6970_v17  ;;  %v5721_v22 = vmul.f32 %v1188_v20, %v5633_v47 }
 0x692   : > { %v5726_v24 = vmul.f32 %v1189_v23, %v5635_v0 }
 0x762   : > { %v4792_v40 = vpop.f32.mrb[4].mxu1 }
 0x763   : > { %v891_v41 = vmul.f32 %v4792_v40, %v5635_v0  ;;  %v881_v43 = vpop.f32.mrb[5].mxu1 }
 0x764   : > { %v890_v44 = vmul.f32 %v881_v43, %v5633_v47  ;;  %v5748_v43 = vsub.s32 4, %v5579_v35 }
 0x765   : > { %v893_v45 = vsel %vm396_vm0, %v891_v41, 0.0 }
 0x766   : > { %v892_v46 = vsel %vm396_vm0, %v890_v44, 0.0  ;;  %v916_v44 = vrot.slane %v5587_v37, %v5748_v43 }
 0x767   : > { %v894_v1 = vadd.f32 %v893_v45, %v892_v46 }
 0x769   : > { %v895_v48 = vrot.slane %v894_v1, 4 }
 0x76b   : > { %v896_v49 = vadd.f32 %v895_v48, %v894_v1 }
 0x76d   : > { %v897_v50 = vrot.slane %v896_v49, 2 }
 0x76f   : > { %v898_v51 = vadd.f32 %v897_v50, %v896_v49 }
 0x771   : > { %v899_v52 = vrot.slane %v898_v51, 1 }
 0x773   : > { %v900_v57 = vadd.f32 %v899_v52, %v898_v51 }
 0x775   : > { %902 = vrot.lane.b32.xlu0 %v900_v57, %s5349_s22 }
 0x7e7   : > { %v903_v3 = vpop.permute.xlu0 %902 }
 0x7e8   : > { %v5712_v16 = vmul.f32 %v903_v3, %v5633_v47  ;;  %v5715_v18 = vmul.f32 %v903_v3, %v5635_v0 }
 0x7ea   : > { %v907_v19 = vpack.c.bf16 %v5715_v18, %v5712_v16 }
 0x7ec   : > { %918 = vrot.lane.b32.xlu1 %v907_v19, %s5350_s21 }
 0x7f0   : > { %1194 = vrot.lane.b32.xlu1 %v5721_v22, %s5349_s22 }
 0x7f4   : > { %1196 = vrot.lane.b32.xlu1 %v5726_v24, %s5349_s22 }
 0x85e   : > { %v919_v25 = vpop.permute.xlu1 %918 }
 0x85f   : > { %4798 = vmatmul.mubr.msk.bf16.vlgmr.msra.gmra.mrb[12].mxu0 %vm396_vm0, %v919_v25 }
 0x860   : > { %4818 = vmatprep.mubr.msk.bf16.mxu0 %vm5347_vm1, %v6970_v17 }
 0x862   : > { %v1195_v26 = vpop.permute.xlu1 %1194 }
 0x863   : > { %v1200_v27 = vsel %vm396_vm0, %v1195_v26, 0.0 }
 0x864   : > { %1201 = vadd.xlane.f32.xlu0 %v1200_v27 }
 0x866   : > { %v1197_v28 = vpop.permute.xlu1 %1196 }
 0x867   : > { %v1203_v29 = vsel %vm396_vm0, %v1197_v28, 0.0 }
 0x868   : > { %1204 = vadd.xlane.f32.xlu1 %v1203_v29 }
 0x8f1   : > { %v1202_v30 = vpop.xlane.xlu0 %1201 }
 0x8f2   : > { %v1206_v31 = vmul.f32 0.03125, %v1202_v30 }
 0x8f4   : > { %v5736_v32 = vsub.f32 %v5721_v22, %v1206_v31 }
 0x8f5   : > { %v1205_v33 = vpop.xlane.xlu1 %1204 }
 0x8f6   : > { %v1207_v38 = vmul.f32 0.03125, %v1205_v33  ;;  %v1210_v39 = vmul.f32 %v5736_v32, %v5736_v32 }
 0x8f8   : > { %v5741_v40 = vsub.f32 %v5726_v24, %v1207_v38  ;;  %1214 = vrot.lane.b32.xlu0 %v1210_v39, %s5349_s22 }
 0x8fa   : > { %v1211_v41 = vmul.f32 %v5741_v40, %v5741_v40 }
 0x8fc   : > { %1216 = vrot.lane.b32.xlu1 %v1211_v41, %s5349_s22  ;;  %v5767_v41 = vsub.s32 7, %v5579_v35 }
 0x8fe   : > { %7009 = vst [vmem:[#allocation21_spill] sm:$0xff] %v5767_v41 }
 0x932   : > { %v969_v45 = vpop.f32.mrb[12].mxu0 }
 0x933   : > { %v970_v46 = vadd.f32 %v969_v45, %v916_v44  ;;  %v4799_v1 = vpop.f32.mrb[13].mxu0  ;;  %v4452_v45 = vld [vmem:[%s6959_s7 + $0x78] sm:$0xff] }
 0x934   : > { %v972_v48 = vpop.f32.mrb[14].mxu0  ;;  %v1247_v1 = vrot.slane %v5587_v37, %v5767_v41 }
 0x935   : > { %v976_v49 = vsel %vm5667_vm10, -3.4028235e+38, %v970_v46  ;;  %v973_v50 = vadd.f32 %v972_v48, %v916_v44  ;;  %v4800_v51 = vpop.f32.mrb[15].mxu0  ;;  %v5770_v44 = vsub.s32 6, %v5579_v35  ;;  %v4451_v46 = vld [vmem:[%s6959_s7 + $0x70] sm:$0xff] }
 0x936   : > { %v978_v57 = vsel %vm777_vm12, %v976_v49, -inf }
 0x937   : > { %v977_v52 = vsel %vm5673_vm11, -3.4028235e+38, %v973_v50  ;;  %v1237_v48 = vrot.slane %v5587_v37, %v5770_v44  ;;  %v1437_v50 = vrot.slane %v4451_v46, 7  ;;  %v4446_v46 = vld [vmem:[%s6959_s7 + $0x48] sm:$0xff] }
 0x938   : > { %v979_v58 = vsel %vm777_vm12, %v977_v52, -inf }
 0x939   : > { %v980_v60 = vmax.f32 %v978_v57, %v979_v58  ;;  %v4444_v57 = vld [vmem:[%s6959_s7 + $0x38] sm:$0xff] }
 0x93a   : > { %v1315_v58 = vrot.slane %v4444_v57, 3  ;;  %v4464_v57 = vld [vmem:[%s6959_s7 + $0xd8] sm:$0xff] }
 0x93b   : > { %v981_v61 = vrot.slane %v980_v60, 4 }
 0x93d   : > { %v982_v63 = vmax.f32 %v980_v60, %v981_v61  ;;  %v4448_v60 = vld [vmem:[%s6959_s7 + $0x58] sm:$0xff]  ;;  %v4447_v61 = vld [vmem:[%s6959_s7 + $0x50] sm:$0xff] }
 0x93f   : > { %v983_v4 = vrot.slane %v982_v63, 2 }
 0x941   : > { %v984_v6 = vmax.f32 %v982_v63, %v983_v4  ;;  %v1368_v63 = vrot.slane %v4448_v60, 5  ;;  %v4466_v60 = vld [vmem:[%s6959_s7 + $0xe8] sm:$0xff] }
 0x943   : > { %v985_v8 = vrot.slane %v984_v6, 1 }
 0x945   : > { %v986_v9 = vmax.f32 %v984_v6, %v985_v8  ;;  %v1367_v6 = vrot.slane %v4447_v61, 5  ;;  %v4465_v61 = vld [vmem:[%s6959_s7 + $0xe0] sm:$0xff] }
 0x947   : > { %v987_v10 = vsub.f32 %v976_v49, %v986_v9  ;;  %v988_v11 = vsub.f32 %v977_v52, %v986_v9  ;;  %v1438_v49 = vrot.slane %v4452_v45, 7  ;;  %v4443_v52 = vld [vmem:[%s6959_s7 + $0x30] sm:$0xff]  ;;  %v1369_v8 = vsel %vm1366_vm15, %v1367_v6, %v1368_v63  ;;  %v4449_v9 = vld [vmem:[%s6959_s7 + $0x60] sm:$0xff] }
 0x948   : > { %v1314_v37 = vrot.slane %v4443_v52, 3  ;;  %v4463_v52 = vld [vmem:[%s6959_s7 + $0xd0] sm:$0xff] }
 0x949   : > { %v989_v12 = vmul.f32 1.442695, %v987_v10  ;;  %v991_v13 = vmul.f32 1.442695, %v988_v11  ;;  %v1439_v51 = vsel %vm1436_vm13, %v1437_v50, %v1438_v49  ;;  %v4450_v10 = vld [vmem:[%s6959_s7 + $0x68] sm:$0xff]  ;;  %v1402_v11 = vrot.slane %v4449_v9, 6 }
 0x94a   : > { %v1316_v4 = vsel %vm1313_vm14, %v1314_v37, %v1315_v58  ;;  %v4455_v9 = vld [vmem:[%s6959_s7 + $0x90] sm:$0xff] }
 0x94b   : > { %5112 = vpow2.f32 %v989_v12  ;;  %v1403_v12 = vrot.slane %v4450_v10, 6  ;;  %v4456_v10 = vld [vmem:[%s6959_s7 + $0x98] sm:$0xff] }
 0x94c   : > { %5114 = vpow2.f32 %v991_v13  ;;  %v4468_v13 = vld [vmem:[%s6959_s7 + $0xf8] sm:$0xff] }
 0x955   : > { %v5113_v14 = vpop.eup %5112 }
 0x956   : > { %v5115_v2 = vpop.eup %5114  ;;  %v993_v15 = vsel %vm777_vm12, %v5113_v14, 0.0 }
 0x957   : > { %v994_v3 = vsel %vm777_vm12, %v5115_v2, 0.0 }
 0x958   : > { %v995_v19 = vadd.f32 %v994_v3, %v993_v15  ;;  %v1404_v15 = vsel %vm1401_vm3, %v1402_v11, %v1403_v12 }
 0x95a   : > { %v996_v20 = vrot.slane %v995_v19, 4 }
 0x95c   : > { %v997_v21 = vadd.f32 %v996_v20, %v995_v19  ;;  %v4459_v20 = vld [vmem:[%s6959_s7 + $0xb0] sm:$0xff] }
 0x95e   : > { %v998_v23 = vrot.slane %v997_v21, 2 }
 0x960   : > { %v999_v25 = vadd.f32 %v998_v23, %v997_v21  ;;  %v4460_v21 = vld [vmem:[%s6959_s7 + $0xb8] sm:$0xff]  ;;  %v1532_v23 = vrot.slane %v4459_v20, 3  ;;  %v1254_v20 = vld [vmem:[%s6959_s7] sm:$0xff] }
 0x962   : > { %v1000_v26 = vrot.slane %v999_v25, 1 }
 0x964   : > { %v1001_v27 = vadd.f32 %v1000_v26, %v999_v25  ;;  %v1533_v25 = vrot.slane %v4460_v21, 3  ;;  %v4440_v26 = vld [vmem:[%s6959_s7 + $0x18] sm:$0xff]  ;;  %v4461_v21 = vld [vmem:[%s6959_s7 + $0xc0] sm:$0xff] }
 0x966   : > { %5116 = vrcp.f32 %v1001_v27  ;;  %v4439_v27 = vld [vmem:[%s6959_s7 + $0x10] sm:$0xff] }
 0x96a   : > { %v1215_v28 = vpop.permute.xlu0 %1214 }
 0x96b   : > { %v1220_v29 = vsel %vm396_vm0, %v1215_v28, 0.0  ;;  %v1273_v28 = vrot.slane %v4440_v26, 1  ;;  %v1255_v26 = vld [vmem:[%s6959_s7 + $0x8] sm:$0xff] }
 0x96c   : > { %1221 = vadd.xlane.f32.xlu0 %v1220_v29  ;;  %v1534_v29 = vsel %vm1313_vm14, %v1532_v23, %v1533_v25 }
 0x96e   : > { %v1217_v30 = vpop.permute.xlu1 %1216 }
 0x96f   : > { %v1223_v31 = vsel %vm396_vm0, %v1217_v30, 0.0  ;;  %v1272_v30 = vrot.slane %v4439_v27, 1 }
 0x970   : > { %v5117_v33 = vpop.eup %5116  ;;  %1224 = vadd.xlane.f32.xlu1 %v1223_v31 }
 0x971   : > { %v1003_v38 = vmul.f32 %v5117_v33, %v5113_v14  ;;  %v1004_v39 = vmul.f32 %v5117_v33, %v5115_v2  ;;  %v4467_v14 = vld [vmem:[%s6959_s7 + $0xf0] sm:$0xff]  ;;  %v1656_v2 = vrot.slane %v4468_v13, 7  ;;  %v1274_v31 = vsel %vm1271_vm4, %v1272_v30, %v1273_v28  ;;  %v4441_v33 = vld [vmem:[%s6959_s7 + $0x20] sm:$0xff]  ;;  %v4458_v13 = vld [vmem:[%s6959_s7 + $0xa8] sm:$0xff] }
 0x972   : > { %v1655_v3 = vrot.slane %v4467_v14, 7  ;;  %v4457_v14 = vld [vmem:[%s6959_s7 + $0xa0] sm:$0xff] }
 0x973   : > { %4803 = vmatprep.mubr.msk.f32.mxu1 %vm777_vm12, %v1003_v38  ;;  %v4442_v38 = vld [vmem:[%s6959_s7 + $0x28] sm:$0xff] }
 0x974   : > { %4804 = vmatmul.mubr.msk.f32.vlgmr.msra.gmra.mrb[6].mxu1 %vm777_vm12, %v1004_v39  ;;  %v1657_v19 = vsel %vm1436_vm13, %v1655_v3, %v1656_v2  ;;  %v1293_v39 = vrot.slane %v4441_v33, 2  ;;  %v1294_v45 = vrot.slane %v4442_v38, 2 }
 0x975   : > { %4810 = vmatprep.mubr.msk.bf16.mxu1 %vm5347_vm1, %v6970_v17 }
 0x981   : > { %1249 = vrot.lane.b32.xlu1 %v1247_v1, %s5350_s21  ;;  %v4445_v1 = vld [vmem:[%s6959_s7 + $0x40] sm:$0xff] }
 0x982   : > { %1239 = vrot.lane.b32.xlu0 %v1237_v48, %s5350_s21  ;;  %v1335_v48 = vrot.slane %v4446_v46, 4 }
 0x985   : > { %1442 = vrot.lane.b32.xlu1 %v1439_v51, %s5350_s21 }
 0x986   : > { %1440 = vrot.lane.b32.xlu0 %v1437_v50, %s5350_s21  ;;  %v1334_v50 = vrot.slane %v4445_v1, 4 }
 0x988   : > { %v1336_v51 = vsel %vm811_vm5, %v1334_v50, %v1335_v48 }
 0x989   : > { %1317 = vrot.lane.b32.xlu1 %v1314_v37, %s5350_s21  ;;  %v1587_v37 = vrot.slane %v4463_v52, 5 }
 0x98a   : > { %1444 = vrot.lane.b32.xlu0 %v1438_v49, %s5350_s21  ;;  %v1295_v49 = vsel %vm1292_vm6, %v1293_v39, %v1294_v45 }
 0x98d   : > { %1321 = vrot.lane.b32.xlu1 %v1315_v58, %s5350_s21  ;;  %v1588_v58 = vrot.slane %v4464_v57, 5 }
 0x98e   : > { %1319 = vrot.lane.b32.xlu0 %v1316_v4, %s5350_s21 }
 0x98f   : > { %v1589_v4 = vsel %vm1366_vm15, %v1587_v37, %v1588_v58 }
 0x991   : > { %1372 = vrot.lane.b32.xlu1 %v1369_v8, %s5350_s21 }
 0x992   : > { %1370 = vrot.lane.b32.xlu0 %v1367_v6, %s5350_s21  ;;  %v1621_v6 = vrot.slane %v4465_v61, 6 }
 0x995   : > { %1405 = vrot.lane.b32.xlu1 %v1402_v11, %s5350_s21  ;;  %v1486_v11 = vrot.slane %v4455_v9, 1 }
 0x996   : > { %1374 = vrot.lane.b32.xlu0 %v1368_v63, %s5350_s21  ;;  %v1622_v63 = vrot.slane %v4466_v60, 6 }
 0x998   : > { %v1623_v8 = vsel %vm1401_vm3, %v1621_v6, %v1622_v63 }
 0x999   : > { %1409 = vrot.lane.b32.xlu1 %v1403_v12, %s5350_s21  ;;  %v1487_v12 = vrot.slane %v4456_v10, 1 }
 0x99a   : > { %1407 = vrot.lane.b32.xlu0 %v1404_v15, %s5350_s21 }
 0x99b   : > { %v1488_v15 = vsel %vm1271_vm4, %v1486_v11, %v1487_v12 }
 0x99d   : > { %1660 = vrot.lane.b32.xlu1 %v1657_v19, %s5350_s21 }
 0x99e   : > { %1658 = vrot.lane.b32.xlu0 %v1655_v3, %s5350_s21  ;;  %v1509_v3 = vrot.slane %v4457_v14, 2 }
 0x9a1   : > { %1535 = vrot.lane.b32.xlu1 %v1532_v23, %s5350_s21  ;;  %v4462_v23 = vld [vmem:[%s6959_s7 + $0xc8] sm:$0xff] }
 0x9a2   : > { %1662 = vrot.lane.b32.xlu0 %v1656_v2, %s5350_s21  ;;  %v1510_v2 = vrot.slane %v4458_v13, 2  ;;  %v1556_v27 = vrot.slane %v4462_v23, 4 }
 0x9a4   : > { %v1511_v19 = vsel %vm1292_vm6, %v1509_v3, %v1510_v2 }
 0x9a5   : > { %1539 = vrot.lane.b32.xlu1 %v1533_v25, %s5350_s21  ;;  %v1555_v25 = vrot.slane %v4461_v21, 4 }
 0x9a6   : > { %1537 = vrot.lane.b32.xlu0 %v1534_v29, %s5350_s21  ;;  %v4454_v29 = vld [vmem:[%s6959_s7 + $0x88] sm:$0xff] }
 0x9a9   : > { %1277 = vrot.lane.b32.xlu1 %v1274_v31, %s5350_s21  ;;  %v4453_v31 = vld [vmem:[%s6959_s7 + $0x80] sm:$0xff] }
 0x9aa   : > { %1275 = vrot.lane.b32.xlu0 %v1272_v30, %s5350_s21  ;;  %v5932_v30 = vld [vmem:[%s6958_s6 + $0x8] sm:$0xff] }
 0x9ab   : > { %v1725_v33 = vrot.slane %v5932_v30, %v5629_v42 }
 0x9ad   : > { %1296 = vrot.lane.b32.xlu1 %v1293_v39, %s5350_s21 }
 0x9ae   : > { %1279 = vrot.lane.b32.xlu0 %v1273_v28, %s5350_s21  ;;  %v1557_v28 = vsel %vm811_vm5, %v1555_v25, %v1556_v27 }
 0x9b1   : > { %1300 = vrot.lane.b32.xlu1 %v1294_v45, %s5350_s21 }
 0x9b2   : > { %1298 = vrot.lane.b32.xlu0 %v1295_v49, %s5350_s21 }
 0x9b5   : > { %1339 = vrot.lane.b32.xlu1 %v1336_v51, %s5350_s21 }
 0x9b6   : > { %1337 = vrot.lane.b32.xlu0 %v1334_v50, %s5350_s21 }
 0x9b9   : > { %1590 = vrot.lane.b32.xlu1 %v1587_v37, %s5350_s21 }
 0x9ba   : > { %1341 = vrot.lane.b32.xlu0 %v1335_v48, %s5350_s21 }
 0x9bd   : > { %1594 = vrot.lane.b32.xlu1 %v1588_v58, %s5350_s21 }
 0x9be   : > { %1592 = vrot.lane.b32.xlu0 %v1589_v4, %s5350_s21 }
 0x9c1   : > { %1626 = vrot.lane.b32.xlu1 %v1623_v8, %s5350_s21 }
 0x9c2   : > { %1624 = vrot.lane.b32.xlu0 %v1621_v6, %s5350_s21 }
 0x9c5   : > { %1489 = vrot.lane.b32.xlu1 %v1486_v11, %s5350_s21 }
 0x9c6   : > { %1628 = vrot.lane.b32.xlu0 %v1622_v63, %s5350_s21 }
 0x9c9   : > { %1493 = vrot.lane.b32.xlu1 %v1487_v12, %s5350_s21 }
 0x9ca   : > { %1491 = vrot.lane.b32.xlu0 %v1488_v15, %s5350_s21 }
 0x9cd   : > { %1514 = vrot.lane.b32.xlu1 %v1511_v19, %s5350_s21 }
 0x9ce   : > { %1512 = vrot.lane.b32.xlu0 %v1509_v3, %s5350_s21 }
 0x9d1   : > { %1258 = vrot.lane.b32.xlu1 %v1254_v20, %s5350_s21 }
 0x9d2   : > { %1516 = vrot.lane.b32.xlu0 %v1510_v2, %s5350_s21 }
 0x9d5   : > { %1558 = vrot.lane.b32.xlu1 %v1555_v25, %s5350_s21 }
 0x9d6   : > { %1260 = vrot.lane.b32.xlu0 %v1255_v26, %s5350_s21 }
 0x9d9   : > { %1562 = vrot.lane.b32.xlu1 %v1556_v27, %s5350_s21 }
 0x9da   : > { %1560 = vrot.lane.b32.xlu0 %v1557_v28, %s5350_s21 }
 0x9dd   : > { %1473 = vrot.lane.b32.xlu1 %v4454_v29, %s5350_s21 }
 0x9de   : > { %1471 = vrot.lane.b32.xlu0 %v4453_v31, %s5350_s21 }
 0x9e2   : > { %1727 = vrot.lane.b32.xlu0 %v1725_v33, %s5350_s21 }
 0x9f9   : > { %v1222_v38 = vpop.xlane.xlu0 %1221 }
 0x9fa   : > { %v1226_v61 = vmul.f32 0.03125, %v1222_v38 }
 0x9fc   : > { %v1228_v8 = vadd.f32 1e-05, %v1226_v61 }
 0x9fd   : > { %v1240_v39 = vpop.permute.xlu0 %1239  ;;  %v1225_v45 = vpop.xlane.xlu1 %1224 }
 0x9fe   : > { %v1227_v60 = vmul.f32 0.03125, %v1225_v45 }
 0xa00   : > { %v1229_v6 = vadd.f32 1e-05, %v1227_v60 }
 0xa01   : > { %v1441_v46 = vpop.permute.xlu0 %1440  ;;  %v1250_v1 = vpop.permute.xlu1 %1249 }
 0xa02   : > { %5118 = vrsqrt.f32 %v1229_v6 }
 0xa03   : > { %5120 = vrsqrt.f32 %v1228_v8 }
 0xa05   : > { %v1445_v48 = vpop.permute.xlu0 %1444  ;;  %v1443_v49 = vpop.permute.xlu1 %1442 }
 0xa09   : > { %v1320_v50 = vpop.permute.xlu0 %1319  ;;  %v1318_v51 = vpop.permute.xlu1 %1317 }
 0xa0c   : > { %v5119_v2 = vpop.eup %5118 }
 0xa0d   : > { %v5942_v52 = vpop.permute.xlu0 %1370  ;;  %v1322_v57 = vpop.permute.xlu1 %1321  ;;  %v1233_v20 = vmul.f32 %v5119_v2, %v5741_v40 }
 0xa0e   : > { %v5121_v19 = vpop.eup %5120 }
 0xa0f   : > { %v1232_v21 = vmul.f32 %v5121_v19, %v5736_v32  ;;  %v1243_v26 = vmul.f32 %v1240_v39, %v1233_v20 }
 0xa11   : > { %v5944_v37 = vpop.permute.xlu0 %1374  ;;  %v5946_v58 = vpop.permute.xlu1 %1372  ;;  %v1242_v27 = vmul.f32 %v1240_v39, %v1232_v21  ;;  %v5962_v31 = vadd.f32 %v1250_v1, %v1243_v26 }
 0xa13   : > { %v5964_v33 = vadd.f32 %v1250_v1, %v1242_v27  ;;  %v1449_v32 = vmul.f32 %v1441_v46, %v5962_v31  ;;  %v1451_v6 = vmul.f32 %v1445_v48, %v5962_v31 }
 0xa15   : > { %v1408_v63 = vpop.permute.xlu0 %1407  ;;  %v5948_v4 = vpop.permute.xlu1 %1405  ;;  %v1450_v40 = vmul.f32 %v1443_v49, %v5964_v33  ;;  %v1455_v39 = vrot.slane %v1449_v32, 4  ;;  %v1327_v19 = vmul.f32 %v1320_v50, %v5964_v33  ;;  %v1458_v21 = vrot.slane %v1451_v6, 4 }
 0xa16   : > { %v1326_v49 = vmul.f32 %v1318_v51, %v5962_v31  ;;  %v1328_v51 = vmul.f32 %v1322_v57, %v5962_v31 }
 0xa17   : > { %v1456_v8 = vrot.slane %v1450_v40, 4 }
 0xa18   : > { %v1463_v55 = vadd.f32 %v1455_v39, %v1326_v49 }
 0xa19   : > { %v1659_v9 = vpop.permute.xlu0 %1658  ;;  %v1410_v10 = vpop.permute.xlu1 %1409  ;;  %v1457_v20 = vsel %vm811_vm5, %v1455_v39, %v1456_v8  ;;  %v1459_v50 = vsel %vm811_vm5, %v1456_v8, %v1458_v21  ;;  %v1381_v39 = vmul.f32 %v5944_v37, %v5962_v31  ;;  %v1380_v8 = vmul.f32 %v5946_v58, %v5964_v33 }
 0xa1a   : > { %v1667_v48 = vmul.f32 %v1659_v9, %v5964_v33  ;;  %v1464_v17 = vadd.f32 %v1457_v20, %v1327_v19  ;;  %v1379_v9 = vmul.f32 %v5942_v52, %v5962_v31  ;;  %v1416_v57 = vmul.f32 %v1410_v10, %v5962_v31 }
 0xa1b   : > { %v1386_v58 = vrot.slane %v1380_v8, 4 }
 0xa1c   : > { %v1673_v59 = vrot.slane %v1667_v48, 4  ;;  %v1385_v49 = vrot.slane %v1379_v9, 4  ;;  %v1423_v48 = vrot.slane %v1416_v57, 4 }
 0xa1d   : > { %v1663_v11 = vpop.permute.xlu0 %1662  ;;  %v1661_v12 = vpop.permute.xlu1 %1660 }
 0xa1e   : > { %v1668_v46 = vmul.f32 %v1661_v12, %v5962_v31  ;;  %v1669_v62 = vmul.f32 %v1663_v11, %v5964_v33  ;;  %v1415_v11 = vmul.f32 %v1408_v63, %v5964_v33  ;;  %v1387_v8 = vsel %vm811_vm5, %v1385_v49, %v1386_v58 }
 0xa20   : > { %v1674_v54 = vrot.slane %v1668_v46, 4  ;;  %v1676_v19 = vrot.slane %v1669_v62, 4  ;;  %v1421_v63 = vrot.slane %v1415_v11, 4 }
 0xa21   : > { %v1538_v13 = vpop.permute.xlu0 %1537  ;;  %v1536_v14 = vpop.permute.xlu1 %1535 }
 0xa22   : > { %v1545_v26 = vmul.f32 %v1538_v13, %v5962_v31  ;;  %v1544_v27 = vmul.f32 %v1536_v14, %v5964_v33 }
 0xa24   : > { %v1548_v12 = vadd.f32 %v1545_v26, %v1464_v17  ;;  %v1547_v6 = vadd.f32 %v1544_v27, %v1463_v55  ;;  %v1465_v17 = vadd.f32 %v1459_v50, %v1328_v51  ;;  %v1414_v55 = vmul.f32 %v5948_v4, %v5962_v31 }
 0xa25   : > { %v5950_v15 = vpop.permute.xlu0 %1275  ;;  %v1540_v3 = vpop.permute.xlu1 %1539  ;;  %v1388_v26 = vrot.slane %v1381_v39, 4 }
 0xa26   : > { %v1546_v13 = vmul.f32 %v1540_v3, %v5964_v33  ;;  %v1675_v3 = vsel %vm811_vm5, %v1673_v59, %v1674_v54  ;;  %v6007_v52 = vadd.f32 %v1673_v59, %v1547_v6  ;;  %v1420_v27 = vrot.slane %v1414_v55, 4 }
 0xa27   : > { %v6005_v20 = vadd.f32 %v1675_v3, %v1548_v12  ;;  %v1284_v62 = vmul.f32 %v5950_v15, %v5962_v31  ;;  %v1677_v59 = vsel %vm811_vm5, %v1674_v54, %v1676_v19  ;;  %v1389_v11 = vsel %vm811_vm5, %v1386_v58, %v1388_v26 }
 0xa28   : > { %v1549_v46 = vadd.f32 %v1546_v13, %v1465_v17  ;;  %v6981_v10 = vrot.slane %v6007_v52, 7  ;;  %v1422_v15 = vsel %vm811_vm5, %v1420_v27, %v1421_v63  ;;  %v1424_v17 = vsel %vm811_vm5, %v1421_v63, %v1423_v48 }
 0xa29   : > { %v5954_v23 = vpop.permute.xlu0 %1279  ;;  %v5956_v25 = vpop.permute.xlu1 %1277  ;;  %v6980_v4 = vrot.slane %v6005_v20, 7  ;;  %v1393_v55 = vadd.f32 %v1385_v49, %v1284_v62 }
 0xa2a   : > { %v6018_v6 = vadd.f32 %v1677_v59, %v1549_v46  ;;  %v1285_v51 = vmul.f32 %v5956_v25, %v5964_v33  ;;  %v1286_v25 = vmul.f32 %v5954_v23, %v5962_v31 }
 0xa2c   : > { %v1394_v19 = vadd.f32 %v1387_v8, %v1285_v51 }
 0xa2d   : > { %v5958_v28 = vpop.permute.xlu0 %1298  ;;  %v5960_v29 = vpop.permute.xlu1 %1296 }
 0xa2e   : > { %v1306_v13 = vmul.f32 %v5958_v28, %v5964_v33  ;;  %v1305_v54 = vmul.f32 %v5960_v29, %v5962_v31  ;;  %v1701_v28 = vsel %vm1436_vm13, %v6981_v10, %v6980_v4 }
 0xa30   : > { %v1429_v46 = vadd.f32 %v1422_v15, %v1306_v13  ;;  %v1428_v48 = vadd.f32 %v1420_v27, %v1305_v54 }
 0xa31   : > { %v5966_v38 = vpop.permute.xlu0 %1337  ;;  %v5968_v45 = vpop.permute.xlu1 %1300 }
 0xa32   : > { %v1307_v29 = vmul.f32 %v5968_v45, %v5962_v31 }
 0xa34   : > { %v1430_v8 = vadd.f32 %v1424_v17, %v1307_v29  ;;  %v1395_v29 = vadd.f32 %v1389_v11, %v1286_v25 }
 0xa35   : > { %v5972_v60 = vpop.permute.xlu0 %1341  ;;  %v5974_v61 = vpop.permute.xlu1 %1339 }
 0xa36   : > { %v1347_v45 = vmul.f32 %v5974_v61, %v5964_v33 }
 0xa39   : > { %v5977_v2 = vpop.permute.xlu0 %1592  ;;  %v5979_v1 = vpop.permute.xlu1 %1590 }
 0xa3a   : > { %v1600_v23 = vmul.f32 %v5977_v2, %v5962_v31 }
 0xa3c   : > { %v1606_v54 = vrot.slane %v1600_v23, 4 }
 0xa3d   : > { %v1625_v32 = vpop.permute.xlu0 %1624  ;;  %v5988_v40 = vpop.permute.xlu1 %1594 }
 0xa3e   : > { %v1633_v26 = vmul.f32 %v1625_v32, %v5964_v33  ;;  %v1601_v2 = vmul.f32 %v5988_v40, %v5964_v33  ;;  %v1346_v32 = vmul.f32 %v5966_v38, %v5962_v31 }
 0xa40   : > { %v1608_v10 = vrot.slane %v1601_v2, 4 }
 0xa41   : > { %v1629_v14 = vpop.permute.xlu0 %1628  ;;  %v1627_v42 = vpop.permute.xlu1 %1626 }
 0xa42   : > { %v1634_v57 = vmul.f32 %v1627_v42, %v5962_v31  ;;  %v1599_v42 = vmul.f32 %v5979_v1, %v5964_v33  ;;  %v1635_v13 = vmul.f32 %v1629_v14, %v5964_v33  ;;  %v1609_v11 = vsel %vm811_vm5, %v1606_v54, %v1608_v10 }
 0xa43   : > { %v7010_v10 = vrot.slane %v6007_v52, 7 }
 0xa44   : > { %v1640_v1 = vrot.slane %v1634_v57, 4  ;;  %v1605_v61 = vrot.slane %v1599_v42, 4  ;;  %v1353_v57 = vrot.slane %v1347_v45, 4  ;;  %v1642_v38 = vrot.slane %v1635_v13, 4 }
 0xa45   : > { %v1492_v37 = vpop.permute.xlu0 %1491  ;;  %v1490_v21 = vpop.permute.xlu1 %1489 }
 0xa46   : > { %v1499_v62 = vmul.f32 %v1492_v37, %v5962_v31  ;;  %v1498_v59 = vmul.f32 %v1490_v21, %v5964_v33  ;;  %v1643_v25 = vsel %vm811_vm5, %v1640_v1, %v1642_v38 }
 0xa47   : > { %v6009_v50 = vpop.f32.mrb[6].mxu1 }
 0xa48   : > { %v6016_v12 = vpop.f32.mrb[7].mxu1  ;;  %v1502_v4 = vadd.f32 %v1499_v62, %v1394_v19  ;;  %v1501_v40 = vadd.f32 %v1498_v59, %v1393_v55 }
 0xa49   : > { %v1513_v9 = vpop.permute.xlu0 %1512  ;;  %v1494_v39 = vpop.permute.xlu1 %1493 }
 0xa4a   : > { %v1521_v51 = vmul.f32 %v1513_v9, %v5964_v33  ;;  %v1348_v9 = vmul.f32 %v5972_v60, %v5962_v31  ;;  %v1500_v14 = vmul.f32 %v1494_v39, %v5964_v33  ;;  %v1607_v60 = vsel %vm811_vm5, %v1605_v61, %v1606_v54 }
 0xa4b   : > { %v1614_v39 = vadd.f32 %v1607_v60, %v1502_v4  ;;  %v1613_v42 = vadd.f32 %v1605_v61, %v1501_v40 }
 0xa4c   : > { %v1524_v3 = vadd.f32 %v1521_v51, %v1428_v48  ;;  %v1503_v48 = vadd.f32 %v1500_v14, %v1395_v29  ;;  %v1355_v62 = vrot.slane %v1348_v9, 4  ;;  %v7011_v9 = vrot.slane %v6018_v6, 7 }
 0xa4d   : > { %v1517_v58 = vpop.permute.xlu0 %1516  ;;  %v1515_v49 = vpop.permute.xlu1 %1514 }
 0xa4e   : > { %v1522_v63 = vmul.f32 %v1515_v49, %v5962_v31  ;;  %v1523_v27 = vmul.f32 %v1517_v58, %v5964_v33  ;;  %v1639_v49 = vrot.slane %v1633_v26, 4  ;;  %v1356_v61 = vsel %vm811_vm5, %v1353_v57, %v1355_v62 }
 0xa50   : > { %v1525_v37 = vadd.f32 %v1522_v63, %v1429_v46  ;;  %v1641_v17 = vsel %vm811_vm5, %v1639_v49, %v1640_v1  ;;  %v1352_v46 = vrot.slane %v1346_v32, 4  ;;  %v1526_v58 = vadd.f32 %v1523_v27, %v1430_v8 }
 0xa51   : > { %v1261_v15 = vpop.permute.xlu0 %1260  ;;  %v1259_v21 = vpop.permute.xlu1 %1258  ;;  %v1647_v26 = vadd.f32 %v1639_v49, %v1524_v3  ;;  %v1688_v27 = vrot.slane %v1614_v39, 7 }
 0xa52   : > { %v1648_v63 = vadd.f32 %v1641_v17, %v1525_v37  ;;  %v1264_v23 = vmul.f32 %v1259_v21, %v5964_v33  ;;  %v1354_v59 = vsel %vm811_vm5, %v1352_v46, %v1353_v57  ;;  %v1649_v51 = vadd.f32 %v1643_v25, %v1526_v58 }
 0xa53   : > { %v1687_v37 = vrot.slane %v1613_v42, 7  ;;  %v1707_v1 = vadd.f32 %v7010_v10, %v1647_v26  ;;  %v1615_v21 = vadd.f32 %v1609_v11, %v1503_v48 }
 0xa54   : > { %v1708_v45 = vadd.f32 %v1701_v28, %v1648_v63  ;;  %v7012_v28 = vrot.slane %v6005_v20, 7 }
 0xa55   : > { %v1561_v53 = vpop.permute.xlu0 %1560  ;;  %v1559_v41 = vpop.permute.xlu1 %1558  ;;  %v1713_v46 = vrot.slane %v1707_v1, 6  ;;  %v1690_v58 = vrot.slane %v1615_v21, 7  ;;  %v1689_v6 = vsel %vm1436_vm13, %v1687_v37, %v1688_v27 }
 0xa56   : > { %v1568_v55 = vmul.f32 %v1561_v53, %v5962_v31  ;;  %v1567_v19 = vmul.f32 %v1559_v41, %v5964_v33  ;;  %v1265_v53 = vmul.f32 %v1261_v15, %v5962_v31  ;;  %v1359_v41 = vadd.f32 %v1354_v59, %v1264_v23 }
 0xa57   : > { %v1703_v54 = vsel %vm1436_vm13, %v7012_v28, %v7011_v9  ;;  %v1714_v40 = vrot.slane %v1708_v45, 6  ;;  %v1691_v42 = vsel %vm1436_vm13, %v1688_v27, %v1690_v58  ;;  %v5047_v27 = vld [vmem:[%s6954_s2 + $0x8] sm:$0xff]   ;;  %v5050_v58 = vld [vmem:[%s6954_s2 + $0x20] sm:$0xff]  }
 0xa58   : > { %v1574_v2 = vrot.slane %v1568_v55, 4  ;;  %v1573_v13 = vrot.slane %v1567_v19, 4  ;;  %v1709_v49 = vadd.f32 %v1703_v54, %v1649_v51  ;;  %v1360_v17 = vadd.f32 %v1356_v61, %v1265_v53 }
 0xa59   : > { %v1472_v32 = vpop.permute.xlu0 %1471  ;;  %v1563_v8 = vpop.permute.xlu1 %1562  ;;  %v1715_v55 = vsel %vm1401_vm3, %v1713_v46, %v1714_v40 }
 0xa5a   : > { %v1477_v4 = vmul.f32 %v1472_v32, %v5962_v31  ;;  %v1569_v3 = vmul.f32 %v1563_v8, %v5964_v33  ;;  %v1575_v31 = vsel %vm811_vm5, %v1573_v13, %v1574_v2  ;;  %v1716_v60 = vrot.slane %v1709_v49, 6 }
 0xa5c   : > { %v1479_v15 = vadd.f32 %v1477_v4, %v1359_v41  ;;  %v1576_v14 = vrot.slane %v1569_v3, 4  ;;  %v5046_v4 = vld [vmem:[%s6954_s2] sm:$0xff]   ;;  %v7013_v3 = vmov 0.0  }
 0xa5d   : > { %v1474_v38 = vpop.permute.xlu1 %1473  ;;  %v1728_v23 = vpop.permute.xlu0 %1727  ;;  %4807 = vmatpush3.bf16.msra.mxu1 %v5046_v4 }
 0xa5e   : > { %v1580_v29 = vadd.f32 %v1575_v31, %v1479_v15  ;;  %v1478_v52 = vmul.f32 %v1474_v38, %v5964_v33  ;;  %v1577_v57 = vsel %vm811_vm5, %v1574_v2, %v1576_v14  ;;  %v1717_v33 = vsel %vm1401_vm3, %v1714_v40, %v1716_v60  ;;  %4808 = vmatprep.subr.bf16.mxu1 %v7013_v3 }
 0xa5f   : > { %v6141_v60 = vsub.s32 5, %v5579_v35  ;;  %v1825_v35 = vld [vmem:[%s6960_s8] sm:$0xff] }
 0xa60   : > { %v1480_v20 = vadd.f32 %v1478_v52, %v1360_v17  ;;  %v1694_v63 = vadd.f32 %v1689_v6, %v1580_v29  ;;  %v5051_v6 = vld [vmem:[%s6954_s2 + $0x28] sm:$0xff]  }
 0xa61   : > { %4809 = vmatpush3.bf16.msra.mxu1 %v5047_v27 }
 0xa62   : > { %v1581_v19 = vadd.f32 %v1577_v57, %v1480_v20  ;;  %v1720_v39 = vadd.f32 %v1715_v55, %v1694_v63  ;;  %4822 = vmatprep.subr.bf16.mxu1 %v7013_v3  ;;  %v5052_v20 = vld [vmem:[%s6954_s2 + $0x30] sm:$0xff]   ;;  %v5053_v63 = vld [vmem:[%s6954_s2 + $0x38] sm:$0xff]   ;;  %v5210_v57 = vld [vmem:[%s6958_s6] sm:$0xff] }
 0xa63   : > { %v4480_v55 = vld [vmem:[%s6960_s8 + $0x20] sm:$0xff] }
 0xa64   : > { %v1695_v26 = vadd.f32 %v1691_v42, %v1581_v19  ;;  %v1730_v48 = vadd.f32 %v1728_v23, %v1720_v39  ;;  %v4481_v19 = vld [vmem:[%s6960_s8 + $0x28] sm:$0xff] }
 0xa66   : > { %v1721_v62 = vadd.f32 %v1717_v33, %v1695_v26  ;;  %v4469_v11 = vmul.f32 -1.442695, %v1730_v48  ;;  %v1826_v26 = vld [vmem:[%s6960_s8 + $0x8] sm:$0xff]  ;;  %v1849_v33 = vrot.slane %v4481_v19, 7  ;;  %v4487_v19 = vld [vmem:[%s6960_s8 + $0x58] sm:$0xff] }
 0xa68   : > { %v1731_v25 = vadd.f32 %v1728_v23, %v1721_v62  ;;  %5122 = vpow2.f32 %v4469_v11  ;;  %v1115_v23 = vrot.slane %v5210_v57, %v6141_v60  ;;  %v4478_v11 = vld [vmem:[%s6960_s8 + $0x10] sm:$0xff] }
 0xa6a   : > { %v4470_v59 = vmul.f32 -1.442695, %v1731_v25 }
 0xa6c   : > { %5124 = vpow2.f32 %v4470_v59 }
 0xa72   : > { %v5123_v51 = vpop.eup %5122 }
 0xa73   : > { %v1738_v45 = vadd.f32 1.0, %v5123_v51 }
 0xa75   : > { %5126 = vrcp.f32 %v1738_v45 }
 0xa76   : > { %v5125_v2 = vpop.eup %5124 }
 0xa77   : > { %v1739_v13 = vadd.f32 1.0, %v5125_v2  ;;  %v1829_v2 = vrot.slane %v1825_v35, 1  ;;  %v4483_v35 = vld [vmem:[%s6960_s8 + $0x38] sm:$0xff] }
 0xa79   : > { %5128 = vrcp.f32 %v1739_v13  ;;  %v1830_v13 = vrot.slane %v1826_v26, 1 }
 0xa7f   : > { %v5127_v32 = vpop.eup %5126 }
 0xa80   : > { %v1744_v8 = vmul.f32 %v5127_v32, %v1730_v48  ;;  %v1848_v48 = vrot.slane %v4480_v55, 7  ;;  %v4486_v55 = vld [vmem:[%s6960_s8 + $0x50] sm:$0xff] }
 0xa81   : > { %v1913_v26 = vrot.slane %v4486_v55, 7 }
 0xa82   : > { %1748 = vrot.lane.b32.xlu1 %v1744_v8, %s5350_s21  ;;  %v1850_v4 = vsel %vm1436_vm13, %v1848_v48, %v1849_v33 }
 0xa83   : > { %v5129_v53 = vpop.eup %5128 }
 0xa84   : > { %v1745_v41 = vmul.f32 %v5129_v53, %v1731_v25 }
 0xa86   : > { %1088 = vrot.lane.b32.xlu1 %v5712_v16, %s5350_s21  ;;  %1750 = vrot.lane.b32.xlu0 %v1745_v41, %s5350_s21  ;;  %v5048_v16 = vld [vmem:[%s6954_s2 + $0x10] sm:$0xff]   ;;  %v4479_v41 = vld [vmem:[%s6960_s8 + $0x18] sm:$0xff] }
 0xa87   : > { %4815 = vmatpush3.bf16.msra.mxu0 %v5048_v16 }
 0xa88   : > { %4816 = vmatprep.subr.bf16.mxu0 %v7013_v3 }
 0xa8a   : > { %1090 = vrot.lane.b32.xlu0 %v5715_v18, %s5350_s21  ;;  %v5049_v18 = vld [vmem:[%s6954_s2 + $0x18] sm:$0xff]  }
 0xa8b   : > { %4817 = vmatpush3.bf16.msra.mxu0 %v5049_v18  ;;  %v1831_v18 = vsel %vm1271_vm4, %v1829_v2, %v1830_v13 }
 0xa8c   : > { %4830 = vmatprep.subr.bf16.mxu0 %v7013_v3 }
 0xaf4   : > { %v1749_v37 = vpop.permute.xlu1 %1748 }
 0xaf5   : > { %v1754_v21 = vmul.f32 %v1749_v37, %v5721_v22 }
 0xaf8   : > { %v1751_v10 = vpop.permute.xlu0 %1750  ;;  %v1089_v1 = vpop.permute.xlu1 %1088 }
 0xaf9   : > { %v1755_v9 = vmul.f32 %v1751_v10, %v5726_v24  ;;  %v1094_v54 = vmul.f32 %v1089_v1, %v6016_v12 }
 0xafb   : > { %v1756_v28 = vpack.c.bf16 %v1755_v9, %v1754_v21  ;;  %v1096_v49 = vsel %vm396_vm0, %v1094_v54, 0.0 }
 0xafc   : > { %v1091_v61 = vpop.permute.xlu0 %1090 }
 0xafd   : > { %v1095_v15 = vmul.f32 %v6009_v50, %v1091_v61  ;;  %1767 = vrot.lane.b32.xlu1 %v1756_v28, %s5351_s11 }
 0xaff   : > { %v1097_v40 = vsel %vm396_vm0, %v1095_v15, 0.0  ;;  %v1885_v15 = vrot.slane %v5932_v30, %v5593_v56 }
 0xb00   : > { %v1098_v31 = vadd.f32 %v1097_v40, %v1096_v49 }
 0xb02   : > { %v1099_v14 = vrot.slane %v1098_v31, 4 }
 0xb04   : > { %v1100_v38 = vadd.f32 %v1099_v14, %v1098_v31 }
 0xb06   : > { %v1101_v17 = vrot.slane %v1100_v38, 2 }
 0xb08   : > { %v1102_v22 = vadd.f32 %v1101_v17, %v1100_v38 }
 0xb0a   : > { %v1103_v29 = vrot.slane %v1102_v22, 1 }
 0xb0c   : > { %v1104_v24 = vadd.f32 %v1103_v29, %v1102_v22 }
 0xb0e   : > { %v1105_v52 = vmul.f32 %v1104_v24, %v5633_v47  ;;  %v1106_v12 = vmul.f32 %v1104_v24, %v5635_v0 }
 0xb10   : > { %v1107_v46 = vpack.c.bf16 %v1106_v12, %v1105_v52 }
 0xb12   : > { %4811 = vmatmul.mubr.msk.bf16.vlgmr.msra.gmra.mrb[8].mxu1 %vm396_vm0, %v1107_v46 }
 0xb13   : > { %4826 = vmatprep.mubr.msk.bf16.mxu1 %vm5347_vm1, %v7013_v3  ;;  %4823 = vmatpush3.bf16.msra.mxu1 %v5052_v20 }
 0xb14   : > { %4824 = vmatprep.subr.bf16.mxu1 %v7013_v3 }
 0xb17   : > { %4825 = vmatpush3.bf16.msra.mxu1 %v5053_v63 }
 0xb18   : > { %4838 = vmatprep.subr.bf16.mxu1 %v7013_v3 }
 0xb6f   : > { %v1768_v50 = vpop.permute.xlu1 %1767 }
 0xb70   : > { %4819 = vmatmul.mubr.msk.bf16.vlgmr.msra.gmra.mrb[16].mxu0 %vm396_vm0, %v1768_v50 }
 0xb71   : > { %4834 = vmatprep.mubr.msk.bf16.mxu0 %vm5347_vm1, %v7013_v3  ;;  %4831 = vmatpush3.bf16.msra.mxu0 %v5050_v58 }
 0xb72   : > { %4832 = vmatprep.subr.bf16.mxu0 %v7013_v3 }
 0xb75   : > { %4833 = vmatpush3.bf16.msra.mxu0 %v5051_v6 }
 0xb76   : > { %4846 = vmatprep.subr.bf16.mxu0 %v7013_v3 }
 0xbe5   : > { %v1165_v39 = vpop.f32.mrb[8].mxu1 }
 0xbe6   : > { %v1166_v42 = vadd.f32 %v1165_v39, %v1115_v23  ;;  %v4812_v62 = vpop.f32.mrb[9].mxu1  ;;  %v1765_v39 = vrot.slane %v5932_v30, %v5582_v36 }
 0xbe7   : > { %v1168_v25 = vpop.f32.mrb[10].mxu1  ;;  %v4484_v62 = vld [vmem:[%s6960_s8 + $0x40] sm:$0xff] }
 0xbe8   : > { %v1172_v59 = vadd.f32 %v1166_v42, %v5633_v47  ;;  %v1169_v51 = vadd.f32 %v1168_v25, %v1115_v23  ;;  %v4813_v45 = vpop.f32.mrb[11].mxu1  ;;  %v4482_v42 = vld [vmem:[%s6960_s8 + $0x30] sm:$0xff] }
 0xbea   : > { %v1841_v32 = vmul.f32 %v4478_v11, %v1172_v59  ;;  %v1854_v8 = vmul.f32 %v1848_v48, %v1172_v59  ;;  %v1856_v53 = vmul.f32 %v1849_v33, %v1172_v59  ;;  %v1173_v27 = vadd.f32 %v1169_v51, %v5635_v0 }
 0xbeb   : > { %v1836_v49 = vmul.f32 %v1831_v18, %v1172_v59  ;;  %v1914_v48 = vrot.slane %v4487_v19, 7  ;;  %v1895_v51 = vrot.slane %v4483_v35, 1 }
 0xbec   : > { %v1859_v16 = vrot.slane %v1841_v32, 1  ;;  %v1835_v37 = vmul.f32 %v1829_v2, %v1173_v27  ;;  %v1842_v47 = vmul.f32 %v4479_v41, %v1173_v27  ;;  %v1855_v10 = vmul.f32 %v1850_v4, %v1173_v27 }
 0xbed   : > { %v1871_v1 = vrot.slane %v1854_v8, 2  ;;  %v1874_v21 = vrot.slane %v1856_v53, 2  ;;  %v1837_v9 = vmul.f32 %v1830_v13, %v1173_v27  ;;  %v4485_v8 = vld [vmem:[%s6960_s8 + $0x48] sm:$0xff]  ;;  %v1915_v53 = vsel %vm1436_vm13, %v1913_v26, %v1914_v48 }
 0xbee   : > { %v1860_v28 = vrot.slane %v1842_v47, 1  ;;  %v1865_v54 = vadd.f32 %v1859_v16, %v1835_v37  ;;  %v1872_v61 = vrot.slane %v1855_v10, 2 }
 0xbf0   : > { %v1861_v40 = vsel %vm1271_vm4, %v1859_v16, %v1860_v28  ;;  %v1867_v31 = vadd.f32 %v1860_v28, %v1837_v9  ;;  %v1873_v0 = vsel %vm1292_vm6, %v1871_v1, %v1872_v61  ;;  %v1875_v14 = vsel %vm1292_vm6, %v1872_v61, %v1874_v21 }
 0xbf1   : > { %v1866_v38 = vadd.f32 %v1861_v40, %v1836_v49  ;;  %v1879_v17 = vadd.f32 %v1871_v1, %v1865_v54  ;;  %v1950_v61 = vrot.slane %v5932_v30, %v5655_v34 }
 0xbf2   : > { %v1881_v22 = vadd.f32 %v1875_v14, %v1867_v31 }
 0xbf3   : > { %v1880_v29 = vadd.f32 %v1873_v0, %v1866_v38  ;;  %v1886_v24 = vadd.f32 %v1885_v15, %v1879_v17 }
 0xbf4   : > { %v1888_v52 = vadd.f32 %v1885_v15, %v1881_v22 }
 0xbf5   : > { %v1887_v12 = vadd.f32 %v1885_v15, %v1880_v29  ;;  %v1957_v50 = vrot.slane %v1886_v24, 7 }
 0xbf6   : > { %v1960_v46 = vrot.slane %v1888_v52, 7 }
 0xbf7   : > { %v1958_v58 = vrot.slane %v1887_v12, 7 }
 0xbf9   : > { %v1959_v6 = vsel %vm1436_vm13, %v1957_v50, %v1958_v58  ;;  %v1961_v20 = vsel %vm1436_vm13, %v1958_v58, %v1960_v46 }
 0xbfa   : > { %v1964_v63 = vadd.f32 %v1959_v6, %v1172_v59  ;;  %v1965_v57 = vadd.f32 %v1961_v20, %v1173_v27  ;;  %v1894_v59 = vrot.slane %v4482_v42, 1  ;;  %v2105_v42 = vrot.slane %v5932_v30, %v5748_v43 }
 0xbfc   : > { %v1966_v23 = vpack.c.bf16 %v1965_v57, %v1964_v63  ;;  %v1896_v16 = vsel %vm1271_vm4, %v1894_v59, %v1895_v51 }
 0xbfe   : > { %4835 = vmatmul.mubr.msk.bf16.vlgmr.msra.gmra.mrb[20].mxu0 %vm396_vm0, %v1966_v23 }
 0xbff   : > { %4854 = vmatprep.mubr.msk.bf16.mxu0 %vm5347_vm1, %v7013_v3 }
 0xc43   : > { %v1818_v33 = vpop.f32.mrb[16].mxu0 }
 0xc44   : > { %v1819_v11 = vadd.f32 %v1818_v33, %v1765_v39  ;;  %v4820_v25 = vpop.f32.mrb[17].mxu0 }
 0xc45   : > { %v1821_v45 = vpop.f32.mrb[18].mxu0 }
 0xc46   : > { %v1906_v2 = vmul.f32 %v4484_v62, %v1819_v11  ;;  %v1919_v13 = vmul.f32 %v1913_v26, %v1819_v11  ;;  %v1921_v32 = vmul.f32 %v1914_v48, %v1819_v11  ;;  %v4821_v41 = vpop.f32.mrb[19].mxu0  ;;  %v1822_v4 = vadd.f32 %v1821_v45, %v1765_v39 }
 0xc47   : > { %v1901_v15 = vmul.f32 %v1896_v16, %v1819_v11 }
 0xc48   : > { %v1924_v27 = vrot.slane %v1906_v2, 1  ;;  %v1900_v18 = vmul.f32 %v1894_v59, %v1822_v4  ;;  %v1907_v37 = vmul.f32 %v4485_v8, %v1822_v4  ;;  %v1920_v47 = vmul.f32 %v1915_v53, %v1822_v4 }
 0xc49   : > { %v1936_v10 = vrot.slane %v1919_v13, 2  ;;  %v1939_v1 = vrot.slane %v1921_v32, 2  ;;  %v1902_v21 = vmul.f32 %v1895_v51, %v1822_v4 }
 0xc4a   : > { %v1925_v9 = vrot.slane %v1907_v37, 1  ;;  %v1930_v28 = vadd.f32 %v1924_v27, %v1900_v18  ;;  %v1937_v54 = vrot.slane %v1920_v47, 2  ;;  %v5054_v37 = vld [vmem:[#allocation5 + $0x10] sm:$0xff]   ;;  %v5055_v47 = vld [vmem:[#allocation5 + $0x18] sm:$0xff]  }
 0xc4c   : > { %v1926_v49 = vsel %vm1271_vm4, %v1924_v27, %v1925_v9  ;;  %v1932_v40 = vadd.f32 %v1925_v9, %v1902_v21  ;;  %v1938_v31 = vsel %vm1292_vm6, %v1936_v10, %v1937_v54  ;;  %v1940_v0 = vsel %vm1292_vm6, %v1937_v54, %v1939_v1 }
 0xc4d   : > { %v1931_v14 = vadd.f32 %v1926_v49, %v1901_v15  ;;  %v1944_v38 = vadd.f32 %v1936_v10, %v1930_v28 }
 0xc4e   : > { %v1946_v17 = vadd.f32 %v1940_v0, %v1932_v40  ;;  %v5056_v0 = vld [vmem:[%s6956_s4 + $0x20] sm:$0xff]  }
 0xc4f   : > { %v1945_v22 = vadd.f32 %v1938_v31, %v1931_v14  ;;  %v1951_v29 = vadd.f32 %v1950_v61, %v1944_v38  ;;  %4847 = vmatpush3.bf16.msra.mxu0 %v5056_v0  ;;  %v5057_v14 = vld [vmem:[%s6956_s4 + $0x28] sm:$0xff]   ;;  %v5058_v38 = vld [vmem:[%s6956_s4 + $0x30] sm:$0xff]  }
 0xc50   : > { %v1953_v24 = vadd.f32 %v1950_v61, %v1946_v17  ;;  %4848 = vmatprep.subr.bf16.mxu0 %v7013_v3  ;;  %v5059_v17 = vld [vmem:[%s6956_s4 + $0x38] sm:$0xff]   ;;  %v4520_v0 = vld [vmem:[%s6958_s6 + $0x10] ss:$0 sm:$0xff] }
 0xc51   : > { %v1952_v52 = vadd.f32 %v1950_v61, %v1945_v22  ;;  %v1975_v50 = vrot.slane %v1951_v29, 7  ;;  %v2145_v22 = vrot.slane %v5932_v30, %v6141_v60 }
 0xc52   : > { %v1978_v12 = vrot.slane %v1953_v24, 7 }
 0xc53   : > { %v1976_v46 = vrot.slane %v1952_v52, 7  ;;  %4849 = vmatpush3.bf16.msra.mxu0 %v5057_v14 }
 0xc54   : > { %4850 = vmatprep.subr.bf16.mxu0 %v7013_v3 }
 0xc55   : > { %v1979_v58 = vsel %vm1436_vm13, %v1976_v46, %v1978_v12  ;;  %v1977_v6 = vsel %vm1436_vm13, %v1975_v50, %v1976_v46 }
 0xc56   : > { %v1983_v20 = vadd.f32 %v1979_v58, %v1822_v4  ;;  %v1982_v63 = vadd.f32 %v1977_v6, %v1819_v11 }
 0xc57   : > { %4851 = vmatpush3.bf16.msra.mxu0 %v5058_v38 }
 0xc58   : > { %v1984_v57 = vpack.c.bf16 %v1983_v20, %v1982_v63  ;;  %4852 = vmatprep.subr.bf16.mxu0 %v7013_v3 }
 0xc5a   : > { %4827 = vmatmul.mubr.msk.bf16.vlgmr.msra.gmra.mrb[12].mxu1 %vm396_vm0, %v1984_v57 }
 0xc5b   : > { %4842 = vmatprep.mubr.msk.bf16.mxu1 %vm5347_vm1, %v7013_v3  ;;  %4839 = vmatpush3.bf16.msra.mxu1 %v5054_v37 }
 0xc5c   : > { %4840 = vmatprep.subr.bf16.mxu1 %v7013_v3  ;;  %4853 = vmatpush3.bf16.msra.mxu0 %v5059_v17 }
 0xc5d   : > { %4878 = vmatprep.subr.bf16.mxu0 %v7013_v3 }
 0xc5f   : > { %4841 = vmatpush3.bf16.msra.mxu1 %v5055_v47 }
 0xc60   : > { %4858 = vmatprep.subr.bf16.mxu1 %v7013_v3 }
 0xcd1   : > { %v2095_v23 = vpop.f32.mrb[20].mxu0 }
 0xcd2   : > { %v4836_v55 = vpop.f32.mrb[21].mxu0 }
 0xcd3   : > { %v2098_v19 = vpop.f32.mrb[22].mxu0 }
 0xcd4   : > { %v4837_v39 = vpop.f32.mrb[23].mxu0 }
 0xd2d   : > { %v2039_v35 = vpop.f32.mrb[12].mxu1 }
 0xd2e   : > { %v2096_v26 = vadd.f32 %v2095_v23, %v2039_v35  ;;  %v4828_v48 = vpop.f32.mrb[13].mxu1 }
 0xd2f   : > { %v2042_v33 = vpop.f32.mrb[14].mxu1 }
 0xd30   : > { %v2106_v62 = vadd.f32 %v2105_v42, %v2096_v26  ;;  %v2099_v25 = vadd.f32 %v2098_v19, %v2042_v33  ;;  %v4829_v11 = vpop.f32.mrb[15].mxu1  ;;  %v2229_v26 = vrot.slane %v5932_v30, %v5770_v44 }
 0xd32   : > { %v6214_v59 = vadd.f32 %v2106_v62, %v5598_v5  ;;  %v2107_v51 = vadd.f32 %v2105_v42, %v2099_v25 }
 0xd34   : > { %v6217_v45 = vadd.f32 %v2107_v51, %v5601_v7  ;;  %v2110_v2 = vsel %vm396_vm0, %v6214_v59, 0.0 }
 0xd35   : > { %2111 = vadd.xlane.f32.xlu0 %v2110_v2 }
 0xd36   : > { %v2113_v13 = vsel %vm396_vm0, %v6217_v45, 0.0 }
 0xd37   : > { %2114 = vadd.xlane.f32.xlu1 %v2113_v13 }
 0xdc2   : > { %v2112_v32 = vpop.xlane.xlu0 %2111 }
 0xdc3   : > { %v2116_v8 = vmul.f32 0.03125, %v2112_v32 }
 0xdc4   : > { %v2115_v53 = vpop.xlane.xlu1 %2114 }
 0xdc5   : > { %v2118_v41 = vsub.f32 %v6214_v59, %v2116_v8  ;;  %v2117_v4 = vmul.f32 0.03125, %v2115_v53 }
 0xdc7   : > { %v2119_v5 = vsub.f32 %v6217_v45, %v2117_v4  ;;  %v2120_v27 = vmul.f32 %v2118_v41, %v2118_v41 }
 0xdc9   : > { %v2122_v7 = vsel %vm396_vm0, %v2120_v27, 0.0  ;;  %v2121_v16 = vmul.f32 %v2119_v5, %v2119_v5 }
 0xdca   : > { %2123 = vadd.xlane.f32.xlu0 %v2122_v7 }
 0xdcb   : > { %v2125_v18 = vsel %vm396_vm0, %v2121_v16, 0.0 }
 0xdce   : > { %2126 = vadd.xlane.f32.xlu0 %v2125_v18 }
 0xe57   : > { %v2124_v10 = vpop.xlane.xlu0 %2123 }
 0xe58   : > { %v2128_v1 = vmul.f32 0.03125, %v2124_v10 }
 0xe5a   : > { %v2130_v21 = vadd.f32 1e-05, %v2128_v1 }
 0xe5b   : > { %v2127_v9 = vpop.xlane.xlu0 %2126 }
 0xe5c   : > { %v2129_v28 = vmul.f32 0.03125, %v2127_v9  ;;  %5130 = vrsqrt.f32 %v2130_v21 }
 0xe5e   : > { %v2131_v54 = vadd.f32 1e-05, %v2129_v28 }
 0xe60   : > { %5132 = vrsqrt.f32 %v2131_v54  ;;  %v5211_v54 = vld [vmem:[%s6958_s6 + $0x8] sm:$0xff] }
 0xe66   : > { %v5131_v61 = vpop.eup %5130 }
 0xe67   : > { %v2134_v49 = vmul.f32 %v5131_v61, %v2118_v41  ;;  %v7014_v61 = vld [vmem:[#allocation21_spill] sm:$0xff] }
 0xe6a   : > { %v5133_v15 = vpop.eup %5132 }
 0xe6b   : > { %v2135_v40 = vmul.f32 %v5133_v15, %v2119_v5  ;;  %v2331_v15 = vrot.slane %v5211_v54, %v7014_v61 }
 0xe6d   : > { %v2136_v31 = vpack.c.bf16 %v2135_v40, %v2134_v49 }
 0xe6f   : > { %4843 = vmatmul.mubr.msk.bf16.vlgmr.msra.gmra.mrb[16].mxu1 %vm396_vm0, %v2136_v31 }
 0xe70   : > { %4862 = vmatprep.mubr.msk.bf16.mxu1 %vm5347_vm1, %v7013_v3 }
 0xf42   : > { %v2195_v29 = vpop.f32.mrb[16].mxu1 }
 0xf43   : > { %v2196_v24 = vadd.f32 %v2195_v29, %v2145_v22  ;;  %v4844_v52 = vpop.f32.mrb[17].mxu1 }
 0xf44   : > { %v2198_v12 = vpop.f32.mrb[18].mxu1 }
 0xf45   : > { %v4505_v46 = vmul.f32 -1.442695, %v2196_v24  ;;  %v2199_v50 = vadd.f32 %v2198_v12, %v2145_v22  ;;  %v4845_v58 = vpop.f32.mrb[19].mxu1 }
 0xf47   : > { %5134 = vpow2.f32 %v4505_v46  ;;  %v4506_v6 = vmul.f32 -1.442695, %v2199_v50 }
 0xf49   : > { %5136 = vpow2.f32 %v4506_v6 }
 0xf51   : > { %v5135_v20 = vpop.eup %5134 }
 0xf52   : > { %v2208_v63 = vadd.f32 1.0, %v5135_v20 }
 0xf53   : > { %v5137_v57 = vpop.eup %5136 }
 0xf54   : > { %5138 = vrcp.f32 %v2208_v63  ;;  %v2209_v23 = vadd.f32 1.0, %v5137_v57 }
 0xf56   : > { %5140 = vrcp.f32 %v2209_v23 }
 0xf5e   : > { %v5139_v55 = vpop.eup %5138 }
 0xf5f   : > { %v2214_v39 = vmul.f32 %v5139_v55, %v2196_v24 }
 0xf60   : > { %v5141_v19 = vpop.eup %5140 }
 0xf61   : > { %v2215_v42 = vmul.f32 %v5141_v19, %v2199_v50  ;;  %v5060_v19 = vld [vmem:[#allocation5 + $0x20] sm:$0xff]  }
 0xf62   : > { %4859 = vmatpush3.bf16.msra.mxu1 %v5060_v19 }
 0xf63   : > { %v2216_v35 = vpack.c.bf16 %v2215_v42, %v2214_v39  ;;  %4860 = vmatprep.subr.bf16.mxu1 %v7013_v3  ;;  %v5061_v39 = vld [vmem:[#allocation5 + $0x28] sm:$0xff]  }
 0xf65   : > { %4855 = vmatmul.mubr.msk.bf16.vlgmr.msra.gmra.mrb[24].mxu0 %vm566_vm2, %v2216_v35 }
 0xf66   : > { %4882 = vmatprep.mubr.msk.bf16.mxu0 %vm5347_vm1, %v7013_v3  ;;  %4861 = vmatpush3.bf16.msra.mxu1 %v5061_v39 }
 0xf67   : > { %4866 = vmatprep.subr.bf16.mxu1 %v7013_v3 }
0x1038   : > { %v2291_v48 = vpop.f32.mrb[24].mxu0 }
0x1039   : > { %v2292_v33 = vadd.f32 %v2291_v48, %v2229_v26  ;;  %v4856_v62 = vpop.f32.mrb[25].mxu0 }
0x103a   : > { %v2294_v25 = vpop.f32.mrb[26].mxu0 }
0x103b   : > { %v2298_v11 = vmul.f32 0.5, %v2292_v33  ;;  %v2295_v51 = vadd.f32 %v2294_v25, %v2229_v26  ;;  %v4857_v2 = vpop.f32.mrb[27].mxu0 }
0x103d   : > { %v2299_v13 = vmul.f32 0.5, %v2295_v51  ;;  %v2300_v32 = vadd.f32 %v2298_v11, %v6214_v59 }
0x103f   : > { %v2302_v8 = vsel %vm396_vm0, %v2300_v32, 0.0  ;;  %v2301_v53 = vadd.f32 %v2299_v13, %v6217_v45 }
0x1040   : > { %2303 = vadd.xlane.f32.xlu0 %v2302_v8  ;;  %v5063_v8 = vld [vmem:[%s6956_s4 + $0x48] sm:$0xff]  }
0x1041   : > { %v2305_v41 = vsel %vm396_vm0, %v2301_v53, 0.0 }
0x1042   : > { %2306 = vadd.xlane.f32.xlu1 %v2305_v41  ;;  %v5065_v41 = vld [vmem:[%s6956_s4 + $0x58] sm:$0xff]  }
0x10cd   : > { %v2304_v4 = vpop.xlane.xlu0 %2303 }
0x10ce   : > { %v2308_v30 = vmul.f32 0.03125, %v2304_v4  ;;  %v7015_v4 = vld [vmem:[#allocation16_spill] sm:$0xff] }
0x10cf   : > { %v2307_v5 = vpop.xlane.xlu1 %2306 }
0x10d0   : > { %v2310_v27 = vsub.f32 %v2300_v32, %v2308_v30  ;;  %v2309_v7 = vmul.f32 0.03125, %v2307_v5  ;;  %v5062_v32 = vld [vmem:[%s6956_s4 + $0x40] sm:$0xff]   ;;  %v6305_v30 = vld [vmem:[%s6958_s6 + $0x18] sm:$0xff] }
0x10d1   : > { %v2379_v5 = vrot.slane %v6305_v30, %v5582_v36 }
0x10d2   : > { %v2311_v16 = vsub.f32 %v2301_v53, %v2309_v7  ;;  %v2312_v18 = vmul.f32 %v2310_v27, %v2310_v27  ;;  %v5064_v53 = vld [vmem:[%s6956_s4 + $0x50] sm:$0xff]  }
0x10d4   : > { %v2314_v37 = vsel %vm396_vm0, %v2312_v18, 0.0  ;;  %v2313_v47 = vmul.f32 %v2311_v16, %v2311_v16 }
0x10d5   : > { %2315 = vadd.xlane.f32.xlu0 %v2314_v37 }
0x10d6   : > { %v2317_v59 = vsel %vm396_vm0, %v2313_v47, 0.0 }
0x10d7   : > { %2318 = vadd.xlane.f32.xlu1 %v2317_v59 }
0x1162   : > { %v2316_v10 = vpop.xlane.xlu0 %2315 }
0x1163   : > { %v2320_v45 = vmul.f32 0.03125, %v2316_v10 }
0x1164   : > { %v2319_v1 = vpop.xlane.xlu1 %2318 }
0x1165   : > { %v2322_v21 = vadd.f32 1e-05, %v2320_v45  ;;  %v2321_v9 = vmul.f32 0.03125, %v2319_v1 }
0x1167   : > { %5142 = vrsqrt.f32 %v2322_v21  ;;  %v2323_v28 = vadd.f32 1e-05, %v2321_v9 }
0x1169   : > { %5144 = vrsqrt.f32 %v2323_v28 }
0x1171   : > { %v5143_v49 = vpop.eup %5142 }
0x1172   : > { %v2326_v40 = vmul.f32 %v5143_v49, %v2310_v27 }
0x1173   : > { %v5145_v31 = vpop.eup %5144 }
0x1174   : > { %v2332_v14 = vmul.f32 %v2331_v15, %v2326_v40  ;;  %v2327_v38 = vmul.f32 %v5145_v31, %v2311_v16  ;;  %v2463_v31 = vrot.slane %v6305_v30, %v5593_v56 }
0x1176   : > { %v6268_v17 = vadd.f32 %v4520_v0, %v2332_v14  ;;  %v2333_v22 = vmul.f32 %v2331_v15, %v2327_v38 }
0x1178   : > { %v2344_v29 = vsel %vm396_vm0, %v6268_v17, 0.0  ;;  %v6272_v24 = vadd.f32 %v4520_v0, %v2333_v22 }
0x1179   : > { %2345 = vadd.xlane.f32.xlu0 %v2344_v29 }
0x117a   : > { %v2347_v52 = vsel %vm396_vm0, %v6272_v24, 0.0 }
0x117b   : > { %2348 = vadd.xlane.f32.xlu1 %v2347_v52 }
0x1206   : > { %v2346_v12 = vpop.xlane.xlu0 %2345 }
0x1207   : > { %v2350_v46 = vmul.f32 0.03125, %v2346_v12 }
0x1208   : > { %v2349_v50 = vpop.xlane.xlu1 %2348 }
0x1209   : > { %v2352_v58 = vsub.f32 %v6268_v17, %v2350_v46  ;;  %v2351_v6 = vmul.f32 0.03125, %v2349_v50 }
0x120b   : > { %v2353_v20 = vsub.f32 %v6272_v24, %v2351_v6  ;;  %v2354_v63 = vmul.f32 %v2352_v58, %v2352_v58 }
0x120d   : > { %v2356_v57 = vsel %vm396_vm0, %v2354_v63, 0.0  ;;  %v2355_v23 = vmul.f32 %v2353_v20, %v2353_v20 }
0x120e   : > { %2357 = vadd.xlane.f32.xlu0 %v2356_v57 }
0x120f   : > { %v2359_v55 = vsel %vm396_vm0, %v2355_v23, 0.0 }
0x1210   : > { %2360 = vadd.xlane.f32.xlu1 %v2359_v55 }
0x129b   : > { %v2358_v42 = vpop.xlane.xlu0 %2357 }
0x129c   : > { %v2362_v35 = vmul.f32 0.03125, %v2358_v42 }
0x129d   : > { %v2361_v26 = vpop.xlane.xlu1 %2360 }
0x129e   : > { %v2364_v48 = vadd.f32 1e-05, %v2362_v35  ;;  %v2363_v33 = vmul.f32 0.03125, %v2361_v26  ;;  %v5066_v26 = vld [vmem:[#allocation2 + $0x10] sm:$0xff]  }
0x129f   : > { %4879 = vmatpush3.bf16.msra.mxu0 %v5066_v26 }
0x12a0   : > { %5146 = vrsqrt.f32 %v2364_v48  ;;  %v2365_v62 = vadd.f32 1e-05, %v2363_v33  ;;  %4880 = vmatprep.subr.bf16.mxu0 %v7013_v3  ;;  %v5067_v48 = vld [vmem:[#allocation2 + $0x18] sm:$0xff]  }
0x12a2   : > { %5148 = vrsqrt.f32 %v2365_v62 }
0x12a3   : > { %4881 = vmatpush3.bf16.msra.mxu0 %v5067_v48 }
0x12a4   : > { %4886 = vmatprep.subr.bf16.mxu0 %v7013_v3 }
0x12aa   : > { %v5147_v25 = vpop.eup %5146 }
0x12ab   : > { %v2368_v51 = vmul.f32 %v5147_v25, %v2352_v58 }
0x12ac   : > { %v5149_v11 = vpop.eup %5148 }
0x12ad   : > { %v2369_v2 = vmul.f32 %v5149_v11, %v2353_v20 }
0x12af   : > { %v2370_v13 = vpack.c.bf16 %v2369_v2, %v2368_v51 }
0x12b1   : > { %4863 = vmatmul.mubr.msk.bf16.vlgmr.msra.gmra.mrb[20].mxu1 %vm396_vm0, %v2370_v13 }
0x12b2   : > { %4874 = vmatprep.mubr.msk.bf16.mxu1 %vm5347_vm1, %v7013_v3  ;;  %4867 = vmatpush3.bf16.msra.mxu1 %v5062_v32 }
0x12b3   : > { %4868 = vmatprep.subr.bf16.mxu1 %v7013_v3 }
0x12b6   : > { %4869 = vmatpush3.bf16.msra.mxu1 %v5063_v8 }
0x12b7   : > { %4870 = vmatprep.subr.bf16.mxu1 %v7013_v3 }
0x12ba   : > { %4871 = vmatpush3.bf16.msra.mxu1 %v5064_v53 }
0x12bb   : > { %4872 = vmatprep.subr.bf16.mxu1 %v7013_v3 }
0x12be   : > { %4873 = vmatpush3.bf16.msra.mxu1 %v5065_v41  ;;  %v5068_v41 = vld [vmem:[%s6957_s5 + $0x20] sm:$0xff]  }
0x12bf   : > { %4894 = vmatprep.subr.msk.mxu1 %vm811_vm5, %v7015_v4 }
0x1384   : > { %v2429_v27 = vpop.f32.mrb[20].mxu1 }
0x1385   : > { %v2430_v7 = vadd.f32 %v2429_v27, %v2379_v5  ;;  %v4864_v16 = vpop.f32.mrb[21].mxu1  ;;  %v5069_v27 = vld [vmem:[%s6957_s5 + $0x28] sm:$0xff]  }
0x1386   : > { %v2432_v18 = vpop.f32.mrb[22].mxu1 }
0x1387   : > { %v4527_v37 = vmul.f32 -1.442695, %v2430_v7  ;;  %v2433_v47 = vadd.f32 %v2432_v18, %v2379_v5  ;;  %v4865_v59 = vpop.f32.mrb[23].mxu1 }
0x1389   : > { %5150 = vpow2.f32 %v4527_v37  ;;  %v4528_v10 = vmul.f32 -1.442695, %v2433_v47 }
0x138b   : > { %5152 = vpow2.f32 %v4528_v10 }
0x1393   : > { %v5151_v45 = vpop.eup %5150 }
0x1394   : > { %v2442_v1 = vadd.f32 1.0, %v5151_v45 }
0x1395   : > { %v5153_v21 = vpop.eup %5152 }
0x1396   : > { %5154 = vrcp.f32 %v2442_v1  ;;  %v2443_v9 = vadd.f32 1.0, %v5153_v21  ;;  %v2637_v21 = vrot.slane %v6305_v30, %v5655_v34 }
0x1398   : > { %5156 = vrcp.f32 %v2443_v9 }
0x13a0   : > { %v5155_v28 = vpop.eup %5154 }
0x13a1   : > { %v2448_v15 = vmul.f32 %v5155_v28, %v2430_v7  ;;  %v7016_v7 = vld [vmem:[#allocation15_spill] sm:$0xff] }
0x13a2   : > { %v5157_v54 = vpop.eup %5156  ;;  %v2571_v16 = vrot.slane %v6305_v30, %v7016_v7 }
0x13a3   : > { %v2449_v49 = vmul.f32 %v5157_v54, %v2433_v47 }
0x13a5   : > { %v2450_v40 = vpack.c.bf16 %v2449_v49, %v2448_v15 }
0x13a7   : > { %4875 = vmatmul.mubr.msk.bf16.vlgmr.msra.gmra.mrb[24].mxu1 %vm566_vm2, %v2450_v40 }
0x13a8   : > { %4895 = vmatpush3.msk.msra.mxu1 %vm811_vm5, %v7015_v4 }
0x13a9   : > { %4907 = vmatprep.subr.msk.mxu1 %vm811_vm5, %v7015_v4 }
0x147a   : > { %v2525_v0 = vpop.f32.mrb[24].mxu1 }
0x147b   : > { %v2526_v14 = vadd.f32 %v2525_v0, %v2463_v31  ;;  %v4876_v38 = vpop.f32.mrb[25].mxu1 }
0x147c   : > { %v2528_v22 = vpop.f32.mrb[26].mxu1 }
0x147d   : > { %v2532_v29 = vmul.f32 0.5, %v2526_v14  ;;  %v2529_v52 = vadd.f32 %v2528_v22, %v2463_v31  ;;  %v4877_v12 = vpop.f32.mrb[27].mxu1 }
0x147f   : > { %v6317_v46 = vadd.f32 %v2532_v29, %v6268_v17  ;;  %v2533_v50 = vmul.f32 0.5, %v2529_v52 }
0x1481   : > { %v6320_v58 = vadd.f32 %v2533_v50, %v6272_v24  ;;  %v2536_v6 = vsel %vm396_vm0, %v6317_v46, 0.0 }
0x1482   : > { %2537 = vadd.xlane.f32.xlu0 %v2536_v6 }
0x1483   : > { %v2539_v20 = vsel %vm396_vm0, %v6320_v58, 0.0 }
0x1484   : > { %2540 = vadd.xlane.f32.xlu1 %v2539_v20 }
0x150f   : > { %v2538_v63 = vpop.xlane.xlu0 %2537 }
0x1510   : > { %v2542_v57 = vmul.f32 0.03125, %v2538_v63 }
0x1511   : > { %v2541_v23 = vpop.xlane.xlu1 %2540 }
0x1512   : > { %v2544_v55 = vsub.f32 %v6317_v46, %v2542_v57  ;;  %v2543_v19 = vmul.f32 0.03125, %v2541_v23 }
0x1514   : > { %v2545_v17 = vsub.f32 %v6320_v58, %v2543_v19  ;;  %v2546_v39 = vmul.f32 %v2544_v55, %v2544_v55 }
0x1516   : > { %v2548_v24 = vsel %vm396_vm0, %v2546_v39, 0.0  ;;  %v2547_v42 = vmul.f32 %v2545_v17, %v2545_v17 }
0x1517   : > { %2549 = vadd.xlane.f32.xlu0 %v2548_v24 }
0x1518   : > { %v2551_v35 = vsel %vm396_vm0, %v2547_v42, 0.0 }
0x1519   : > { %2552 = vadd.xlane.f32.xlu1 %v2551_v35 }
0x15a4   : > { %v2550_v33 = vpop.xlane.xlu0 %2549 }
0x15a5   : > { %v2554_v62 = vmul.f32 0.03125, %v2550_v33 }
0x15a6   : > { %v2553_v25 = vpop.xlane.xlu1 %2552 }
0x15a7   : > { %v2556_v11 = vadd.f32 1e-05, %v2554_v62  ;;  %v2555_v51 = vmul.f32 0.03125, %v2553_v25 }
0x15a9   : > { %5158 = vrsqrt.f32 %v2556_v11  ;;  %v2557_v2 = vadd.f32 1e-05, %v2555_v51 }
0x15ab   : > { %5160 = vrsqrt.f32 %v2557_v2 }
0x15b3   : > { %v5159_v13 = vpop.eup %5158 }
0x15b4   : > { %v2560_v8 = vmul.f32 %v5159_v13, %v2544_v55 }
0x15b5   : > { %v5161_v32 = vpop.eup %5160 }
0x15b6   : > { %v2561_v53 = vmul.f32 %v5161_v32, %v2545_v17 }
0x15b8   : > { %v2562_v5 = vpack.c.bf16 %v2561_v53, %v2560_v8 }
0x15ba   : > { %4883 = vmatmul.mubr.msk.bf16.vlgmr.msra.gmra.mrb[28].mxu0 %vm396_vm0, %v2562_v5 }
0x15bb   : > { %4887 = vmatpush3.bf16.msra.mxu0 %v5068_v41  ;;  %4890 = vmatprep.mubr.msk.bf16.mxu0 %vm5347_vm1, %v7013_v3 }
0x15bc   : > { %4888 = vmatprep.subr.bf16.mxu0 %v7013_v3 }
0x15bf   : > { %4889 = vmatpush3.bf16.msra.mxu0 %v5069_v27 }
0x15c0   : > { %4899 = vmatprep.subr.bf16.mxu0 %v7013_v3 }
0x168d   : > { %v2621_v18 = vpop.f32.mrb[28].mxu0 }
0x168e   : > { %v4884_v37 = vpop.f32.mrb[29].mxu0  ;;  %v6345_v59 = vadd.f32 %v2621_v18, %v2571_v16 }
0x168f   : > { %v2624_v47 = vpop.f32.mrb[30].mxu0 }
0x1690   : > { %v6347_v10 = vadd.f32 %v2624_v47, %v2571_v16  ;;  %v4885_v45 = vpop.f32.mrb[31].mxu0 }
0x1692   : > { %v2628_v1 = vpack.c.bf16 %v6347_v10, %v6345_v59 }
0x1694   : > { %4891 = vmatmul.mubr.msk.bf16.vlgmr.msra.gmra.mrb[32].mxu0 %vm396_vm0, %v2628_v1 }
0x1695   : > { %4903 = vmatprep.mubr.msk.bf16.mxu0 %vm5347_vm1, %v7013_v3 }
0x1767   : > { %v2687_v9 = vpop.f32.mrb[32].mxu0 }
0x1768   : > { %v2688_v28 = vadd.f32 %v2687_v9, %v2637_v21  ;;  %v4892_v54 = vpop.f32.mrb[33].mxu0 }
0x1769   : > { %v2690_v15 = vpop.f32.mrb[34].mxu0  ;;  %v3089_v54 = vmul.f32 %v6345_v59, %v6345_v59 }
0x176a   : > { %v2694_v40 = vsel %vm5667_vm10, -3.4028235e+38, %v2688_v28  ;;  %v2691_v31 = vadd.f32 %v2690_v15, %v2637_v21  ;;  %v4893_v0 = vpop.f32.mrb[35].mxu0  ;;  %v5071_v28 = vld [vmem:[%s6957_s5 + $0x38] sm:$0xff]  }
0x176b   : > { %v2696_v22 = vsel %vm777_vm12, %v2694_v40, -inf  ;;  %v3091_v15 = vmul.f32 %v3089_v54, %v6345_v59 }
0x176c   : > { %v2695_v38 = vsel %vm5673_vm11, -3.4028235e+38, %v2691_v31 }
0x176d   : > { %v2697_v29 = vsel %vm777_vm12, %v2695_v38, -inf  ;;  %v3093_v31 = vmul.f32 0.044715, %v3091_v15 }
0x176e   : > { %v2698_v52 = vmax.f32 %v2696_v22, %v2697_v29 }
0x1770   : > { %v2699_v12 = vrot.slane %v2698_v52, 4 }
0x1772   : > { %v2700_v50 = vmax.f32 %v2698_v52, %v2699_v12 }
0x1774   : > { %v2701_v6 = vrot.slane %v2700_v50, 2 }
0x1776   : > { %v2702_v20 = vmax.f32 %v2700_v50, %v2701_v6 }
0x1778   : > { %v2703_v63 = vrot.slane %v2702_v20, 1 }
0x177a   : > { %v2704_v57 = vmax.f32 %v2702_v20, %v2703_v63 }
0x177c   : > { %v2705_v23 = vsub.f32 %v2694_v40, %v2704_v57  ;;  %v2706_v55 = vsub.f32 %v2695_v38, %v2704_v57  ;;  %v3090_v40 = vmul.f32 %v6347_v10, %v6347_v10  ;;  %v3095_v38 = vadd.f32 %v3093_v31, %v6345_v59 }
0x177e   : > { %v2707_v19 = vmul.f32 1.442695, %v2705_v23  ;;  %v2709_v17 = vmul.f32 1.442695, %v2706_v55  ;;  %v3092_v0 = vmul.f32 %v3090_v40, %v6347_v10  ;;  %v3097_v29 = vmul.f32 0.7978846, %v3095_v38 }
0x1780   : > { %5162 = vpow2.f32 %v2707_v19  ;;  %v3094_v22 = vmul.f32 0.044715, %v3092_v0 }
0x1781   : > { %5164 = vpow2.f32 %v2709_v17 }
0x1782   : > { %v3096_v52 = vadd.f32 %v3094_v22, %v6347_v10 }
0x1784   : > { %v3098_v12 = vmul.f32 0.7978846, %v3096_v52 }
0x178a   : > { %v5163_v39 = vpop.eup %5162 }
0x178b   : > { %v5165_v24 = vpop.eup %5164  ;;  %v2711_v42 = vsel %vm777_vm12, %v5163_v39, 0.0 }
0x178c   : > { %v2712_v35 = vsel %vm777_vm12, %v5165_v24, 0.0 }
0x178d   : > { %v2713_v26 = vadd.f32 %v2712_v35, %v2711_v42 }
0x178f   : > { %v2714_v48 = vrot.slane %v2713_v26, 4 }
0x1791   : > { %v2715_v33 = vadd.f32 %v2714_v48, %v2713_v26 }
0x1793   : > { %v2716_v62 = vrot.slane %v2715_v33, 2 }
0x1795   : > { %v2717_v25 = vadd.f32 %v2716_v62, %v2715_v33 }
0x1797   : > { %v2718_v11 = vrot.slane %v2717_v25, 1 }
0x1799   : > { %v2719_v51 = vadd.f32 %v2718_v11, %v2717_v25 }
0x179b   : > { %5166 = vrcp.f32 %v2719_v51 }
0x179c   : > { %5168 = vtanh.f32 %v3097_v29 }
0x179d   : > { %5170 = vtanh.f32 %v3098_v12 }
0x17a5   : > { %v5167_v2 = vpop.eup %5166 }
0x17a6   : > { %v2721_v13 = vmul.f32 %v5167_v2, %v5163_v39  ;;  %v2722_v32 = vmul.f32 %v5167_v2, %v5165_v24  ;;  %v5169_v50 = vpop.eup %5168 }
0x17a7   : > { %v3101_v6 = vadd.f32 1.0, %v5169_v50  ;;  %v5171_v20 = vpop.eup %5170 }
0x17a8   : > { %4896 = vmatprep.mubr.msk.f32.mxu1 %vm777_vm12, %v2721_v13  ;;  %v3102_v17 = vadd.f32 1.0, %v5171_v20 }
0x17a9   : > { %4897 = vmatmul.mubr.msk.f32.vlgmr.msra.gmra.mrb[28].mxu1 %vm777_vm12, %v2722_v32  ;;  %v3103_v19 = vmul.f32 0.5, %v3101_v6 }
0x17aa   : > { %4908 = vmatpush3.msk.msra.mxu1 %vm811_vm5, %v7015_v4  ;;  %v5070_v4 = vld [vmem:[%s6957_s5 + $0x30] sm:$0xff]   ;;  %v3104_v24 = vmul.f32 0.5, %v3102_v17 }
0x17ab   : > { %4920 = vmatprep.subr.bf16.mxu1 %v7013_v3  ;;  %4900 = vmatpush3.bf16.msra.mxu0 %v5070_v4  ;;  %v6400_v39 = vmul.f32 %v3103_v19, %v6345_v59 }
0x17ac   : > { %4901 = vmatprep.subr.bf16.mxu0 %v7013_v3  ;;  %v6405_v42 = vmul.f32 %v3104_v24, %v6347_v10 }
0x17af   : > { %4902 = vmatpush3.bf16.msra.mxu0 %v5071_v28 }
0x17b0   : > { %4912 = vmatprep.subr.bf16.mxu0 %v7013_v3 }
0x187c   : > { %v4898_v8 = vpop.f32.mrb[28].mxu1 }
0x187d   : > { %v2805_v53 = vmul.f32 %v4898_v8, %v6347_v10  ;;  %v2795_v41 = vpop.f32.mrb[29].mxu1 }
0x187e   : > { %v2804_v5 = vmul.f32 %v2795_v41, %v6345_v59  ;;  %v2830_v41 = vrot.slane %v6305_v30, %v5748_v43 }
0x187f   : > { %v2807_v27 = vsel %vm396_vm0, %v2805_v53, 0.0 }
0x1880   : > { %v2806_v16 = vsel %vm396_vm0, %v2804_v5, 0.0 }
0x1881   : > { %v2808_v18 = vadd.f32 %v2807_v27, %v2806_v16 }
0x1883   : > { %v2809_v37 = vrot.slane %v2808_v18, 4 }
0x1885   : > { %v2810_v47 = vadd.f32 %v2809_v37, %v2808_v18 }
0x1887   : > { %v2811_v45 = vrot.slane %v2810_v47, 2 }
0x1889   : > { %v2812_v1 = vadd.f32 %v2811_v45, %v2810_v47 }
0x188b   : > { %v2813_v21 = vrot.slane %v2812_v1, 1 }
0x188d   : > { %v2814_v9 = vadd.f32 %v2813_v21, %v2812_v1 }
0x188f   : > { %2816 = vrot.lane.b32.xlu0 %v2814_v9, %s5349_s22 }
0x1901   : > { %v2817_v63 = vpop.permute.xlu0 %2816 }
0x1902   : > { %v6391_v57 = vmul.f32 %v2817_v63, %v6345_v59  ;;  %v6394_v23 = vmul.f32 %v2817_v63, %v6347_v10 }
0x1904   : > { %v2821_v55 = vpack.c.bf16 %v6394_v23, %v6391_v57 }
0x1906   : > { %2832 = vrot.lane.b32.xlu1 %v2821_v55, %s5350_s21 }
0x190a   : > { %3109 = vrot.lane.b32.xlu1 %v6400_v39, %s5349_s22 }
0x190e   : > { %3111 = vrot.lane.b32.xlu1 %v6405_v42, %s5349_s22 }
0x1978   : > { %v2833_v35 = vpop.permute.xlu1 %2832 }
0x1979   : > { %4904 = vmatmul.mubr.msk.bf16.vlgmr.msra.gmra.mrb[36].mxu0 %vm396_vm0, %v2833_v35 }
0x197a   : > { %4916 = vmatprep.mubr.msk.bf16.mxu0 %vm5347_vm1, %v7013_v3 }
0x197c   : > { %v3110_v26 = vpop.permute.xlu1 %3109 }
0x197d   : > { %v3115_v48 = vsel %vm396_vm0, %v3110_v26, 0.0 }
0x197e   : > { %3116 = vadd.xlane.f32.xlu0 %v3115_v48 }
0x1980   : > { %v3112_v33 = vpop.permute.xlu1 %3111 }
0x1981   : > { %v3118_v62 = vsel %vm396_vm0, %v3112_v33, 0.0 }
0x1982   : > { %3119 = vadd.xlane.f32.xlu1 %v3118_v62 }
0x1a0b   : > { %v3117_v25 = vpop.xlane.xlu0 %3116 }
0x1a0c   : > { %v3121_v11 = vmul.f32 0.03125, %v3117_v25 }
0x1a0e   : > { %v6415_v51 = vsub.f32 %v6400_v39, %v3121_v11 }
0x1a0f   : > { %v3120_v2 = vpop.xlane.xlu1 %3119 }
0x1a10   : > { %v3122_v13 = vmul.f32 0.03125, %v3120_v2  ;;  %v3125_v32 = vmul.f32 %v6415_v51, %v6415_v51  ;;  %v4587_v2 = vld [vmem:[%s6959_s7 + $0x178] sm:$0xff] }
0x1a12   : > { %v6420_v8 = vsub.f32 %v6405_v42, %v3122_v13  ;;  %3129 = vrot.lane.b32.xlu0 %v3125_v32, %s5349_s22  ;;  %v4586_v13 = vld [vmem:[%s6959_s7 + $0x170] sm:$0xff]  ;;  %v3162_v32 = vrot.slane %v6305_v30, %v7014_v61 }
0x1a14   : > { %v3126_v53 = vmul.f32 %v6420_v8, %v6420_v8 }
0x1a16   : > { %3131 = vrot.lane.b32.xlu1 %v3126_v53, %s5349_s22  ;;  %v3152_v53 = vrot.slane %v6305_v30, %v5770_v44  ;;  %s383_s22 = scalar_lea.vmem [#allocation7], %s4404_s20 }
0x1a17   : > { %s4312_s29 = sshll.u32 %s383_s22, 4  ;;  %s6907_s29 = int_to_ptr.vmem [resolvable:$true] %s4312_s29 }
0x1a18   : > { %s5270_s24 = scalar_lea.vmem %s6907_s29, 256 }
0x1a19   : > { %p5271_p12 = scmp.ne.s32.totalorder %s6907_s29, %s5270_s24 }
0x1a1b   : > { %p5272_p2 = pnand %p5271_p12, %p7021_p1 }
0x1a1d   : > { %p5273_p3 = pneg %p5272_p2 }
0x1a4c   : > { %v2883_v5 = vpop.f32.mrb[36].mxu0 }
0x1a4d   : > { %v2884_v27 = vadd.f32 %v2883_v5, %v2830_v41  ;;  %v4905_v16 = vpop.f32.mrb[37].mxu0  ;;  %v3347_v5 = vrot.slane %v4586_v13, 7 }
0x1a4e   : > { %v2886_v18 = vpop.f32.mrb[38].mxu0  ;;  %v4578_v16 = vld [vmem:[%s6959_s7 + $0x130] sm:$0xff] }
0x1a4f   : > { %v2890_v37 = vsel %vm5667_vm10, -3.4028235e+38, %v2884_v27  ;;  %v2887_v47 = vadd.f32 %v2886_v18, %v2830_v41  ;;  %v4906_v45 = vpop.f32.mrb[39].mxu0  ;;  %v3348_v41 = vrot.slane %v4587_v2, 7  ;;  %v4579_v18 = vld [vmem:[%s6959_s7 + $0x138] sm:$0xff] }
0x1a50   : > { %v2892_v21 = vsel %vm777_vm12, %v2890_v37, -inf  ;;  %v3228_v30 = vrot.slane %v4579_v18, 3  ;;  %v4582_v45 = vld [vmem:[%s6959_s7 + $0x150] sm:$0xff] }
0x1a51   : > { %v2891_v1 = vsel %vm5673_vm11, -3.4028235e+38, %v2887_v47  ;;  %v3349_v27 = vsel %vm1436_vm13, %v3347_v5, %v3348_v41  ;;  %v4583_v47 = vld [vmem:[%s6959_s7 + $0x158] sm:$0xff] }
0x1a52   : > { %v2893_v9 = vsel %vm777_vm12, %v2891_v1, -inf }
0x1a53   : > { %v2894_v4 = vmax.f32 %v2892_v21, %v2893_v9  ;;  %v3279_v9 = vrot.slane %v4582_v45, 5  ;;  %v4590_v45 = vld [vmem:[%s6959_s7 + $0x190] sm:$0xff] }
0x1a55   : > { %v2895_v28 = vrot.slane %v2894_v4, 4 }
0x1a57   : > { %v2896_v54 = vmax.f32 %v2894_v4, %v2895_v28  ;;  %v4584_v28 = vld [vmem:[%s6959_s7 + $0x160] sm:$0xff] }
0x1a59   : > { %v2897_v15 = vrot.slane %v2896_v54, 2 }
0x1a5b   : > { %v2898_v40 = vmax.f32 %v2896_v54, %v2897_v15  ;;  %v4585_v54 = vld [vmem:[%s6959_s7 + $0x168] sm:$0xff]  ;;  %v3313_v15 = vrot.slane %v4584_v28, 6  ;;  %v4592_v28 = vld [vmem:[%s6959_s7 + $0x1a0] sm:$0xff] }
0x1a5d   : > { %v2899_v31 = vrot.slane %v2898_v40, 1 }
0x1a5f   : > { %v2900_v0 = vmax.f32 %v2898_v40, %v2899_v31  ;;  %v3314_v40 = vrot.slane %v4585_v54, 6  ;;  %v4603_v31 = vld [vmem:[%s6959_s7 + $0x1f8] sm:$0xff] }
0x1a61   : > { %v2901_v38 = vsub.f32 %v2890_v37, %v2900_v0  ;;  %v2902_v22 = vsub.f32 %v2891_v1, %v2900_v0  ;;  %v3227_v37 = vrot.slane %v4578_v16, 3  ;;  %v3280_v1 = vrot.slane %v4583_v47, 5  ;;  %v4602_v0 = vld [vmem:[%s6959_s7 + $0x1f0] sm:$0xff]  ;;  %v4600_v16 = vld [vmem:[%s6959_s7 + $0x1e0] sm:$0xff] }
0x1a63   : > { %v2903_v49 = vmul.f32 1.442695, %v2901_v38  ;;  %v2905_v29 = vmul.f32 1.442695, %v2902_v22  ;;  %v3229_v21 = vsel %vm1313_vm14, %v3227_v37, %v3228_v30  ;;  %v3281_v4 = vsel %vm1366_vm15, %v3279_v9, %v3280_v1 }
0x1a64   : > { %v3566_v38 = vrot.slane %v4603_v31, 7  ;;  %v3315_v22 = vsel %vm1401_vm3, %v3313_v15, %v3314_v40 }
0x1a65   : > { %5172 = vpow2.f32 %v2903_v49  ;;  %v3565_v49 = vrot.slane %v4602_v0, 7  ;;  %v4572_v0 = vld [vmem:[%s6959_s7 + $0x100] sm:$0xff] }
0x1a66   : > { %5174 = vpow2.f32 %v2905_v29 }
0x1a67   : > { %v3567_v29 = vsel %vm1436_vm13, %v3565_v49, %v3566_v38 }
0x1a6f   : > { %v5173_v52 = vpop.eup %5172 }
0x1a70   : > { %v5175_v14 = vpop.eup %5174  ;;  %v2907_v12 = vsel %vm777_vm12, %v5173_v52, 0.0 }
0x1a71   : > { %v2908_v50 = vsel %vm777_vm12, %v5175_v14, 0.0 }
0x1a72   : > { %v2909_v6 = vadd.f32 %v2908_v50, %v2907_v12 }
0x1a74   : > { %v2910_v20 = vrot.slane %v2909_v6, 4 }
0x1a76   : > { %v2911_v63 = vadd.f32 %v2910_v20, %v2909_v6  ;;  %v4575_v6 = vld [vmem:[%s6959_s7 + $0x118] sm:$0xff]  ;;  %v4574_v20 = vld [vmem:[%s6959_s7 + $0x110] sm:$0xff] }
0x1a78   : > { %v2912_v55 = vrot.slane %v2911_v63, 2 }
0x1a7a   : > { %v2913_v19 = vadd.f32 %v2912_v55, %v2911_v63  ;;  %v3188_v63 = vrot.slane %v4575_v6, 1  ;;  %v4588_v6 = vld [vmem:[%s6959_s7 + $0x180] sm:$0xff] }
0x1a7c   : > { %v2914_v17 = vrot.slane %v2913_v19, 1 }
0x1a7e   : > { %v2915_v24 = vadd.f32 %v2914_v17, %v2913_v19  ;;  %v3187_v19 = vrot.slane %v4574_v20, 1 }
0x1a80   : > { %5176 = vrcp.f32 %v2915_v24  ;;  %v3189_v17 = vsel %vm1271_vm4, %v3187_v19, %v3188_v63  ;;  %v4576_v24 = vld [vmem:[%s6959_s7 + $0x120] sm:$0xff] }
0x1a84   : > { %v3130_v35 = vpop.permute.xlu0 %3129 }
0x1a85   : > { %v3135_v26 = vsel %vm396_vm0, %v3130_v35, 0.0  ;;  %v4577_v35 = vld [vmem:[%s6959_s7 + $0x128] sm:$0xff] }
0x1a86   : > { %3136 = vadd.xlane.f32.xlu0 %v3135_v26  ;;  %v3207_v26 = vrot.slane %v4576_v24, 2 }
0x1a88   : > { %v3132_v48 = vpop.permute.xlu1 %3131 }
0x1a89   : > { %v3138_v33 = vsel %vm396_vm0, %v3132_v48, 0.0  ;;  %v3208_v48 = vrot.slane %v4577_v35, 2 }
0x1a8a   : > { %v5177_v62 = vpop.eup %5176  ;;  %3139 = vadd.xlane.f32.xlu1 %v3138_v33  ;;  %v4581_v33 = vld [vmem:[%s6959_s7 + $0x148] sm:$0xff] }
0x1a8b   : > { %v2917_v25 = vmul.f32 %v5177_v62, %v5173_v52  ;;  %v2918_v11 = vmul.f32 %v5177_v62, %v5175_v14  ;;  %v4594_v52 = vld [vmem:[%s6959_s7 + $0x1b0] sm:$0xff]  ;;  %v4595_v14 = vld [vmem:[%s6959_s7 + $0x1b8] sm:$0xff]  ;;  %v4580_v62 = vld [vmem:[%s6959_s7 + $0x140] sm:$0xff] }
0x1a8c   : > { %v3442_v12 = vrot.slane %v4594_v52, 3  ;;  %v3443_v50 = vrot.slane %v4595_v14, 3  ;;  %v3247_v2 = vrot.slane %v4580_v62, 4 }
0x1a8d   : > { %4909 = vmatprep.mubr.msk.f32.mxu1 %vm777_vm12, %v2917_v25  ;;  %v3248_v25 = vrot.slane %v4581_v33, 4 }
0x1a8e   : > { %4910 = vmatmul.mubr.msk.f32.vlgmr.msra.gmra.mrb[30].mxu1 %vm777_vm12, %v2918_v11  ;;  %v3444_v55 = vsel %vm1313_vm14, %v3442_v12, %v3443_v50  ;;  %v3209_v11 = vsel %vm1292_vm6, %v3207_v26, %v3208_v48 }
0x1a8f   : > { %4924 = vmatprep.mubr.msk.bf16.mxu1 %vm5347_vm1, %v7013_v3  ;;  %v3249_v13 = vsel %vm811_vm5, %v3247_v2, %v3248_v25 }
0x1a9b   : > { %3164 = vrot.lane.b32.xlu1 %v3162_v32, %s5350_s21  ;;  %v4598_v32 = vld [vmem:[%s6959_s7 + $0x1d0] sm:$0xff] }
0x1a9c   : > { %3154 = vrot.lane.b32.xlu0 %v3152_v53, %s5350_s21  ;;  %v4599_v53 = vld [vmem:[%s6959_s7 + $0x1d8] sm:$0xff] }
0x1a9f   : > { %3352 = vrot.lane.b32.xlu1 %v3349_v27, %s5350_s21  ;;  %v4601_v27 = vld [vmem:[%s6959_s7 + $0x1e8] sm:$0xff] }
0x1aa0   : > { %3350 = vrot.lane.b32.xlu0 %v3347_v5, %s5350_s21  ;;  %v3498_v5 = vrot.slane %v4599_v53, 5  ;;  %v3532_v18 = vrot.slane %v4601_v27, 6 }
0x1aa3   : > { %3230 = vrot.lane.b32.xlu1 %v3227_v37, %s5350_s21 }
0x1aa4   : > { %3354 = vrot.lane.b32.xlu0 %v3348_v41, %s5350_s21  ;;  %v3497_v41 = vrot.slane %v4598_v32, 5 }
0x1aa6   : > { %v3499_v37 = vsel %vm1366_vm15, %v3497_v41, %v3498_v5 }
0x1aa7   : > { %3234 = vrot.lane.b32.xlu1 %v3228_v30, %s5350_s21  ;;  %v3531_v30 = vrot.slane %v4600_v16, 6 }
0x1aa8   : > { %3232 = vrot.lane.b32.xlu0 %v3229_v21, %s5350_s21  ;;  %v3396_v21 = vrot.slane %v4590_v45, 1 }
0x1aa9   : > { %v3533_v47 = vsel %vm1401_vm3, %v3531_v30, %v3532_v18 }
0x1aab   : > { %3284 = vrot.lane.b32.xlu1 %v3281_v4, %s5350_s21  ;;  %v4593_v4 = vld [vmem:[%s6959_s7 + $0x1a8] sm:$0xff] }
0x1aac   : > { %3282 = vrot.lane.b32.xlu0 %v3279_v9, %s5350_s21  ;;  %v3420_v54 = vrot.slane %v4593_v4, 2 }
0x1aaf   : > { %3316 = vrot.lane.b32.xlu1 %v3313_v15, %s5350_s21 }
0x1ab0   : > { %3286 = vrot.lane.b32.xlu0 %v3280_v1, %s5350_s21  ;;  %v4591_v1 = vld [vmem:[%s6959_s7 + $0x198] sm:$0xff] }
0x1ab1   : > { %v3397_v9 = vrot.slane %v4591_v1, 1 }
0x1ab3   : > { %3320 = vrot.lane.b32.xlu1 %v3314_v40, %s5350_s21  ;;  %v3398_v15 = vsel %vm1271_vm4, %v3396_v21, %v3397_v9  ;;  %v3419_v40 = vrot.slane %v4592_v28, 2 }
0x1ab4   : > { %3318 = vrot.lane.b32.xlu0 %v3315_v22, %s5350_s21  ;;  %v4597_v22 = vld [vmem:[%s6959_s7 + $0x1c8] sm:$0xff] }
0x1ab5   : > { %v3421_v31 = vsel %vm1292_vm6, %v3419_v40, %v3420_v54  ;;  %v3466_v52 = vrot.slane %v4597_v22, 4 }
0x1ab7   : > { %3570 = vrot.lane.b32.xlu1 %v3567_v29, %s5350_s21  ;;  %v4573_v29 = vld [vmem:[%s6959_s7 + $0x108] sm:$0xff] }
0x1ab8   : > { %3568 = vrot.lane.b32.xlu0 %v3565_v49, %s5350_s21 }
0x1abb   : > { %3445 = vrot.lane.b32.xlu1 %v3442_v12, %s5350_s21  ;;  %v4589_v12 = vld [vmem:[%s6959_s7 + $0x188] sm:$0xff] }
0x1abc   : > { %3572 = vrot.lane.b32.xlu0 %v3566_v38, %s5350_s21  ;;  %v4596_v38 = vld [vmem:[%s6959_s7 + $0x1c0] sm:$0xff] }
0x1abd   : > { %v3465_v49 = vrot.slane %v4596_v38, 4 }
0x1abf   : > { %3449 = vrot.lane.b32.xlu1 %v3443_v50, %s5350_s21  ;;  %v3467_v14 = vsel %vm811_vm5, %v3465_v49, %v3466_v52  ;;  %v6602_v50 = vld [vmem:[%s6958_s6 + $0x20] sm:$0xff] }
0x1ac0   : > { %3447 = vrot.lane.b32.xlu0 %v3444_v55, %s5350_s21  ;;  %v3635_v20 = vrot.slane %v6602_v50, %v7016_v7 }
0x1ac3   : > { %3192 = vrot.lane.b32.xlu1 %v3189_v17, %s5350_s21 }
0x1ac4   : > { %3190 = vrot.lane.b32.xlu0 %v3187_v19, %s5350_s21 }
0x1ac7   : > { %3210 = vrot.lane.b32.xlu1 %v3207_v26, %s5350_s21 }
0x1ac8   : > { %3194 = vrot.lane.b32.xlu0 %v3188_v63, %s5350_s21 }
0x1acb   : > { %3214 = vrot.lane.b32.xlu1 %v3208_v48, %s5350_s21 }
0x1acc   : > { %3212 = vrot.lane.b32.xlu0 %v3209_v11, %s5350_s21 }
0x1acf   : > { %3252 = vrot.lane.b32.xlu1 %v3249_v13, %s5350_s21 }
0x1ad0   : > { %3250 = vrot.lane.b32.xlu0 %v3247_v2, %s5350_s21 }
0x1ad3   : > { %3500 = vrot.lane.b32.xlu1 %v3497_v41, %s5350_s21 }
0x1ad4   : > { %3254 = vrot.lane.b32.xlu0 %v3248_v25, %s5350_s21 }
0x1ad7   : > { %3504 = vrot.lane.b32.xlu1 %v3498_v5, %s5350_s21 }
0x1ad8   : > { %3502 = vrot.lane.b32.xlu0 %v3499_v37, %s5350_s21 }
0x1adb   : > { %3536 = vrot.lane.b32.xlu1 %v3533_v47, %s5350_s21 }
0x1adc   : > { %3534 = vrot.lane.b32.xlu0 %v3531_v30, %s5350_s21 }
0x1adf   : > { %3399 = vrot.lane.b32.xlu1 %v3396_v21, %s5350_s21 }
0x1ae0   : > { %3538 = vrot.lane.b32.xlu0 %v3532_v18, %s5350_s21 }
0x1ae3   : > { %3403 = vrot.lane.b32.xlu1 %v3397_v9, %s5350_s21 }
0x1ae4   : > { %3401 = vrot.lane.b32.xlu0 %v3398_v15, %s5350_s21 }
0x1ae7   : > { %3424 = vrot.lane.b32.xlu1 %v3421_v31, %s5350_s21 }
0x1ae8   : > { %3422 = vrot.lane.b32.xlu0 %v3419_v40, %s5350_s21 }
0x1aeb   : > { %3174 = vrot.lane.b32.xlu1 %v4572_v0, %s5350_s21 }
0x1aec   : > { %3426 = vrot.lane.b32.xlu0 %v3420_v54, %s5350_s21 }
0x1aef   : > { %3468 = vrot.lane.b32.xlu1 %v3465_v49, %s5350_s21 }
0x1af0   : > { %3176 = vrot.lane.b32.xlu0 %v4573_v29, %s5350_s21 }
0x1af3   : > { %3472 = vrot.lane.b32.xlu1 %v3466_v52, %s5350_s21 }
0x1af4   : > { %3470 = vrot.lane.b32.xlu0 %v3467_v14, %s5350_s21 }
0x1af7   : > { %3383 = vrot.lane.b32.xlu1 %v4589_v12, %s5350_s21 }
0x1af8   : > { %3381 = vrot.lane.b32.xlu0 %v4588_v6, %s5350_s21 }
0x1afc   : > { %3637 = vrot.lane.b32.xlu0 %v3635_v20, %s5350_s21 }
0x1b13   : > { %v3137_v63 = vpop.xlane.xlu0 %3136 }
0x1b14   : > { %v3141_v55 = vmul.f32 0.03125, %v3137_v63 }
0x1b16   : > { %v3143_v19 = vadd.f32 1e-05, %v3141_v55 }
0x1b17   : > { %v3155_v17 = vpop.permute.xlu0 %3154  ;;  %v3140_v24 = vpop.xlane.xlu1 %3139 }
0x1b18   : > { %5178 = vrsqrt.f32 %v3143_v19  ;;  %v3142_v35 = vmul.f32 0.03125, %v3140_v24 }
0x1b1a   : > { %v3144_v26 = vadd.f32 1e-05, %v3142_v35 }
0x1b1b   : > { %v3351_v48 = vpop.permute.xlu0 %3350  ;;  %v3165_v33 = vpop.permute.xlu1 %3164 }
0x1b1c   : > { %5180 = vrsqrt.f32 %v3144_v26 }
0x1b1f   : > { %v3355_v62 = vpop.permute.xlu0 %3354  ;;  %v3353_v25 = vpop.permute.xlu1 %3352 }
0x1b22   : > { %v5179_v11 = vpop.eup %5178 }
0x1b23   : > { %v3147_v2 = vmul.f32 %v5179_v11, %v6415_v51  ;;  %v3233_v13 = vpop.permute.xlu0 %3232  ;;  %v3231_v32 = vpop.permute.xlu1 %3230 }
0x1b25   : > { %v3157_v53 = vmul.f32 %v3155_v17, %v3147_v2 }
0x1b26   : > { %v5181_v41 = vpop.eup %5180 }
0x1b27   : > { %v3148_v5 = vmul.f32 %v5181_v41, %v6420_v8  ;;  %v6614_v27 = vadd.f32 %v3165_v33, %v3157_v53  ;;  %v3283_v16 = vpop.permute.xlu0 %3282  ;;  %v3235_v18 = vpop.permute.xlu1 %3234 }
0x1b29   : > { %v3158_v37 = vmul.f32 %v3155_v17, %v3148_v5  ;;  %v3360_v30 = vmul.f32 %v3353_v25, %v6614_v27  ;;  %v3240_v47 = vmul.f32 %v3233_v13, %v6614_v27 }
0x1b2b   : > { %v6618_v45 = vadd.f32 %v3165_v33, %v3158_v37  ;;  %v3287_v1 = vpop.permute.xlu0 %3286  ;;  %v3285_v21 = vpop.permute.xlu1 %3284  ;;  %v3366_v0 = vrot.slane %v3360_v30, 4 }
0x1b2c   : > { %v3292_v51 = vmul.f32 %v3285_v21, %v6614_v27 }
0x1b2d   : > { %v3361_v9 = vmul.f32 %v3355_v62, %v6618_v45  ;;  %v3359_v4 = vmul.f32 %v3351_v48, %v6618_v45  ;;  %v3239_v8 = vmul.f32 %v3231_v32, %v6618_v45  ;;  %v3291_v28 = vmul.f32 %v3283_v16, %v6618_v45 }
0x1b2e   : > { %v3241_v54 = vmul.f32 %v3235_v18, %v6618_v45  ;;  %v3293_v15 = vmul.f32 %v3287_v1, %v6618_v45  ;;  %v3298_v40 = vrot.slane %v3292_v51, 4 }
0x1b2f   : > { %v3368_v31 = vrot.slane %v3361_v9, 4  ;;  %v3365_v38 = vrot.slane %v3359_v4, 4  ;;  %v3297_v22 = vrot.slane %v3291_v28, 4  ;;  %v3319_v49 = vpop.permute.xlu0 %3318  ;;  %v3317_v29 = vpop.permute.xlu1 %3316 }
0x1b30   : > { %v3300_v52 = vrot.slane %v3293_v15, 4  ;;  %v3326_v14 = vmul.f32 %v3319_v49, %v6614_v27  ;;  %v6629_v12 = vmul.f32 %v3317_v29, %v6618_v45 }
0x1b31   : > { %v3367_v6 = vsel %vm811_vm5, %v3365_v38, %v3366_v0  ;;  %v3373_v20 = vadd.f32 %v3365_v38, %v3239_v8  ;;  %v3369_v63 = vsel %vm811_vm5, %v3366_v0, %v3368_v31  ;;  %v3299_v55 = vsel %vm811_vm5, %v3297_v22, %v3298_v40 }
0x1b32   : > { %v3374_v19 = vadd.f32 %v3367_v6, %v3240_v47  ;;  %v3375_v17 = vadd.f32 %v3369_v63, %v3241_v54  ;;  %v3332_v24 = vrot.slane %v3326_v14, 4  ;;  %v3331_v35 = vrot.slane %v6629_v12, 4 }
0x1b33   : > { %v3569_v26 = vpop.permute.xlu0 %3568  ;;  %v3321_v48 = vpop.permute.xlu1 %3320  ;;  %v3301_v33 = vsel %vm811_vm5, %v3298_v40, %v3300_v52 }
0x1b34   : > { %v3327_v62 = vmul.f32 %v3321_v48, %v6618_v45  ;;  %v3333_v25 = vsel %vm811_vm5, %v3331_v35, %v3332_v24  ;;  %v3577_v11 = vmul.f32 %v3569_v26, %v6614_v27 }
0x1b36   : > { %v3334_v2 = vrot.slane %v3327_v62, 4  ;;  %v3583_v16 = vrot.slane %v3577_v11, 4 }
0x1b37   : > { %v3573_v13 = vpop.permute.xlu0 %3572  ;;  %v3571_v32 = vpop.permute.xlu1 %3570 }
0x1b38   : > { %v3579_v53 = vmul.f32 %v3573_v13, %v6614_v27  ;;  %v3578_v41 = vmul.f32 %v3571_v32, %v6618_v45  ;;  %v3335_v5 = vsel %vm811_vm5, %v3332_v24, %v3334_v2 }
0x1b3a   : > { %v3586_v18 = vrot.slane %v3579_v53, 4  ;;  %v3584_v37 = vrot.slane %v3578_v41, 4 }
0x1b3b   : > { %v3448_v30 = vpop.permute.xlu0 %3447  ;;  %v3446_v47 = vpop.permute.xlu1 %3445 }
0x1b3c   : > { %v3455_v1 = vmul.f32 %v3448_v30, %v6618_v45  ;;  %v3585_v21 = vsel %vm811_vm5, %v3583_v16, %v3584_v37  ;;  %v3454_v51 = vmul.f32 %v3446_v47, %v6614_v27  ;;  %v3587_v9 = vsel %vm811_vm5, %v3584_v37, %v3586_v18 }
0x1b3e   : > { %v3458_v4 = vadd.f32 %v3455_v1, %v3374_v19  ;;  %v3457_v8 = vadd.f32 %v3454_v51, %v3373_v20 }
0x1b3f   : > { %v3191_v28 = vpop.permute.xlu0 %3190  ;;  %v3450_v54 = vpop.permute.xlu1 %3449 }
0x1b40   : > { %v3592_v15 = vadd.f32 %v3585_v21, %v3458_v4  ;;  %v6648_v40 = vadd.f32 %v3583_v16, %v3457_v8  ;;  %v3199_v31 = vmul.f32 %v3191_v28, %v6618_v45  ;;  %v3456_v0 = vmul.f32 %v3450_v54, %v6614_v27 }
0x1b42   : > { %v3610_v38 = vrot.slane %v3592_v15, 7  ;;  %v3609_v49 = vrot.slane %v6648_v40, 7  ;;  %v3305_v29 = vadd.f32 %v3297_v22, %v3199_v31  ;;  %v3459_v52 = vadd.f32 %v3456_v0, %v3375_v17 }
0x1b43   : > { %v3195_v14 = vpop.permute.xlu0 %3194  ;;  %v3193_v6 = vpop.permute.xlu1 %3192 }
0x1b44   : > { %v3593_v63 = vadd.f32 %v3587_v9, %v3459_v52  ;;  %v3201_v19 = vmul.f32 %v3195_v14, %v6618_v45  ;;  %v3200_v20 = vmul.f32 %v3193_v6, %v6614_v27  ;;  %v6658_v24 = vsel %vm1436_vm13, %v3609_v49, %v3610_v38 }
0x1b46   : > { %v3612_v26 = vrot.slane %v3593_v63, 7  ;;  %v3307_v48 = vadd.f32 %v3301_v33, %v3201_v19  ;;  %v3306_v62 = vadd.f32 %v3299_v55, %v3200_v20 }
0x1b47   : > { %v3213_v11 = vpop.permute.xlu0 %3212  ;;  %v3211_v2 = vpop.permute.xlu1 %3210 }
0x1b48   : > { %v3220_v22 = vmul.f32 %v3213_v11, %v6614_v27  ;;  %v6662_v17 = vsel %vm1436_vm13, %v3610_v38, %v3612_v26 }
0x1b4a   : > { %v6664_v13 = vadd.f32 %v3333_v25, %v3220_v22 }
0x1b4b   : > { %v3251_v32 = vpop.permute.xlu0 %3250  ;;  %v3215_v53 = vpop.permute.xlu1 %3214 }
0x1b4c   : > { %v3221_v41 = vmul.f32 %v3215_v53, %v6618_v45  ;;  %v3259_v16 = vmul.f32 %v3251_v32, %v6618_v45  ;;  %v3219_v53 = vmul.f32 %v3211_v2, %v6618_v45 }
0x1b4e   : > { %v3341_v18 = vadd.f32 %v3335_v5, %v3221_v41  ;;  %v3265_v47 = vrot.slane %v3259_v16, 4 }
0x1b4f   : > { %v3255_v37 = vpop.permute.xlu0 %3254  ;;  %v3253_v30 = vpop.permute.xlu1 %3252 }
0x1b50   : > { %v3261_v55 = vmul.f32 %v3255_v37, %v6618_v45  ;;  %v3260_v33 = vmul.f32 %v3253_v30, %v6614_v27 }
0x1b52   : > { %v3268_v1 = vrot.slane %v3261_v55, 4  ;;  %v3266_v21 = vrot.slane %v3260_v33, 4 }
0x1b53   : > { %v3503_v51 = vpop.permute.xlu0 %3502  ;;  %v3501_v9 = vpop.permute.xlu1 %3500 }
0x1b54   : > { %v3510_v25 = vmul.f32 %v3503_v51, %v6618_v45  ;;  %v3509_v4 = vmul.f32 %v3501_v9, %v6614_v27  ;;  %v3269_v8 = vsel %vm811_vm5, %v3266_v21, %v3268_v1  ;;  %v3267_v28 = vsel %vm811_vm5, %v3265_v47, %v3266_v21 }
0x1b55   : > { %v3339_v9 = vadd.f32 %v3331_v35, %v3219_v53 }
0x1b56   : > { %v3516_v5 = vrot.slane %v3510_v25, 4  ;;  %v3515_v54 = vrot.slane %v3509_v4, 4 }
0x1b57   : > { %v3535_v15 = vpop.permute.xlu0 %3534  ;;  %v3505_v31 = vpop.permute.xlu1 %3504 }
0x1b58   : > { %v3511_v0 = vmul.f32 %v3505_v31, %v6614_v27  ;;  %v3517_v38 = vsel %vm811_vm5, %v3515_v54, %v3516_v5  ;;  %v3543_v52 = vmul.f32 %v3535_v15, %v6614_v27 }
0x1b5a   : > { %v3518_v14 = vrot.slane %v3511_v0, 4  ;;  %v3549_v11 = vrot.slane %v3543_v52, 4 }
0x1b5b   : > { %v3539_v6 = vpop.permute.xlu0 %3538  ;;  %v3537_v63 = vpop.permute.xlu1 %3536 }
0x1b5c   : > { %v3545_v19 = vmul.f32 %v3539_v6, %v6614_v27  ;;  %v3544_v20 = vmul.f32 %v3537_v63, %v6618_v45  ;;  %v3519_v26 = vsel %vm811_vm5, %v3516_v5, %v3518_v14 }
0x1b5e   : > { %v3552_v22 = vrot.slane %v3545_v19, 4  ;;  %v3550_v32 = vrot.slane %v3544_v20, 4 }
0x1b5f   : > { %v3402_v41 = vpop.permute.xlu0 %3401  ;;  %v3400_v16 = vpop.permute.xlu1 %3399 }
0x1b60   : > { %v3409_v37 = vmul.f32 %v3402_v41, %v6618_v45  ;;  %v3408_v30 = vmul.f32 %v3400_v16, %v6614_v27  ;;  %v3553_v55 = vsel %vm811_vm5, %v3550_v32, %v3552_v22  ;;  %v3551_v33 = vsel %vm811_vm5, %v3549_v11, %v3550_v32 }
0x1b61   : > { %v6685_v47 = vpop.f32.mrb[30].mxu1 }
0x1b62   : > { %v3412_v1 = vadd.f32 %v3409_v37, %v3306_v62  ;;  %v3411_v21 = vadd.f32 %v3408_v30, %v3305_v29  ;;  %v6687_v51 = vpop.f32.mrb[31].mxu1 }
0x1b63   : > { %v3423_v2 = vpop.permute.xlu0 %3422  ;;  %v3404_v25 = vpop.permute.xlu1 %3403 }
0x1b64   : > { %v3524_v4 = vadd.f32 %v3517_v38, %v3412_v1  ;;  %v3523_v5 = vadd.f32 %v3515_v54, %v3411_v21  ;;  %v3431_v15 = vmul.f32 %v3423_v2, %v6614_v27  ;;  %v3410_v31 = vmul.f32 %v3404_v25, %v6614_v27 }
0x1b66   : > { %v3598_v0 = vrot.slane %v3524_v4, 7  ;;  %v3597_v52 = vrot.slane %v3523_v5, 7  ;;  %v3434_v14 = vadd.f32 %v3431_v15, %v3339_v9  ;;  %v3413_v6 = vadd.f32 %v3410_v31, %v3307_v48 }
0x1b67   : > { %v3427_v63 = vpop.permute.xlu0 %3426  ;;  %v3425_v62 = vpop.permute.xlu1 %3424 }
0x1b68   : > { %v3557_v29 = vadd.f32 %v3549_v11, %v3434_v14  ;;  %v3525_v19 = vadd.f32 %v3519_v26, %v3413_v6  ;;  %v3433_v20 = vmul.f32 %v3427_v63, %v6614_v27  ;;  %v3432_v12 = vmul.f32 %v3425_v62, %v6618_v45 }
0x1b69   : > { %v3599_v35 = vsel %vm1436_vm13, %v3597_v52, %v3598_v0 }
0x1b6a   : > { %v3617_v54 = vadd.f32 %v3609_v49, %v3557_v29  ;;  %v3600_v38 = vrot.slane %v3525_v19, 7  ;;  %v3436_v22 = vadd.f32 %v3433_v20, %v3341_v18  ;;  %v3435_v32 = vadd.f32 %v3432_v12, %v6664_v13 }
0x1b6b   : > { %v3177_v53 = vpop.permute.xlu0 %3176  ;;  %v3175_v41 = vpop.permute.xlu1 %3174 }
0x1b6c   : > { %v3559_v48 = vadd.f32 %v3553_v55, %v3436_v22  ;;  %v3558_v16 = vadd.f32 %v3551_v33, %v3435_v32  ;;  %v3181_v11 = vmul.f32 %v3177_v53, %v6618_v45  ;;  %v3180_v26 = vmul.f32 %v3175_v41, %v6614_v27 }
0x1b6d   : > { %v3601_v37 = vsel %vm1436_vm13, %v3598_v0, %v3600_v38  ;;  %v3623_v49 = vrot.slane %v3617_v54, 6 }
0x1b6e   : > { %v3619_v30 = vadd.f32 %v6662_v17, %v3559_v48  ;;  %v3618_v1 = vadd.f32 %v6658_v24, %v3558_v16  ;;  %v3273_v40 = vadd.f32 %v3269_v8, %v3181_v11  ;;  %v3272_v21 = vadd.f32 %v3267_v28, %v3180_v26 }
0x1b6f   : > { %v3471_v18 = vpop.permute.xlu0 %3470  ;;  %v3469_v9 = vpop.permute.xlu1 %3468 }
0x1b70   : > { %v3626_v13 = vrot.slane %v3619_v30, 6  ;;  %v3624_v2 = vrot.slane %v3618_v1, 6  ;;  %v3478_v55 = vmul.f32 %v3471_v18, %v6618_v45  ;;  %v3477_v33 = vmul.f32 %v3469_v9, %v6614_v27 }
0x1b72   : > { %v3484_v25 = vrot.slane %v3478_v55, 4  ;;  %v3483_v4 = vrot.slane %v3477_v33, 4  ;;  %v3625_v5 = vsel %vm1401_vm3, %v3623_v49, %v3624_v2  ;;  %v3627_v15 = vsel %vm1401_vm3, %v3624_v2, %v3626_v13 }
0x1b73   : > { %v3382_v17 = vpop.permute.xlu0 %3381  ;;  %v3473_v31 = vpop.permute.xlu1 %3472 }
0x1b74   : > { %v3387_v24 = vmul.f32 %v3382_v17, %v6618_v45  ;;  %v3485_v8 = vsel %vm811_vm5, %v3483_v4, %v3484_v25  ;;  %v3479_v28 = vmul.f32 %v3473_v31, %v6614_v27 }
0x1b76   : > { %v3389_v0 = vadd.f32 %v3387_v24, %v3272_v21  ;;  %v3486_v52 = vrot.slane %v3479_v28, 4 }
0x1b77   : > { %v3384_v14 = vpop.permute.xlu1 %3383  ;;  %v3638_v20 = vpop.permute.xlu0 %3637 }
0x1b78   : > { %v3490_v6 = vadd.f32 %v3485_v8, %v3389_v0  ;;  %v3487_v63 = vsel %vm811_vm5, %v3484_v25, %v3486_v52  ;;  %v3388_v62 = vmul.f32 %v3384_v14, %v6614_v27  ;;  %v5076_v52 = vld [vmem:[%s6954_s2 + $0x60] sm:$0xff]   ;;  %v5077_v14 = vld [vmem:[%s6954_s2 + $0x68] sm:$0xff]  }
0x1b7a   : > { %v3390_v29 = vadd.f32 %v3388_v62, %v3273_v40  ;;  %v3604_v19 = vadd.f32 %v3599_v35, %v3490_v6  ;;  %v5073_v40 = vld [vmem:[%s6954_s2 + $0x48] sm:$0xff]   ;;  %v5078_v6 = vld [vmem:[%s6954_s2 + $0x70] sm:$0xff]   ;;  %v5212_v62 = vld [vmem:[%s6958_s6 + $0x18] sm:$0xff] }
0x1b7c   : > { %v3491_v12 = vadd.f32 %v3487_v63, %v3390_v29  ;;  %v3630_v54 = vadd.f32 %v3625_v5, %v3604_v19  ;;  %v5079_v63 = vld [vmem:[%s6954_s2 + $0x78] sm:$0xff]   ;;  %v3030_v29 = vrot.slane %v5212_v62, %v6141_v60  ;;  %v4617_v19 = vld [vmem:[%s6960_s8 + $0x80] sm:$0xff] }
0x1b7e   : > { %v3605_v38 = vadd.f32 %v3601_v37, %v3491_v12  ;;  %v3640_v22 = vadd.f32 %v3638_v20, %v3630_v54  ;;  %v5072_v37 = vld [vmem:[%s6954_s2 + $0x40] sm:$0xff]  }
0x1b7f   : > { %4913 = vmatpush3.bf16.msra.mxu0 %v5072_v37 }
0x1b80   : > { %v3631_v45 = vadd.f32 %v3627_v15, %v3605_v38  ;;  %v4604_v32 = vmul.f32 -1.442695, %v3640_v22  ;;  %4914 = vmatprep.subr.bf16.mxu0 %v7013_v3  ;;  %v4613_v38 = vld [vmem:[%s6960_s8 + $0x60] sm:$0xff] }
0x1b82   : > { %v3641_v53 = vadd.f32 %v3638_v20, %v3631_v45  ;;  %5182 = vpow2.f32 %v4604_v32  ;;  %v4618_v20 = vld [vmem:[%s6960_s8 + $0x88] sm:$0xff]  ;;  %v3759_v45 = vrot.slane %v4617_v19, 7 }
0x1b83   : > { %4915 = vmatpush3.bf16.msra.mxu0 %v5073_v40  ;;  %v3760_v32 = vrot.slane %v4618_v20, 7  ;;  %v4616_v40 = vld [vmem:[%s6960_s8 + $0x78] sm:$0xff]  ;;  %v4623_v20 = vld [vmem:[%s6960_s8 + $0xb0] sm:$0xff] }
0x1b84   : > { %v4605_v41 = vmul.f32 -1.442695, %v3641_v53  ;;  %4928 = vmatprep.subr.bf16.mxu0 %v7013_v3 }
0x1b86   : > { %5184 = vpow2.f32 %v4605_v41  ;;  %v4615_v41 = vld [vmem:[%s6960_s8 + $0x70] sm:$0xff] }
0x1b8c   : > { %v5183_v48 = vpop.eup %5182 }
0x1b8d   : > { %v3648_v16 = vadd.f32 1.0, %v5183_v48 }
0x1b8f   : > { %5186 = vrcp.f32 %v3648_v16 }
0x1b90   : > { %v5185_v11 = vpop.eup %5184 }
0x1b91   : > { %v3649_v26 = vadd.f32 1.0, %v5185_v11 }
0x1b93   : > { %5188 = vrcp.f32 %v3649_v26 }
0x1b99   : > { %v5187_v27 = vpop.eup %5186 }
0x1b9a   : > { %v3654_v30 = vmul.f32 %v5187_v27, %v3640_v22  ;;  %v4614_v22 = vld [vmem:[%s6960_s8 + $0x68] sm:$0xff]  ;;  %v3740_v27 = vrot.slane %v4613_v38, 1  ;;  %v4619_v38 = vld [vmem:[%s6960_s8 + $0x90] sm:$0xff] }
0x1b9c   : > { %3658 = vrot.lane.b32.xlu1 %v3654_v30, %s5350_s21  ;;  %v3741_v30 = vrot.slane %v4614_v22, 1  ;;  %v4620_v22 = vld [vmem:[%s6960_s8 + $0x98] sm:$0xff] }
0x1b9d   : > { %v5189_v35 = vpop.eup %5188 }
0x1b9e   : > { %v3655_v1 = vmul.f32 %v5189_v35, %v3641_v53 }
0x1ba0   : > { %3002 = vrot.lane.b32.xlu1 %v6391_v57, %s5350_s21  ;;  %3660 = vrot.lane.b32.xlu0 %v3655_v1, %s5350_s21  ;;  %v5074_v57 = vld [vmem:[%s6954_s2 + $0x50] sm:$0xff]  }
0x1ba1   : > { %4921 = vmatpush3.bf16.msra.mxu1 %v5074_v57  ;;  %v3761_v57 = vsel %vm1436_vm13, %v3759_v45, %v3760_v32 }
0x1ba2   : > { %4922 = vmatprep.subr.bf16.mxu1 %v7013_v3 }
0x1ba4   : > { %3004 = vrot.lane.b32.xlu0 %v6394_v23, %s5350_s21  ;;  %v5075_v23 = vld [vmem:[%s6954_s2 + $0x58] sm:$0xff]   ;;  %s5274_s21 = sshll.u32 %s5352_s28, 4  ;;  %s5275_s21 = int_to_ptr.vmem [resolvable:$false] %s5274_s21 }
0x1ba5   : > { %4923 = vmatpush3.bf16.msra.mxu1 %v5075_v23  ;;  %s5276_s30 = scalar_lea.vmem %s5275_s21, 512  ;;  %p5277_p4 = scmp.lt.s32.totalorder %s6907_s29, %s5275_s21 }
0x1ba6   : > { %4936 = vmatprep.subr.bf16.mxu1 %v7013_v3  ;;  %p5278_p7 = scmp.lt.s32.totalorder %s5276_s30, %s5270_s24 }
0x1ba8   : > { %p5279_p8 = por %p5278_p7, %p5277_p4 }
0x1baa   : > { %p5280_p11 = pnand %p5279_p8, %p5273_p3 }
0x1c0e   : > { %v3659_v49 = vpop.permute.xlu1 %3658 }
0x1c0f   : > { %v3664_v9 = vmul.f32 %v3659_v49, %v6400_v39 }
0x1c12   : > { %v3661_v21 = vpop.permute.xlu0 %3660  ;;  %v3003_v18 = vpop.permute.xlu1 %3002 }
0x1c13   : > { %v3665_v13 = vmul.f32 %v3661_v21, %v6405_v42  ;;  %v3008_v55 = vmul.f32 %v3003_v18, %v6687_v51  ;;  %v3742_v21 = vsel %vm1271_vm4, %v3740_v27, %v3741_v30 }
0x1c15   : > { %v3666_v2 = vpack.c.bf16 %v3665_v13, %v3664_v9  ;;  %v3010_v4 = vsel %vm396_vm0, %v3008_v55, 0.0 }
0x1c16   : > { %v3005_v33 = vpop.permute.xlu0 %3004 }
0x1c17   : > { %v3009_v25 = vmul.f32 %v6685_v47, %v3005_v33  ;;  %3677 = vrot.lane.b32.xlu1 %v3666_v2, %s5351_s11 }
0x1c19   : > { %v3011_v5 = vsel %vm396_vm0, %v3009_v25, 0.0 }
0x1c1a   : > { %v3012_v15 = vadd.f32 %v3011_v5, %v3010_v4  ;;  %v3796_v5 = vrot.slane %v6602_v50, %v5593_v56 }
0x1c1c   : > { %v3013_v17 = vrot.slane %v3012_v15, 4 }
0x1c1e   : > { %v3014_v31 = vadd.f32 %v3013_v17, %v3012_v15 }
0x1c20   : > { %v3015_v24 = vrot.slane %v3014_v31, 2 }
0x1c22   : > { %v3016_v8 = vadd.f32 %v3015_v24, %v3014_v31 }
0x1c24   : > { %v3017_v39 = vrot.slane %v3016_v8, 1 }
0x1c26   : > { %v3018_v28 = vadd.f32 %v3017_v39, %v3016_v8 }
0x1c28   : > { %v3019_v42 = vmul.f32 %v3018_v28, %v6345_v59  ;;  %v3020_v51 = vmul.f32 %v3018_v28, %v6347_v10 }
0x1c2a   : > { %v3021_v0 = vpack.c.bf16 %v3020_v51, %v3019_v42 }
0x1c2c   : > { %4917 = vmatmul.mubr.msk.bf16.vlgmr.msra.gmra.mrb[40].mxu0 %vm396_vm0, %v3021_v0 }
0x1c2d   : > { %4932 = vmatprep.mubr.msk.bf16.mxu0 %vm5347_vm1, %v7013_v3  ;;  %4929 = vmatpush3.bf16.msra.mxu0 %v5078_v6 }
0x1c2e   : > { %4930 = vmatprep.subr.bf16.mxu0 %v7013_v3 }
0x1c31   : > { %4931 = vmatpush3.bf16.msra.mxu0 %v5079_v63 }
0x1c32   : > { %4944 = vmatprep.subr.bf16.mxu0 %v7013_v3 }
0x1c89   : > { %v3678_v47 = vpop.permute.xlu1 %3677 }
0x1c8a   : > { %4925 = vmatmul.mubr.msk.bf16.vlgmr.msra.gmra.mrb[32].mxu1 %vm396_vm0, %v3678_v47 }
0x1c8b   : > { %4940 = vmatprep.mubr.msk.bf16.mxu1 %vm5347_vm1, %v7013_v3  ;;  %4937 = vmatpush3.bf16.msra.mxu1 %v5076_v52 }
0x1c8c   : > { %4938 = vmatprep.subr.bf16.mxu1 %v7013_v3 }
0x1c8f   : > { %4939 = vmatpush3.bf16.msra.mxu1 %v5077_v14 }
0x1c90   : > { %4952 = vmatprep.subr.bf16.mxu1 %v7013_v3 }
0x1cff   : > { %v3080_v12 = vpop.f32.mrb[40].mxu0 }
0x1d00   : > { %v3081_v54 = vadd.f32 %v3080_v12, %v3030_v29  ;;  %v4918_v53 = vpop.f32.mrb[41].mxu0  ;;  %v4624_v12 = vld [vmem:[%s6960_s8 + $0xb8] sm:$0xff] }
0x1d01   : > { %v3083_v48 = vpop.f32.mrb[42].mxu0 }
0x1d02   : > { %v3087_v16 = vadd.f32 %v3081_v54, %v6345_v59  ;;  %v3084_v11 = vadd.f32 %v3083_v48, %v3030_v29  ;;  %v4919_v26 = vpop.f32.mrb[43].mxu0  ;;  %v3675_v54 = vrot.slane %v6602_v50, %v5582_v36 }
0x1d03   : > { %v3806_v26 = vrot.slane %v4620_v22, 1 }
0x1d04   : > { %v3752_v35 = vmul.f32 %v4615_v41, %v3087_v16  ;;  %v3765_v1 = vmul.f32 %v3759_v45, %v3087_v16  ;;  %v3767_v37 = vmul.f32 %v3760_v32, %v3087_v16  ;;  %v3088_v23 = vadd.f32 %v3084_v11, %v6347_v10  ;;  %v4621_v41 = vld [vmem:[%s6960_s8 + $0xa0] sm:$0xff] }
0x1d05   : > { %v3747_v15 = vmul.f32 %v3742_v21, %v3087_v16  ;;  %v3824_v45 = vrot.slane %v4623_v20, 7  ;;  %v3825_v32 = vrot.slane %v4624_v12, 7  ;;  %v3805_v11 = vrot.slane %v4619_v38, 1 }
0x1d06   : > { %v3770_v49 = vrot.slane %v3752_v35, 1  ;;  %v3746_v18 = vmul.f32 %v3740_v27, %v3088_v23  ;;  %v3753_v59 = vmul.f32 %v4616_v40, %v3088_v23  ;;  %v3766_v9 = vmul.f32 %v3761_v57, %v3088_v23 }
0x1d07   : > { %v3782_v13 = vrot.slane %v3765_v1, 2  ;;  %v3785_v2 = vrot.slane %v3767_v37, 2  ;;  %v3748_v55 = vmul.f32 %v3741_v30, %v3088_v23  ;;  %v4622_v37 = vld [vmem:[%s6960_s8 + $0xa8] sm:$0xff]  ;;  %v3826_v40 = vsel %vm1436_vm13, %v3824_v45, %v3825_v32 }
0x1d08   : > { %v3771_v33 = vrot.slane %v3753_v59, 1  ;;  %v3776_v25 = vadd.f32 %v3770_v49, %v3746_v18  ;;  %v3783_v4 = vrot.slane %v3766_v9, 2  ;;  %v3807_v21 = vsel %vm1271_vm4, %v3805_v11, %v3806_v26 }
0x1d09   : > { %v4016_v38 = vrot.slane %v6602_v50, %v5748_v43 }
0x1d0a   : > { %v3772_v17 = vsel %vm1271_vm4, %v3770_v49, %v3771_v33  ;;  %v3778_v31 = vadd.f32 %v3771_v33, %v3748_v55  ;;  %v3784_v10 = vsel %vm1292_vm6, %v3782_v13, %v3783_v4  ;;  %v3786_v24 = vsel %vm1292_vm6, %v3783_v4, %v3785_v2 }
0x1d0b   : > { %v3777_v8 = vadd.f32 %v3772_v17, %v3747_v15  ;;  %v3790_v39 = vadd.f32 %v3782_v13, %v3776_v25 }
0x1d0c   : > { %v3792_v28 = vadd.f32 %v3786_v24, %v3778_v31 }
0x1d0d   : > { %v3791_v42 = vadd.f32 %v3784_v10, %v3777_v8  ;;  %v3797_v51 = vadd.f32 %v3796_v5, %v3790_v39 }
0x1d0e   : > { %v3799_v0 = vadd.f32 %v3796_v5, %v3792_v28 }
0x1d0f   : > { %v3798_v47 = vadd.f32 %v3796_v5, %v3791_v42  ;;  %v3868_v14 = vrot.slane %v3797_v51, 7  ;;  %v3861_v5 = vrot.slane %v6602_v50, %v5655_v34 }
0x1d10   : > { %v3871_v52 = vrot.slane %v3799_v0, 7 }
0x1d11   : > { %v3869_v6 = vrot.slane %v3798_v47, 7 }
0x1d13   : > { %v3870_v56 = vsel %vm1436_vm13, %v3868_v14, %v3869_v6  ;;  %v3872_v63 = vsel %vm1436_vm13, %v3869_v6, %v3871_v52 }
0x1d14   : > { %v3875_v62 = vadd.f32 %v3870_v56, %v3087_v16  ;;  %v3876_v29 = vadd.f32 %v3872_v63, %v3088_v23 }
0x1d16   : > { %v3877_v19 = vpack.c.bf16 %v3876_v29, %v3875_v62 }
0x1d18   : > { %4941 = vmatmul.mubr.msk.bf16.vlgmr.msra.gmra.mrb[36].mxu1 %vm396_vm0, %v3877_v19 }
0x1d19   : > { %4960 = vmatprep.mubr.msk.bf16.mxu1 %vm5347_vm1, %v7013_v3 }
0x1d5d   : > { %v3728_v53 = vpop.f32.mrb[32].mxu1 }
0x1d5e   : > { %v3729_v48 = vadd.f32 %v3728_v53, %v3675_v54  ;;  %v4926_v16 = vpop.f32.mrb[33].mxu1 }
0x1d5f   : > { %v3731_v27 = vpop.f32.mrb[34].mxu1 }
0x1d60   : > { %v3817_v30 = vmul.f32 %v4621_v41, %v3729_v48  ;;  %v3830_v35 = vmul.f32 %v3824_v45, %v3729_v48  ;;  %v3832_v1 = vmul.f32 %v3825_v32, %v3729_v48  ;;  %v4927_v57 = vpop.f32.mrb[35].mxu1  ;;  %v3732_v23 = vadd.f32 %v3731_v27, %v3675_v54 }
0x1d61   : > { %v3812_v15 = vmul.f32 %v3807_v21, %v3729_v48 }
0x1d62   : > { %v3835_v49 = vrot.slane %v3817_v30, 1  ;;  %v3811_v18 = vmul.f32 %v3805_v11, %v3732_v23  ;;  %v3818_v59 = vmul.f32 %v4622_v37, %v3732_v23  ;;  %v3831_v9 = vmul.f32 %v3826_v40, %v3732_v23 }
0x1d63   : > { %v3847_v13 = vrot.slane %v3830_v35, 2  ;;  %v3850_v2 = vrot.slane %v3832_v1, 2  ;;  %v3813_v55 = vmul.f32 %v3806_v26, %v3732_v23 }
0x1d64   : > { %v3836_v33 = vrot.slane %v3818_v59, 1  ;;  %v3841_v25 = vadd.f32 %v3835_v49, %v3811_v18  ;;  %v3848_v4 = vrot.slane %v3831_v9, 2  ;;  %v5080_v18 = vld [vmem:[#allocation5 + $0x30] sm:$0xff]   ;;  %v5081_v59 = vld [vmem:[#allocation5 + $0x38] sm:$0xff]  }
0x1d66   : > { %v3837_v17 = vsel %vm1271_vm4, %v3835_v49, %v3836_v33  ;;  %v3843_v31 = vadd.f32 %v3836_v33, %v3813_v55  ;;  %v3849_v10 = vsel %vm1292_vm6, %v3847_v13, %v3848_v4  ;;  %v3851_v24 = vsel %vm1292_vm6, %v3848_v4, %v3850_v2 }
0x1d67   : > { %v3842_v8 = vadd.f32 %v3837_v17, %v3812_v15  ;;  %v3855_v39 = vadd.f32 %v3847_v13, %v3841_v25 }
0x1d68   : > { %v3857_v28 = vadd.f32 %v3851_v24, %v3843_v31  ;;  %v5083_v24 = vld [vmem:[%s6956_s4 + $0x68] sm:$0xff]  }
0x1d69   : > { %v3856_v42 = vadd.f32 %v3849_v10, %v3842_v8  ;;  %v3862_v51 = vadd.f32 %v3861_v5, %v3855_v39  ;;  %v5082_v10 = vld [vmem:[%s6956_s4 + $0x60] sm:$0xff]   ;;  %v5084_v8 = vld [vmem:[%s6956_s4 + $0x70] sm:$0xff]   ;;  %v5085_v39 = vld [vmem:[%s6956_s4 + $0x78] sm:$0xff]  }
0x1d6a   : > { %v3864_v0 = vadd.f32 %v3861_v5, %v3857_v28  ;;  %4953 = vmatpush3.bf16.msra.mxu1 %v5082_v10  ;;  %v4056_v28 = vrot.slane %v6602_v50, %v6141_v60 }
0x1d6b   : > { %v3863_v47 = vadd.f32 %v3861_v5, %v3856_v42  ;;  %v3886_v6 = vrot.slane %v3862_v51, 7  ;;  %4954 = vmatprep.subr.bf16.mxu1 %v7013_v3 }
0x1d6c   : > { %v3889_v52 = vrot.slane %v3864_v0, 7 }
0x1d6d   : > { %v3887_v14 = vrot.slane %v3863_v47, 7 }
0x1d6e   : > { %4955 = vmatpush3.bf16.msra.mxu1 %v5083_v24 }
0x1d6f   : > { %v3890_v34 = vsel %vm1436_vm13, %v3887_v14, %v3889_v52  ;;  %v3888_v56 = vsel %vm1436_vm13, %v3886_v6, %v3887_v14  ;;  %4956 = vmatprep.subr.bf16.mxu1 %v7013_v3 }
0x1d70   : > { %v3894_v63 = vadd.f32 %v3890_v34, %v3732_v23  ;;  %v3893_v62 = vadd.f32 %v3888_v56, %v3729_v48 }
0x1d72   : > { %v3895_v29 = vpack.c.bf16 %v3894_v63, %v3893_v62  ;;  %4957 = vmatpush3.bf16.msra.mxu1 %v5084_v8 }
0x1d73   : > { %4958 = vmatprep.subr.bf16.mxu1 %v7013_v3 }
0x1d74   : > { %4933 = vmatmul.mubr.msk.bf16.vlgmr.msra.gmra.mrb[44].mxu0 %vm396_vm0, %v3895_v29 }
0x1d75   : > { %4948 = vmatprep.mubr.msk.bf16.mxu0 %vm5347_vm1, %v7013_v3  ;;  %4945 = vmatpush3.bf16.msra.mxu0 %v5080_v18 }
0x1d76   : > { %4946 = vmatprep.subr.bf16.mxu0 %v7013_v3  ;;  %4959 = vmatpush3.bf16.msra.mxu1 %v5085_v39 }
0x1d79   : > { %4947 = vmatpush3.bf16.msra.mxu0 %v5081_v59 }
0x1deb   : > { %v4006_v19 = vpop.f32.mrb[36].mxu1 }
0x1dec   : > { %v4942_v20 = vpop.f32.mrb[37].mxu1 }
0x1ded   : > { %v4009_v12 = vpop.f32.mrb[38].mxu1 }
0x1dee   : > { %v4943_v54 = vpop.f32.mrb[39].mxu1 }
0x1e47   : > { %v3950_v22 = vpop.f32.mrb[44].mxu0 }
0x1e48   : > { %v4007_v45 = vadd.f32 %v4006_v19, %v3950_v22  ;;  %v4934_v32 = vpop.f32.mrb[45].mxu0 }
0x1e49   : > { %v3953_v53 = vpop.f32.mrb[46].mxu0 }
0x1e4a   : > { %v4017_v41 = vadd.f32 %v4016_v38, %v4007_v45  ;;  %v4010_v16 = vadd.f32 %v4009_v12, %v3953_v53  ;;  %v4935_v48 = vpop.f32.mrb[47].mxu0 }
0x1e4c   : > { %v6837_v11 = vadd.f32 %v4017_v41, %v6317_v46  ;;  %v4018_v26 = vadd.f32 %v4016_v38, %v4010_v16  ;;  %v4140_v38 = vrot.slane %v6602_v50, %v5770_v44 }
0x1e4e   : > { %v6840_v27 = vadd.f32 %v4018_v26, %v6320_v58  ;;  %v4021_v30 = vsel %vm396_vm0, %v6837_v11, 0.0 }
0x1e4f   : > { %4022 = vadd.xlane.f32.xlu0 %v4021_v30 }
0x1e50   : > { %v4024_v43 = vsel %vm396_vm0, %v6840_v27, 0.0 }
0x1e51   : > { %4025 = vadd.xlane.f32.xlu1 %v4024_v43 }
0x1edc   : > { %v4023_v35 = vpop.xlane.xlu0 %4022 }
0x1edd   : > { %v4027_v1 = vmul.f32 0.03125, %v4023_v35 }
0x1ede   : > { %v4026_v37 = vpop.xlane.xlu1 %4025 }
0x1edf   : > { %v4029_v40 = vsub.f32 %v6837_v11, %v4027_v1  ;;  %v4028_v57 = vmul.f32 0.03125, %v4026_v37 }
0x1ee1   : > { %v4030_v46 = vsub.f32 %v6840_v27, %v4028_v57  ;;  %v4031_v23 = vmul.f32 %v4029_v40, %v4029_v40 }
0x1ee3   : > { %v4033_v58 = vsel %vm396_vm0, %v4031_v23, 0.0  ;;  %v4032_v49 = vmul.f32 %v4030_v46, %v4030_v46 }
0x1ee4   : > { %4034 = vadd.xlane.f32.xlu0 %v4033_v58 }
0x1ee5   : > { %v4036_v21 = vsel %vm396_vm0, %v4032_v49, 0.0 }
0x1ee8   : > { %4037 = vadd.xlane.f32.xlu0 %v4036_v21 }
0x1f71   : > { %v4035_v9 = vpop.xlane.xlu0 %4034 }
0x1f72   : > { %v4039_v13 = vmul.f32 0.03125, %v4035_v9 }
0x1f74   : > { %v4041_v2 = vadd.f32 1e-05, %v4039_v13 }
0x1f75   : > { %v4038_v55 = vpop.xlane.xlu0 %4037 }
0x1f76   : > { %v4040_v33 = vmul.f32 0.03125, %v4038_v55  ;;  %5190 = vrsqrt.f32 %v4041_v2  ;;  %v5213_v2 = vld [vmem:[%s6958_s6 + $0x20] sm:$0xff] }
0x1f77   : > { %v4242_v55 = vrot.slane %v5213_v2, %v7014_v61 }
0x1f78   : > { %v4042_v25 = vadd.f32 1e-05, %v4040_v33 }
0x1f7a   : > { %5192 = vrsqrt.f32 %v4042_v25 }
0x1f80   : > { %v5191_v4 = vpop.eup %5190 }
0x1f81   : > { %v4045_v15 = vmul.f32 %v5191_v4, %v4029_v40 }
0x1f84   : > { %v5193_v5 = vpop.eup %5192 }
0x1f85   : > { %v4046_v17 = vmul.f32 %v5193_v5, %v4030_v46  ;;  %v4657_v5 = vld [vmem:[%s6958_s6 + $0x28] ss:$0 sm:$0xff] }
0x1f87   : > { %v4047_v31 = vpack.c.bf16 %v4046_v17, %v4045_v15 }
0x1f89   : > { %4949 = vmatmul.mubr.msk.bf16.vlgmr.msra.gmra.mrb[48].mxu0 %vm396_vm0, %v4047_v31 }
0x205c   : > { %v4106_v42 = vpop.f32.mrb[48].mxu0 }
0x205d   : > { %v4107_v51 = vadd.f32 %v4106_v42, %v4056_v28  ;;  %v4950_v0 = vpop.f32.mrb[49].mxu0 }
0x205e   : > { %v4109_v47 = vpop.f32.mrb[50].mxu0 }
0x205f   : > { %v4642_v52 = vmul.f32 -1.442695, %v4107_v51  ;;  %v4110_v14 = vadd.f32 %v4109_v47, %v4056_v28  ;;  %v4951_v6 = vpop.f32.mrb[51].mxu0 }
0x2061   : > { %5194 = vpow2.f32 %v4642_v52  ;;  %v4643_v34 = vmul.f32 -1.442695, %v4110_v14 }
0x2063   : > { %5196 = vpow2.f32 %v4643_v34 }
0x206b   : > { %v5195_v56 = vpop.eup %5194 }
0x206c   : > { %v4119_v63 = vadd.f32 1.0, %v5195_v56 }
0x206d   : > { %v5197_v62 = vpop.eup %5196 }
0x206e   : > { %5198 = vrcp.f32 %v4119_v63  ;;  %v4120_v29 = vadd.f32 1.0, %v5197_v62 }
0x2070   : > { %5200 = vrcp.f32 %v4120_v29 }
0x2078   : > { %v5199_v19 = vpop.eup %5198 }
0x2079   : > { %v4125_v12 = vmul.f32 %v5199_v19, %v4107_v51 }
0x207a   : > { %v5201_v20 = vpop.eup %5200 }
0x207b   : > { %v4126_v60 = vmul.f32 %v5201_v20, %v4110_v14 }
0x207d   : > { %v4127_v54 = vpack.c.bf16 %v4126_v60, %v4125_v12  ;;  %v4251_v12 = vld [vmem:[%s6961_s9] sm:$0x3] }
0x207e   : > { %v4281_v60 = vrot.slane %v4251_v12, %v7016_v7 }
0x207f   : > { %4961 = vmatmul.mubr.msk.bf16.vlgmr.msra.gmra.mrb[40].mxu1 %vm566_vm2, %v4127_v54 }
0x2152   : > { %v4202_v22 = vpop.f32.mrb[40].mxu1 }
0x2153   : > { %v4203_v45 = vadd.f32 %v4202_v22, %v4140_v38  ;;  %v4962_v32 = vpop.f32.mrb[41].mxu1 }
0x2154   : > { %v4205_v53 = vpop.f32.mrb[42].mxu1 }
0x2155   : > { %v4209_v41 = vmul.f32 0.5, %v4203_v45  ;;  %v4206_v16 = vadd.f32 %v4205_v53, %v4140_v38  ;;  %v4963_v48 = vpop.f32.mrb[43].mxu1  ;;  %v4287_v38 = vrot.slane %v4251_v12, %v5582_v36  ;;  %v4659_v36 = vsel %vm404_vm8, 1.0, %v7013_v3 }
0x2157   : > { %v4211_v26 = vadd.f32 %v4209_v41, %v6837_v11  ;;  %v4210_v30 = vmul.f32 0.5, %v4206_v16 }
0x2159   : > { %v4212_v43 = vadd.f32 %v4210_v30, %v6840_v27  ;;  %v4213_v35 = vsel %vm396_vm0, %v4211_v26, 0.0 }
0x215a   : > { %4214 = vadd.xlane.f32.xlu0 %v4213_v35 }
0x215b   : > { %v4216_v1 = vsel %vm396_vm0, %v4212_v43, 0.0 }
0x215c   : > { %4217 = vadd.xlane.f32.xlu1 %v4216_v1 }
0x21e7   : > { %v4215_v37 = vpop.xlane.xlu0 %4214 }
0x21e8   : > { %v4219_v44 = vmul.f32 0.03125, %v4215_v37 }
0x21e9   : > { %v4218_v50 = vpop.xlane.xlu1 %4217 }
0x21ea   : > { %v4221_v40 = vsub.f32 %v4211_v26, %v4219_v44  ;;  %v4220_v57 = vmul.f32 0.03125, %v4218_v50  ;;  %v4658_v26 = vsel %vm403_vm7, 1.0, %v7013_v3 }
0x21ec   : > { %v4222_v46 = vsub.f32 %v4212_v43, %v4220_v57  ;;  %v4223_v23 = vmul.f32 %v4221_v40, %v4221_v40 }
0x21ee   : > { %v4225_v58 = vsel %vm396_vm0, %v4223_v23, 0.0  ;;  %v4224_v49 = vmul.f32 %v4222_v46, %v4222_v46 }
0x21ef   : > { %4226 = vadd.xlane.f32.xlu0 %v4225_v58 }
0x21f0   : > { %v4228_v11 = vsel %vm396_vm0, %v4224_v49, 0.0 }
0x21f1   : > { %4229 = vadd.xlane.f32.xlu1 %v4228_v11 }
0x227c   : > { %v4227_v27 = vpop.xlane.xlu0 %4226 }
0x227d   : > { %v4231_v21 = vmul.f32 0.03125, %v4227_v27 }
0x227e   : > { %v4230_v18 = vpop.xlane.xlu1 %4229 }
0x227f   : > { %v4233_v59 = vadd.f32 1e-05, %v4231_v21  ;;  %v4232_v9 = vmul.f32 0.03125, %v4230_v18 }
0x2281   : > { %5202 = vrsqrt.f32 %v4233_v59  ;;  %v4234_v13 = vadd.f32 1e-05, %v4232_v9 }
0x2283   : > { %5204 = vrsqrt.f32 %v4234_v13 }
0x228b   : > { %v5203_v33 = vpop.eup %5202 }
0x228c   : > { %v4237_v25 = vmul.f32 %v5203_v33, %v4221_v40 }
0x228d   : > { %v5205_v4 = vpop.eup %5204 }
0x228e   : > { %v4243_v15 = vmul.f32 %v4242_v55, %v4237_v25  ;;  %v4238_v17 = vmul.f32 %v5205_v4, %v4222_v46 }
0x2290   : > { %v4249_v31 = vadd.f32 %v4657_v5, %v4243_v15  ;;  %v4244_v10 = vmul.f32 %v4242_v55, %v4238_v17 }
0x2292   : > { %v4252_v24 = vsel %vm396_vm0, %v4249_v31, 0.0  ;;  %v4250_v8 = vadd.f32 %v4657_v5, %v4244_v10 }
0x2293   : > { %4253 = vadd.xlane.f32.xlu0 %v4252_v24 }
0x2294   : > { %v4255_v39 = vsel %vm396_vm0, %v4250_v8, 0.0 }
0x2295   : > { %4256 = vadd.xlane.f32.xlu1 %v4255_v39 }
0x2320   : > { %v4254_v28 = vpop.xlane.xlu0 %4253 }
0x2321   : > { %v4258_v61 = vmul.f32 0.03125, %v4254_v28 }
0x2322   : > { %v4257_v42 = vpop.xlane.xlu1 %4256 }
0x2323   : > { %v4260_v51 = vsub.f32 %v4249_v31, %v4258_v61  ;;  %v4259_v0 = vmul.f32 0.03125, %v4257_v42 }
0x2325   : > { %v4261_v47 = vsub.f32 %v4250_v8, %v4259_v0  ;;  %v4262_v52 = vmul.f32 %v4260_v51, %v4260_v51 }
0x2327   : > { %v4264_v14 = vsel %vm396_vm0, %v4262_v52, 0.0  ;;  %v4263_v6 = vmul.f32 %v4261_v47, %v4261_v47 }
0x2328   : > { %4265 = vadd.xlane.f32.xlu0 %v4264_v14 }
0x2329   : > { %v4267_v34 = vsel %vm396_vm0, %v4263_v6, 0.0 }
0x232a   : > { %4268 = vadd.xlane.f32.xlu1 %v4267_v34 }
0x23b5   : > { %v4266_v56 = vpop.xlane.xlu0 %4265 }
0x23b6   : > { %v4270_v63 = vmul.f32 0.03125, %v4266_v56 }
0x23b7   : > { %v4269_v62 = vpop.xlane.xlu1 %4268 }
0x23b8   : > { %v4272_v29 = vadd.f32 1e-05, %v4270_v63  ;;  %v4271_v19 = vmul.f32 0.03125, %v4269_v62 }
0x23ba   : > { %5206 = vrsqrt.f32 %v4272_v29  ;;  %v4273_v20 = vadd.f32 1e-05, %v4271_v19 }
0x23bc   : > { %5208 = vrsqrt.f32 %v4273_v20 }
0x23c4   : > { %v5207_v54 = vpop.eup %5206 }
0x23c5   : > { %v4276_v22 = vmul.f32 %v5207_v54, %v4260_v51 }
0x23c6   : > { %v5209_v45 = vpop.eup %5208 }
0x23c7   : > { %v4282_v32 = vmul.f32 %v4281_v60, %v4276_v22  ;;  %v4277_v53 = vmul.f32 %v5209_v45, %v4261_v47 }
0x23c9   : > { %v4288_v41 = vadd.f32 %v4287_v38, %v4282_v32  ;;  %v4283_v16 = vmul.f32 %v4281_v60, %v4277_v53 }
0x23cb   : > { %v4294_v30 = vmul.f32 %v4658_v26, %v4288_v41  ;;  %v4289_v7 = vadd.f32 %v4287_v38, %v4283_v16 }
0x23cd   : > { %v4295_v35 = vmul.f32 %v4659_v36, %v4289_v7  ;;  %4296 = vst.msk [vmem:[%s383_s22] sm:$0xff] %vm396_vm0, %v4294_v30 }
0x23cf   : > { %4297 = vst.msk [vmem:[%s383_s22 + $0x8] sm:$0xff] %vm396_vm0, %v4295_v35 }
0x23d0   : > { %5283 = shalt.err (!%p5280_p11)
}
0x23d1   : > { %s5284_s11 = scalar_lea.hbm %s6905_s19, 256  ;;  %s5288_s18 = scalar_lea.hbm %s6962_s10, 512 }
0x23d2   : > { %p5285_p13 = scmp.ne.s32.totalorder %s6905_s19, %s5284_s11  ;;  %p5289_p6 = scmp.lt.u32.totalorder %s6905_s19, %s6962_s10 }
0x23d3   : > { %p5290_p9 = scmp.lt.u32.totalorder %s5288_s18, %s5284_s11  ;;  %p5292_p12 = scmp.lt.u32.totalorder %s5284_s11, %s6905_s19 }
0x23d4   : > { %p5286_p5 = pnand %p5285_p13, %p7021_p1 }
0x23d5   : > { %p5291_p10 = por %p5290_p9, %p5289_p6 }
0x23d6   : > { %p5287_p0 = pneg %p5286_p5 }
0x23d7   : > { %p5293_p2 = por %p5292_p12, %p5291_p10 }
0x23d9   : > { %p5294_p3 = pnand %p5293_p2, %p5287_p0 }
0x23db   : > { %5297 = shalt.err (!%p5294_p3)
}
0x23dc   : > { %s5353_s22 = smov 128   ;;  %s5354_s27 = smov 8  }
0x23dd   : > { %4972 = dma.vmem_to_hbm [thread:$0]  (%p7021_p1), %s6907_s29, 256, %s6905_s19, %s6911_s17, %s5353_s22, %s5353_s22, %s5354_s27  }
0x23de PF: > { %s7022_s15 = sld [smem:[#allocation14_spill]]  ;;  %p4989_p4 = scmp.ge.s32.totalorder %s5340_s16, 2 }
0x23df   : > { %s4327_s24 = sand.u32 1, %s5328_s13  }
0x23e0   : > { %s4328_s28 = scalar_lea.sflag [#allocation4], %s4327_s24 }
0x23e4   : > { %p7023_p7 = scmp.ne.s32.totalorder %s7022_s15, 0 }
0x23e6   : > { %p4982_p8 = pnand %p4989_p4, %p7023_p7 }
0x23e8   : > { %5323 = dma.done.wait (!%p4982_p8), %s4328_s28, 256  }
0x23e9   : > { %5325 = vsyncadd (!%p4982_p8), %s4328_s28, 4294967040  ;;  %s7024_s16 = sld [smem:[#allocation12_spill]]  ;;  %s7025_s21 = sld [smem:[#allocation11_spill]] }
0x23ea   : > { %s7026_s15 = sld [smem:[#allocation13_spill]]  ;;  %s7027_s13 = smov %s5332_s14 }
0x23ef   : > { %p22_p11 = scmp.ge.s32.totalorder %s7024_s16, 4   ;;  %s7028_s14 = smov %s7025_s21 }
0x23f1   :  { %24 = sbr.rel (!%p22_p11) target bundleno = 5 (0x5), region = 164 }
0x23f8   :  { %4333 = vsyncpa [#allocation3], 1 }
0x23f9   :  { %4335 = vsyncpa [#allocation3 + $0x1], 1 }
0x23fa   :  { %4336 = vsyncpa [#allocation6], 1 }
0x23fb   :  { %4337 = vsyncpa [#allocation4], 1 }
0x23fc   :  { %4339 = vsyncpa [#allocation4 + $0x1], 1 }

</bundles_post_ra>
